<compile_context>
chip_gen: v7x
topology: tpu7x:2x2x1
jax: 0.10.0
libtpu: 0.0.40
codegen_flags: <defaults>
</compile_context>

<pallas_src>
import math
from functools import partial

import jax
import jax.numpy as jnp
from jax import lax
from jax.experimental import pallas as pl
from jax.experimental.pallas import tpu as pltpu


def _tlayer_kernel(xs_ref, w_ref, o_ref, *, k, oc, grp, unroll_groups):
    """One batch block.

    xs_ref: (b_blk, 3*K*K, HW)  lane-aligned per-tap rows of the padded input
    w_ref : (2*OC, K*K)         stacked [W0; W1] shared conv weights
    o_ref : (b_blk*OC, HW)      sublane/lane-dense output rows (b*OC + o)
    """
    b_blk = xs_ref.shape[0]
    hw = xs_ref.shape[-1]
    kk = k * k
    two_oc = w_ref.shape[0]

    wmat = w_ref[...]                                   # (2*OC, K*K) ~1 vreg
    # Hoisted once per GRID STEP (not per sample): per-tap weight column,
    # pre-broadcast to the full (2*OC, HW) FMA operand shape.
    wrows = [jnp.broadcast_to(wmat[:, t:t + 1], (two_oc, hw)) for t in range(kk)]

    def sample_phi(b):
        """Product-summed conv result for one sample; b static or traced."""
        phi = None
        for c in range(3):
            acc = jnp.zeros((two_oc, hw), jnp.float32)
            base = c * kk
            for t in range(kk):
                # Dense, lane-aligned (1, HW) tap row loaded straight from the
                # ref; one full-density vreg FMA updates both convolutions and
                # all OC output channels at once.
                patch = xs_ref[b, base + t:base + t + 1, :]
                acc = acc + wrows[t] * patch
            prod = acc[:oc, :] * acc[oc:, :]            # conv_W0 * conv_W1
            phi = prod if phi is None else phi + prod
        return phi                                       # (OC, HW)

    n_groups = b_blk // grp
    rem = b_blk - n_groups * grp
    rows_per_group = grp * oc                            # multiple of 8

    def store_group(p, base_sample):
        blk = jnp.concatenate([sample_phi(base_sample + s) for s in range(grp)],
                              axis=0)                    # (grp*OC, HW)
        start = p * rows_per_group
        if not isinstance(start, int):                   # dynamic (fori) path
            start = pl.multiple_of(start, rows_per_group)
        o_ref[pl.ds(start, rows_per_group), :] = blk.astype(o_ref.dtype)

    if n_groups <= unroll_groups:
        # Small blocks: static unroll -> static, unmasked 8-sublane stores.
        for p in range(n_groups):
            store_group(p, p * grp)
    else:
        # Large blocks: bound live ranges / code size with fori_loop.
        def body(p, carry):
            store_group(p, p * grp)
            return carry
        lax.fori_loop(0, n_groups, body, 0, unroll=2)

    # Remainder samples (only when b_blk < store-group size divides unevenly);
    # rem < grp so this stays a tiny static loop.  Stores may be sublane-masked
    # here, but this path never triggers for the block sizes picked below when
    # batch >= group size.
    for s in range(rem):
        b = n_groups * grp + s
        o_ref[pl.ds(b * oc, oc), :] = sample_phi(b).astype(o_ref.dtype)


def _num_tensorcores():
    """Best-effort TensorCore count per chip (perf hint only)."""
    try:
        kind = jax.devices()[0].device_kind.lower()
    except Exception:
        return 1
    return 2 if any(t in kind for t in ("v7", "v5p", "v4", "v3")) else 1


def _pick_batch_block(batch, oc, rows, hw, n_cores, grp):
    """Samples per grid step: chip-aware, store-group aligned, VMEM bounded."""
    # f32 bytes per sample of (input tap rows + output rows), double buffered.
    bytes_per_sample = (rows + oc) * hw * 4
    cap = max(1, (6 * 1024 * 1024) // (2 * bytes_per_sample))
    b_blk = min(batch, cap)
    if b_blk < batch:
        # Partial coverage: keep the dense 8-sublane store-group structure.
        b_blk = max(grp, (b_blk // grp) * grp)
    if n_cores > 1:
        # Feed every TensorCore when there is enough work; never split a
        # single-step-sized problem into extra sequential grid steps.
        while b_blk > grp and pl.cdiv(batch, b_blk) < n_cores:
            b_blk = max(grp, ((b_blk // 2) // grp) * grp)
    return b_blk


@partial(jax.jit, static_argnames=("padding",))
def tlayer_forward(x, w0, w1, padding):
    """x: (B, 3, N, N) f32; w0/w1: (OC, 1, K, K) f32 -> (B, OC, Ho, Wo) f32."""
    b, cin, n, n2 = x.shape
    assert cin == 3 and n == n2
    oc, _, k, _ = w0.shape
    ho = n + 2 * padding - k + 1
    wo = n + 2 * padding - k + 1
    hw = ho * wo
    kk = k * k

    # --- aligned per-tap relayout: pad + K*K shifted copies + flatten ---
    # TODO(synk): for very large batches on v5e, switch to the compact
    # column-shifted layout + in-kernel pltpu.roll (and bf16 xs) to cut the
    # ~ (K*K/ (K)) x HBM expansion; the aligned layout is the right choice for
    # the small / latency-bound regime exercised here.
    xp = jnp.pad(x, ((0, 0), (0, 0), (padding, padding), (padding, padding)))
    taps = jnp.stack([xp[:, :, di:di + ho, dj:dj + wo]
                      for di in range(k) for dj in range(k)], axis=2)
    xs = taps.reshape(b, 3 * kk, hw).astype(jnp.float32)   # (B, 3*K*K, HW)

    # --- stack the two shared conv weights: (2*OC, K*K) ---
    wcat = jnp.concatenate([w0.reshape(oc, kk), w1.reshape(oc, kk)],
                           axis=0).astype(jnp.float32)

    grp = 8 // math.gcd(oc, 8)          # samples per dense 8-sublane store
    b_blk = _pick_batch_block(b, oc, 3 * kk, hw, _num_tensorcores(), grp)
    grid = (pl.cdiv(b, b_blk),)

    kernel = partial(_tlayer_kernel, k=k, oc=oc, grp=grp, unroll_groups=8)
    out_flat = pl.pallas_call(
        kernel,
        out_shape=jax.ShapeDtypeStruct((b * oc, hw), jnp.float32),
        grid_spec=pltpu.PrefetchScalarGridSpec(
            num_scalar_prefetch=0,
            grid=grid,
            in_specs=[
                pl.BlockSpec((b_blk, 3 * kk, hw), lambda i: (i, 0, 0)),
                # Constant-index, ~800 B weight block (fetched once).
                pl.BlockSpec((2 * oc, kk), lambda i: (0, 0)),
            ],
            out_specs=pl.BlockSpec((b_blk * oc, hw), lambda i: (i, 0)),
        ),
        compiler_params=pltpu.CompilerParams(
            dimension_semantics=("parallel",),
            vmem_limit_bytes=32 * 1024 * 1024,
        ),
    )(xs, wcat)

    return out_flat.reshape(b, oc, ho, wo)


def tlayer_reference(x, w0, w1, padding):
    """Pure-JAX reference matching the PyTorch forward exactly (bias=False)."""
    chans = [x[:, c:c + 1, :, :] for c in range(3)]
    dn = jax.lax.conv_dimension_numbers(chans[0].shape, w0.shape,
                                        ("NCHW", "OIHW", "NCHW"))

    def conv(ch, w):
        return jax.lax.conv_general_dilated(
            ch, w, window_strides=(1, 1),
            padding=[(padding, padding), (padding, padding)],
            dimension_numbers=dn)

    out = None
    for ch in chans:
        prod = conv(ch, w0) * conv(ch, w1)
        out = prod if out is None else out + prod
    return out


if __name__ == "__main__":
    # Small deterministic configuration consistent with the module.
    batch = 2
    n = 16
    out_channels = 4
    kernel_size = 5
    padding = 2

    key = jax.random.PRNGKey(0)
    kx, k0, k1 = jax.random.split(key, 3)
    x = jax.random.normal(kx, (batch, 3, n, n), dtype=jnp.float32)
    # Deterministic synthetic weights (shape of nn.Conv2d(1, OC, K, bias=False)).
    w0 = jax.random.normal(k0, (out_channels, 1, kernel_size, kernel_size),
                           dtype=jnp.float32) * 0.1
    w1 = jax.random.normal(k1, (out_channels, 1, kernel_size, kernel_size),
                           dtype=jnp.float32) * 0.1

    out = tlayer_forward(x, w0, w1, padding=padding)
    out = jax.block_until_ready(out)

    ref = tlayer_reference(x, w0, w1, padding)
    assert out.shape == (batch, out_channels, n, n), out.shape
    max_err = float(jnp.max(jnp.abs(out - ref)))
    assert max_err < 1e-4, max_err

    print("KERNEL_OK")
</pallas_src>

<mosaic_0001>
module attributes {stable_mosaic.version = 11 : i64} {
  func.func @_tlayer_kernel(%arg0: i32, %arg1: memref<2x75x256xf32, #tpu.memory_space<vmem>>, %arg2: memref<8x25xf32, #tpu.memory_space<vmem>>, %arg3: memref<8x256xf32, #tpu.memory_space<vmem>>) attributes {dimension_semantics = [#tpu.dimension_semantics<parallel>], iteration_bounds = array<i64: 1>, scalar_prefetch = 0 : i64, scratch_operands = 0 : i64, tpu.core_type = #tpu.core_type<tc>, window_params = [{transform_indices = @transform_0, window_bounds = array<i64: 2, 75, 256>}, {pipeline_mode = #tpu.pipeline_mode<synchronous>, transform_indices = @transform_1, window_bounds = array<i64: 8, 25>}, {transform_indices = @transform_2, window_bounds = array<i64: 8, 256>}]} {
    %c0 = arith.constant 0 : index
    %c0_0 = arith.constant 0 : index
    %0 = vector.load %arg2[%c0, %c0_0] : memref<8x25xf32, #tpu.memory_space<vmem>>, vector<8x25xf32>
    %1 = vector.extract_strided_slice %0 {offsets = [0, 0], sizes = [8, 1], strides = [1, 1]} : vector<8x25xf32> to vector<8x1xf32>
    %2 = vector.shape_cast %1 : vector<8x1xf32> to vector<8x1xf32>
    %3 = vector.broadcast %2 : vector<8x1xf32> to vector<8x256xf32>
    %4 = vector.extract_strided_slice %0 {offsets = [0, 1], sizes = [8, 1], strides = [1, 1]} : vector<8x25xf32> to vector<8x1xf32>
    %5 = vector.shape_cast %4 : vector<8x1xf32> to vector<8x1xf32>
    %6 = vector.broadcast %5 : vector<8x1xf32> to vector<8x256xf32>
    %7 = vector.extract_strided_slice %0 {offsets = [0, 2], sizes = [8, 1], strides = [1, 1]} : vector<8x25xf32> to vector<8x1xf32>
    %8 = vector.shape_cast %7 : vector<8x1xf32> to vector<8x1xf32>
    %9 = vector.broadcast %8 : vector<8x1xf32> to vector<8x256xf32>
    %10 = vector.extract_strided_slice %0 {offsets = [0, 3], sizes = [8, 1], strides = [1, 1]} : vector<8x25xf32> to vector<8x1xf32>
    %11 = vector.shape_cast %10 : vector<8x1xf32> to vector<8x1xf32>
    %12 = vector.broadcast %11 : vector<8x1xf32> to vector<8x256xf32>
    %13 = vector.extract_strided_slice %0 {offsets = [0, 4], sizes = [8, 1], strides = [1, 1]} : vector<8x25xf32> to vector<8x1xf32>
    %14 = vector.shape_cast %13 : vector<8x1xf32> to vector<8x1xf32>
    %15 = vector.broadcast %14 : vector<8x1xf32> to vector<8x256xf32>
    %16 = vector.extract_strided_slice %0 {offsets = [0, 5], sizes = [8, 1], strides = [1, 1]} : vector<8x25xf32> to vector<8x1xf32>
    %17 = vector.shape_cast %16 : vector<8x1xf32> to vector<8x1xf32>
    %18 = vector.broadcast %17 : vector<8x1xf32> to vector<8x256xf32>
    %19 = vector.extract_strided_slice %0 {offsets = [0, 6], sizes = [8, 1], strides = [1, 1]} : vector<8x25xf32> to vector<8x1xf32>
    %20 = vector.shape_cast %19 : vector<8x1xf32> to vector<8x1xf32>
    %21 = vector.broadcast %20 : vector<8x1xf32> to vector<8x256xf32>
    %22 = vector.extract_strided_slice %0 {offsets = [0, 7], sizes = [8, 1], strides = [1, 1]} : vector<8x25xf32> to vector<8x1xf32>
    %23 = vector.shape_cast %22 : vector<8x1xf32> to vector<8x1xf32>
    %24 = vector.broadcast %23 : vector<8x1xf32> to vector<8x256xf32>
    %25 = vector.extract_strided_slice %0 {offsets = [0, 8], sizes = [8, 1], strides = [1, 1]} : vector<8x25xf32> to vector<8x1xf32>
    %26 = vector.shape_cast %25 : vector<8x1xf32> to vector<8x1xf32>
    %27 = vector.broadcast %26 : vector<8x1xf32> to vector<8x256xf32>
    %28 = vector.extract_strided_slice %0 {offsets = [0, 9], sizes = [8, 1], strides = [1, 1]} : vector<8x25xf32> to vector<8x1xf32>
    %29 = vector.shape_cast %28 : vector<8x1xf32> to vector<8x1xf32>
    %30 = vector.broadcast %29 : vector<8x1xf32> to vector<8x256xf32>
    %31 = vector.extract_strided_slice %0 {offsets = [0, 10], sizes = [8, 1], strides = [1, 1]} : vector<8x25xf32> to vector<8x1xf32>
    %32 = vector.shape_cast %31 : vector<8x1xf32> to vector<8x1xf32>
    %33 = vector.broadcast %32 : vector<8x1xf32> to vector<8x256xf32>
    %34 = vector.extract_strided_slice %0 {offsets = [0, 11], sizes = [8, 1], strides = [1, 1]} : vector<8x25xf32> to vector<8x1xf32>
    %35 = vector.shape_cast %34 : vector<8x1xf32> to vector<8x1xf32>
    %36 = vector.broadcast %35 : vector<8x1xf32> to vector<8x256xf32>
    %37 = vector.extract_strided_slice %0 {offsets = [0, 12], sizes = [8, 1], strides = [1, 1]} : vector<8x25xf32> to vector<8x1xf32>
    %38 = vector.shape_cast %37 : vector<8x1xf32> to vector<8x1xf32>
    %39 = vector.broadcast %38 : vector<8x1xf32> to vector<8x256xf32>
    %40 = vector.extract_strided_slice %0 {offsets = [0, 13], sizes = [8, 1], strides = [1, 1]} : vector<8x25xf32> to vector<8x1xf32>
    %41 = vector.shape_cast %40 : vector<8x1xf32> to vector<8x1xf32>
    %42 = vector.broadcast %41 : vector<8x1xf32> to vector<8x256xf32>
    %43 = vector.extract_strided_slice %0 {offsets = [0, 14], sizes = [8, 1], strides = [1, 1]} : vector<8x25xf32> to vector<8x1xf32>
    %44 = vector.shape_cast %43 : vector<8x1xf32> to vector<8x1xf32>
    %45 = vector.broadcast %44 : vector<8x1xf32> to vector<8x256xf32>
    %46 = vector.extract_strided_slice %0 {offsets = [0, 15], sizes = [8, 1], strides = [1, 1]} : vector<8x25xf32> to vector<8x1xf32>
    %47 = vector.shape_cast %46 : vector<8x1xf32> to vector<8x1xf32>
    %48 = vector.broadcast %47 : vector<8x1xf32> to vector<8x256xf32>
    %49 = vector.extract_strided_slice %0 {offsets = [0, 16], sizes = [8, 1], strides = [1, 1]} : vector<8x25xf32> to vector<8x1xf32>
    %50 = vector.shape_cast %49 : vector<8x1xf32> to vector<8x1xf32>
    %51 = vector.broadcast %50 : vector<8x1xf32> to vector<8x256xf32>
    %52 = vector.extract_strided_slice %0 {offsets = [0, 17], sizes = [8, 1], strides = [1, 1]} : vector<8x25xf32> to vector<8x1xf32>
    %53 = vector.shape_cast %52 : vector<8x1xf32> to vector<8x1xf32>
    %54 = vector.broadcast %53 : vector<8x1xf32> to vector<8x256xf32>
    %55 = vector.extract_strided_slice %0 {offsets = [0, 18], sizes = [8, 1], strides = [1, 1]} : vector<8x25xf32> to vector<8x1xf32>
    %56 = vector.shape_cast %55 : vector<8x1xf32> to vector<8x1xf32>
    %57 = vector.broadcast %56 : vector<8x1xf32> to vector<8x256xf32>
    %58 = vector.extract_strided_slice %0 {offsets = [0, 19], sizes = [8, 1], strides = [1, 1]} : vector<8x25xf32> to vector<8x1xf32>
    %59 = vector.shape_cast %58 : vector<8x1xf32> to vector<8x1xf32>
    %60 = vector.broadcast %59 : vector<8x1xf32> to vector<8x256xf32>
    %61 = vector.extract_strided_slice %0 {offsets = [0, 20], sizes = [8, 1], strides = [1, 1]} : vector<8x25xf32> to vector<8x1xf32>
    %62 = vector.shape_cast %61 : vector<8x1xf32> to vector<8x1xf32>
    %63 = vector.broadcast %62 : vector<8x1xf32> to vector<8x256xf32>
    %64 = vector.extract_strided_slice %0 {offsets = [0, 21], sizes = [8, 1], strides = [1, 1]} : vector<8x25xf32> to vector<8x1xf32>
    %65 = vector.shape_cast %64 : vector<8x1xf32> to vector<8x1xf32>
    %66 = vector.broadcast %65 : vector<8x1xf32> to vector<8x256xf32>
    %67 = vector.extract_strided_slice %0 {offsets = [0, 22], sizes = [8, 1], strides = [1, 1]} : vector<8x25xf32> to vector<8x1xf32>
    %68 = vector.shape_cast %67 : vector<8x1xf32> to vector<8x1xf32>
    %69 = vector.broadcast %68 : vector<8x1xf32> to vector<8x256xf32>
    %70 = vector.extract_strided_slice %0 {offsets = [0, 23], sizes = [8, 1], strides = [1, 1]} : vector<8x25xf32> to vector<8x1xf32>
    %71 = vector.shape_cast %70 : vector<8x1xf32> to vector<8x1xf32>
    %72 = vector.broadcast %71 : vector<8x1xf32> to vector<8x256xf32>
    %73 = vector.extract_strided_slice %0 {offsets = [0, 24], sizes = [8, 1], strides = [1, 1]} : vector<8x25xf32> to vector<8x1xf32>
    %74 = vector.shape_cast %73 : vector<8x1xf32> to vector<8x1xf32>
    %75 = vector.broadcast %74 : vector<8x1xf32> to vector<8x256xf32>
    %cst = arith.constant 0.000000e+00 : f32
    %76 = vector.broadcast %cst : f32 to vector<8x256xf32>
    %c0_1 = arith.constant 0 : index
    %c0_2 = arith.constant 0 : index
    %c0_3 = arith.constant 0 : index
    %77 = vector.load %arg1[%c0_1, %c0_2, %c0_3] : memref<2x75x256xf32, #tpu.memory_space<vmem>>, vector<1x1x256xf32>
    %78 = vector.shape_cast %77 : vector<1x1x256xf32> to vector<1x256xf32>
    %79 = vector.broadcast %78 : vector<1x256xf32> to vector<8x256xf32>
    %80 = arith.mulf %3, %79 : vector<8x256xf32>
    %81 = arith.addf %76, %80 : vector<8x256xf32>
    %c0_4 = arith.constant 0 : index
    %c1 = arith.constant 1 : index
    %c0_5 = arith.constant 0 : index
    %82 = vector.load %arg1[%c0_4, %c1, %c0_5] : memref<2x75x256xf32, #tpu.memory_space<vmem>>, vector<1x1x256xf32>
    %83 = vector.shape_cast %82 : vector<1x1x256xf32> to vector<1x256xf32>
    %84 = vector.broadcast %83 : vector<1x256xf32> to vector<8x256xf32>
    %85 = arith.mulf %6, %84 : vector<8x256xf32>
    %86 = arith.addf %81, %85 : vector<8x256xf32>
    %c0_6 = arith.constant 0 : index
    %c2 = arith.constant 2 : index
    %c0_7 = arith.constant 0 : index
    %87 = vector.load %arg1[%c0_6, %c2, %c0_7] : memref<2x75x256xf32, #tpu.memory_space<vmem>>, vector<1x1x256xf32>
    %88 = vector.shape_cast %87 : vector<1x1x256xf32> to vector<1x256xf32>
    %89 = vector.broadcast %88 : vector<1x256xf32> to vector<8x256xf32>
    %90 = arith.mulf %9, %89 : vector<8x256xf32>
    %91 = arith.addf %86, %90 : vector<8x256xf32>
    %c0_8 = arith.constant 0 : index
    %c3 = arith.constant 3 : index
    %c0_9 = arith.constant 0 : index
    %92 = vector.load %arg1[%c0_8, %c3, %c0_9] : memref<2x75x256xf32, #tpu.memory_space<vmem>>, vector<1x1x256xf32>
    %93 = vector.shape_cast %92 : vector<1x1x256xf32> to vector<1x256xf32>
    %94 = vector.broadcast %93 : vector<1x256xf32> to vector<8x256xf32>
    %95 = arith.mulf %12, %94 : vector<8x256xf32>
    %96 = arith.addf %91, %95 : vector<8x256xf32>
    %c0_10 = arith.constant 0 : index
    %c4 = arith.constant 4 : index
    %c0_11 = arith.constant 0 : index
    %97 = vector.load %arg1[%c0_10, %c4, %c0_11] : memref<2x75x256xf32, #tpu.memory_space<vmem>>, vector<1x1x256xf32>
    %98 = vector.shape_cast %97 : vector<1x1x256xf32> to vector<1x256xf32>
    %99 = vector.broadcast %98 : vector<1x256xf32> to vector<8x256xf32>
    %100 = arith.mulf %15, %99 : vector<8x256xf32>
    %101 = arith.addf %96, %100 : vector<8x256xf32>
    %c0_12 = arith.constant 0 : index
    %c5 = arith.constant 5 : index
    %c0_13 = arith.constant 0 : index
    %102 = vector.load %arg1[%c0_12, %c5, %c0_13] : memref<2x75x256xf32, #tpu.memory_space<vmem>>, vector<1x1x256xf32>
    %103 = vector.shape_cast %102 : vector<1x1x256xf32> to vector<1x256xf32>
    %104 = vector.broadcast %103 : vector<1x256xf32> to vector<8x256xf32>
    %105 = arith.mulf %18, %104 : vector<8x256xf32>
    %106 = arith.addf %101, %105 : vector<8x256xf32>
    %c0_14 = arith.constant 0 : index
    %c6 = arith.constant 6 : index
    %c0_15 = arith.constant 0 : index
    %107 = vector.load %arg1[%c0_14, %c6, %c0_15] : memref<2x75x256xf32, #tpu.memory_space<vmem>>, vector<1x1x256xf32>
    %108 = vector.shape_cast %107 : vector<1x1x256xf32> to vector<1x256xf32>
    %109 = vector.broadcast %108 : vector<1x256xf32> to vector<8x256xf32>
    %110 = arith.mulf %21, %109 : vector<8x256xf32>
    %111 = arith.addf %106, %110 : vector<8x256xf32>
    %c0_16 = arith.constant 0 : index
    %c7 = arith.constant 7 : index
    %c0_17 = arith.constant 0 : index
    %112 = vector.load %arg1[%c0_16, %c7, %c0_17] : memref<2x75x256xf32, #tpu.memory_space<vmem>>, vector<1x1x256xf32>
    %113 = vector.shape_cast %112 : vector<1x1x256xf32> to vector<1x256xf32>
    %114 = vector.broadcast %113 : vector<1x256xf32> to vector<8x256xf32>
    %115 = arith.mulf %24, %114 : vector<8x256xf32>
    %116 = arith.addf %111, %115 : vector<8x256xf32>
    %c0_18 = arith.constant 0 : index
    %c8 = arith.constant 8 : index
    %c0_19 = arith.constant 0 : index
    %117 = vector.load %arg1[%c0_18, %c8, %c0_19] : memref<2x75x256xf32, #tpu.memory_space<vmem>>, vector<1x1x256xf32>
    %118 = vector.shape_cast %117 : vector<1x1x256xf32> to vector<1x256xf32>
    %119 = vector.broadcast %118 : vector<1x256xf32> to vector<8x256xf32>
    %120 = arith.mulf %27, %119 : vector<8x256xf32>
    %121 = arith.addf %116, %120 : vector<8x256xf32>
    %c0_20 = arith.constant 0 : index
    %c9 = arith.constant 9 : index
    %c0_21 = arith.constant 0 : index
    %122 = vector.load %arg1[%c0_20, %c9, %c0_21] : memref<2x75x256xf32, #tpu.memory_space<vmem>>, vector<1x1x256xf32>
    %123 = vector.shape_cast %122 : vector<1x1x256xf32> to vector<1x256xf32>
    %124 = vector.broadcast %123 : vector<1x256xf32> to vector<8x256xf32>
    %125 = arith.mulf %30, %124 : vector<8x256xf32>
    %126 = arith.addf %121, %125 : vector<8x256xf32>
    %c0_22 = arith.constant 0 : index
    %c10 = arith.constant 10 : index
    %c0_23 = arith.constant 0 : index
    %127 = vector.load %arg1[%c0_22, %c10, %c0_23] : memref<2x75x256xf32, #tpu.memory_space<vmem>>, vector<1x1x256xf32>
    %128 = vector.shape_cast %127 : vector<1x1x256xf32> to vector<1x256xf32>
    %129 = vector.broadcast %128 : vector<1x256xf32> to vector<8x256xf32>
    %130 = arith.mulf %33, %129 : vector<8x256xf32>
    %131 = arith.addf %126, %130 : vector<8x256xf32>
    %c0_24 = arith.constant 0 : index
    %c11 = arith.constant 11 : index
    %c0_25 = arith.constant 0 : index
    %132 = vector.load %arg1[%c0_24, %c11, %c0_25] : memref<2x75x256xf32, #tpu.memory_space<vmem>>, vector<1x1x256xf32>
    %133 = vector.shape_cast %132 : vector<1x1x256xf32> to vector<1x256xf32>
    %134 = vector.broadcast %133 : vector<1x256xf32> to vector<8x256xf32>
    %135 = arith.mulf %36, %134 : vector<8x256xf32>
    %136 = arith.addf %131, %135 : vector<8x256xf32>
    %c0_26 = arith.constant 0 : index
    %c12 = arith.constant 12 : index
    %c0_27 = arith.constant 0 : index
    %137 = vector.load %arg1[%c0_26, %c12, %c0_27] : memref<2x75x256xf32, #tpu.memory_space<vmem>>, vector<1x1x256xf32>
    %138 = vector.shape_cast %137 : vector<1x1x256xf32> to vector<1x256xf32>
    %139 = vector.broadcast %138 : vector<1x256xf32> to vector<8x256xf32>
    %140 = arith.mulf %39, %139 : vector<8x256xf32>
    %141 = arith.addf %136, %140 : vector<8x256xf32>
    %c0_28 = arith.constant 0 : index
    %c13 = arith.constant 13 : index
    %c0_29 = arith.constant 0 : index
    %142 = vector.load %arg1[%c0_28, %c13, %c0_29] : memref<2x75x256xf32, #tpu.memory_space<vmem>>, vector<1x1x256xf32>
    %143 = vector.shape_cast %142 : vector<1x1x256xf32> to vector<1x256xf32>
    %144 = vector.broadcast %143 : vector<1x256xf32> to vector<8x256xf32>
    %145 = arith.mulf %42, %144 : vector<8x256xf32>
    %146 = arith.addf %141, %145 : vector<8x256xf32>
    %c0_30 = arith.constant 0 : index
    %c14 = arith.constant 14 : index
    %c0_31 = arith.constant 0 : index
    %147 = vector.load %arg1[%c0_30, %c14, %c0_31] : memref<2x75x256xf32, #tpu.memory_space<vmem>>, vector<1x1x256xf32>
    %148 = vector.shape_cast %147 : vector<1x1x256xf32> to vector<1x256xf32>
    %149 = vector.broadcast %148 : vector<1x256xf32> to vector<8x256xf32>
    %150 = arith.mulf %45, %149 : vector<8x256xf32>
    %151 = arith.addf %146, %150 : vector<8x256xf32>
    %c0_32 = arith.constant 0 : index
    %c15 = arith.constant 15 : index
    %c0_33 = arith.constant 0 : index
    %152 = vector.load %arg1[%c0_32, %c15, %c0_33] : memref<2x75x256xf32, #tpu.memory_space<vmem>>, vector<1x1x256xf32>
    %153 = vector.shape_cast %152 : vector<1x1x256xf32> to vector<1x256xf32>
    %154 = vector.broadcast %153 : vector<1x256xf32> to vector<8x256xf32>
    %155 = arith.mulf %48, %154 : vector<8x256xf32>
    %156 = arith.addf %151, %155 : vector<8x256xf32>
    %c0_34 = arith.constant 0 : index
    %c16 = arith.constant 16 : index
    %c0_35 = arith.constant 0 : index
    %157 = vector.load %arg1[%c0_34, %c16, %c0_35] : memref<2x75x256xf32, #tpu.memory_space<vmem>>, vector<1x1x256xf32>
    %158 = vector.shape_cast %157 : vector<1x1x256xf32> to vector<1x256xf32>
    %159 = vector.broadcast %158 : vector<1x256xf32> to vector<8x256xf32>
    %160 = arith.mulf %51, %159 : vector<8x256xf32>
    %161 = arith.addf %156, %160 : vector<8x256xf32>
    %c0_36 = arith.constant 0 : index
    %c17 = arith.constant 17 : index
    %c0_37 = arith.constant 0 : index
    %162 = vector.load %arg1[%c0_36, %c17, %c0_37] : memref<2x75x256xf32, #tpu.memory_space<vmem>>, vector<1x1x256xf32>
    %163 = vector.shape_cast %162 : vector<1x1x256xf32> to vector<1x256xf32>
    %164 = vector.broadcast %163 : vector<1x256xf32> to vector<8x256xf32>
    %165 = arith.mulf %54, %164 : vector<8x256xf32>
    %166 = arith.addf %161, %165 : vector<8x256xf32>
    %c0_38 = arith.constant 0 : index
    %c18 = arith.constant 18 : index
    %c0_39 = arith.constant 0 : index
    %167 = vector.load %arg1[%c0_38, %c18, %c0_39] : memref<2x75x256xf32, #tpu.memory_space<vmem>>, vector<1x1x256xf32>
    %168 = vector.shape_cast %167 : vector<1x1x256xf32> to vector<1x256xf32>
    %169 = vector.broadcast %168 : vector<1x256xf32> to vector<8x256xf32>
    %170 = arith.mulf %57, %169 : vector<8x256xf32>
    %171 = arith.addf %166, %170 : vector<8x256xf32>
    %c0_40 = arith.constant 0 : index
    %c19 = arith.constant 19 : index
    %c0_41 = arith.constant 0 : index
    %172 = vector.load %arg1[%c0_40, %c19, %c0_41] : memref<2x75x256xf32, #tpu.memory_space<vmem>>, vector<1x1x256xf32>
    %173 = vector.shape_cast %172 : vector<1x1x256xf32> to vector<1x256xf32>
    %174 = vector.broadcast %173 : vector<1x256xf32> to vector<8x256xf32>
    %175 = arith.mulf %60, %174 : vector<8x256xf32>
    %176 = arith.addf %171, %175 : vector<8x256xf32>
    %c0_42 = arith.constant 0 : index
    %c20 = arith.constant 20 : index
    %c0_43 = arith.constant 0 : index
    %177 = vector.load %arg1[%c0_42, %c20, %c0_43] : memref<2x75x256xf32, #tpu.memory_space<vmem>>, vector<1x1x256xf32>
    %178 = vector.shape_cast %177 : vector<1x1x256xf32> to vector<1x256xf32>
    %179 = vector.broadcast %178 : vector<1x256xf32> to vector<8x256xf32>
    %180 = arith.mulf %63, %179 : vector<8x256xf32>
    %181 = arith.addf %176, %180 : vector<8x256xf32>
    %c0_44 = arith.constant 0 : index
    %c21 = arith.constant 21 : index
    %c0_45 = arith.constant 0 : index
    %182 = vector.load %arg1[%c0_44, %c21, %c0_45] : memref<2x75x256xf32, #tpu.memory_space<vmem>>, vector<1x1x256xf32>
    %183 = vector.shape_cast %182 : vector<1x1x256xf32> to vector<1x256xf32>
    %184 = vector.broadcast %183 : vector<1x256xf32> to vector<8x256xf32>
    %185 = arith.mulf %66, %184 : vector<8x256xf32>
    %186 = arith.addf %181, %185 : vector<8x256xf32>
    %c0_46 = arith.constant 0 : index
    %c22 = arith.constant 22 : index
    %c0_47 = arith.constant 0 : index
    %187 = vector.load %arg1[%c0_46, %c22, %c0_47] : memref<2x75x256xf32, #tpu.memory_space<vmem>>, vector<1x1x256xf32>
    %188 = vector.shape_cast %187 : vector<1x1x256xf32> to vector<1x256xf32>
    %189 = vector.broadcast %188 : vector<1x256xf32> to vector<8x256xf32>
    %190 = arith.mulf %69, %189 : vector<8x256xf32>
    %191 = arith.addf %186, %190 : vector<8x256xf32>
    %c0_48 = arith.constant 0 : index
    %c23 = arith.constant 23 : index
    %c0_49 = arith.constant 0 : index
    %192 = vector.load %arg1[%c0_48, %c23, %c0_49] : memref<2x75x256xf32, #tpu.memory_space<vmem>>, vector<1x1x256xf32>
    %193 = vector.shape_cast %192 : vector<1x1x256xf32> to vector<1x256xf32>
    %194 = vector.broadcast %193 : vector<1x256xf32> to vector<8x256xf32>
    %195 = arith.mulf %72, %194 : vector<8x256xf32>
    %196 = arith.addf %191, %195 : vector<8x256xf32>
    %c0_50 = arith.constant 0 : index
    %c24 = arith.constant 24 : index
    %c0_51 = arith.constant 0 : index
    %197 = vector.load %arg1[%c0_50, %c24, %c0_51] : memref<2x75x256xf32, #tpu.memory_space<vmem>>, vector<1x1x256xf32>
    %198 = vector.shape_cast %197 : vector<1x1x256xf32> to vector<1x256xf32>
    %199 = vector.broadcast %198 : vector<1x256xf32> to vector<8x256xf32>
    %200 = arith.mulf %75, %199 : vector<8x256xf32>
    %201 = arith.addf %196, %200 : vector<8x256xf32>
    %202 = vector.extract_strided_slice %201 {offsets = [0, 0], sizes = [4, 256], strides = [1, 1]} : vector<8x256xf32> to vector<4x256xf32>
    %203 = vector.extract_strided_slice %201 {offsets = [4, 0], sizes = [4, 256], strides = [1, 1]} : vector<8x256xf32> to vector<4x256xf32>
    %204 = arith.mulf %202, %203 : vector<4x256xf32>
    %cst_52 = arith.constant 0.000000e+00 : f32
    %205 = vector.broadcast %cst_52 : f32 to vector<8x256xf32>
    %c0_53 = arith.constant 0 : index
    %c25 = arith.constant 25 : index
    %c0_54 = arith.constant 0 : index
    %206 = vector.load %arg1[%c0_53, %c25, %c0_54] : memref<2x75x256xf32, #tpu.memory_space<vmem>>, vector<1x1x256xf32>
    %207 = vector.shape_cast %206 : vector<1x1x256xf32> to vector<1x256xf32>
    %208 = vector.broadcast %207 : vector<1x256xf32> to vector<8x256xf32>
    %209 = arith.mulf %3, %208 : vector<8x256xf32>
    %210 = arith.addf %205, %209 : vector<8x256xf32>
    %c0_55 = arith.constant 0 : index
    %c26 = arith.constant 26 : index
    %c0_56 = arith.constant 0 : index
    %211 = vector.load %arg1[%c0_55, %c26, %c0_56] : memref<2x75x256xf32, #tpu.memory_space<vmem>>, vector<1x1x256xf32>
    %212 = vector.shape_cast %211 : vector<1x1x256xf32> to vector<1x256xf32>
    %213 = vector.broadcast %212 : vector<1x256xf32> to vector<8x256xf32>
    %214 = arith.mulf %6, %213 : vector<8x256xf32>
    %215 = arith.addf %210, %214 : vector<8x256xf32>
    %c0_57 = arith.constant 0 : index
    %c27 = arith.constant 27 : index
    %c0_58 = arith.constant 0 : index
    %216 = vector.load %arg1[%c0_57, %c27, %c0_58] : memref<2x75x256xf32, #tpu.memory_space<vmem>>, vector<1x1x256xf32>
    %217 = vector.shape_cast %216 : vector<1x1x256xf32> to vector<1x256xf32>
    %218 = vector.broadcast %217 : vector<1x256xf32> to vector<8x256xf32>
    %219 = arith.mulf %9, %218 : vector<8x256xf32>
    %220 = arith.addf %215, %219 : vector<8x256xf32>
    %c0_59 = arith.constant 0 : index
    %c28 = arith.constant 28 : index
    %c0_60 = arith.constant 0 : index
    %221 = vector.load %arg1[%c0_59, %c28, %c0_60] : memref<2x75x256xf32, #tpu.memory_space<vmem>>, vector<1x1x256xf32>
    %222 = vector.shape_cast %221 : vector<1x1x256xf32> to vector<1x256xf32>
    %223 = vector.broadcast %222 : vector<1x256xf32> to vector<8x256xf32>
    %224 = arith.mulf %12, %223 : vector<8x256xf32>
    %225 = arith.addf %220, %224 : vector<8x256xf32>
    %c0_61 = arith.constant 0 : index
    %c29 = arith.constant 29 : index
    %c0_62 = arith.constant 0 : index
    %226 = vector.load %arg1[%c0_61, %c29, %c0_62] : memref<2x75x256xf32, #tpu.memory_space<vmem>>, vector<1x1x256xf32>
    %227 = vector.shape_cast %226 : vector<1x1x256xf32> to vector<1x256xf32>
    %228 = vector.broadcast %227 : vector<1x256xf32> to vector<8x256xf32>
    %229 = arith.mulf %15, %228 : vector<8x256xf32>
    %230 = arith.addf %225, %229 : vector<8x256xf32>
    %c0_63 = arith.constant 0 : index
    %c30 = arith.constant 30 : index
    %c0_64 = arith.constant 0 : index
    %231 = vector.load %arg1[%c0_63, %c30, %c0_64] : memref<2x75x256xf32, #tpu.memory_space<vmem>>, vector<1x1x256xf32>
    %232 = vector.shape_cast %231 : vector<1x1x256xf32> to vector<1x256xf32>
    %233 = vector.broadcast %232 : vector<1x256xf32> to vector<8x256xf32>
    %234 = arith.mulf %18, %233 : vector<8x256xf32>
    %235 = arith.addf %230, %234 : vector<8x256xf32>
    %c0_65 = arith.constant 0 : index
    %c31 = arith.constant 31 : index
    %c0_66 = arith.constant 0 : index
    %236 = vector.load %arg1[%c0_65, %c31, %c0_66] : memref<2x75x256xf32, #tpu.memory_space<vmem>>, vector<1x1x256xf32>
    %237 = vector.shape_cast %236 : vector<1x1x256xf32> to vector<1x256xf32>
    %238 = vector.broadcast %237 : vector<1x256xf32> to vector<8x256xf32>
    %239 = arith.mulf %21, %238 : vector<8x256xf32>
    %240 = arith.addf %235, %239 : vector<8x256xf32>
    %c0_67 = arith.constant 0 : index
    %c32 = arith.constant 32 : index
    %c0_68 = arith.constant 0 : index
    %241 = vector.load %arg1[%c0_67, %c32, %c0_68] : memref<2x75x256xf32, #tpu.memory_space<vmem>>, vector<1x1x256xf32>
    %242 = vector.shape_cast %241 : vector<1x1x256xf32> to vector<1x256xf32>
    %243 = vector.broadcast %242 : vector<1x256xf32> to vector<8x256xf32>
    %244 = arith.mulf %24, %243 : vector<8x256xf32>
    %245 = arith.addf %240, %244 : vector<8x256xf32>
    %c0_69 = arith.constant 0 : index
    %c33 = arith.constant 33 : index
    %c0_70 = arith.constant 0 : index
    %246 = vector.load %arg1[%c0_69, %c33, %c0_70] : memref<2x75x256xf32, #tpu.memory_space<vmem>>, vector<1x1x256xf32>
    %247 = vector.shape_cast %246 : vector<1x1x256xf32> to vector<1x256xf32>
    %248 = vector.broadcast %247 : vector<1x256xf32> to vector<8x256xf32>
    %249 = arith.mulf %27, %248 : vector<8x256xf32>
    %250 = arith.addf %245, %249 : vector<8x256xf32>
    %c0_71 = arith.constant 0 : index
    %c34 = arith.constant 34 : index
    %c0_72 = arith.constant 0 : index
    %251 = vector.load %arg1[%c0_71, %c34, %c0_72] : memref<2x75x256xf32, #tpu.memory_space<vmem>>, vector<1x1x256xf32>
    %252 = vector.shape_cast %251 : vector<1x1x256xf32> to vector<1x256xf32>
    %253 = vector.broadcast %252 : vector<1x256xf32> to vector<8x256xf32>
    %254 = arith.mulf %30, %253 : vector<8x256xf32>
    %255 = arith.addf %250, %254 : vector<8x256xf32>
    %c0_73 = arith.constant 0 : index
    %c35 = arith.constant 35 : index
    %c0_74 = arith.constant 0 : index
    %256 = vector.load %arg1[%c0_73, %c35, %c0_74] : memref<2x75x256xf32, #tpu.memory_space<vmem>>, vector<1x1x256xf32>
    %257 = vector.shape_cast %256 : vector<1x1x256xf32> to vector<1x256xf32>
    %258 = vector.broadcast %257 : vector<1x256xf32> to vector<8x256xf32>
    %259 = arith.mulf %33, %258 : vector<8x256xf32>
    %260 = arith.addf %255, %259 : vector<8x256xf32>
    %c0_75 = arith.constant 0 : index
    %c36 = arith.constant 36 : index
    %c0_76 = arith.constant 0 : index
    %261 = vector.load %arg1[%c0_75, %c36, %c0_76] : memref<2x75x256xf32, #tpu.memory_space<vmem>>, vector<1x1x256xf32>
    %262 = vector.shape_cast %261 : vector<1x1x256xf32> to vector<1x256xf32>
    %263 = vector.broadcast %262 : vector<1x256xf32> to vector<8x256xf32>
    %264 = arith.mulf %36, %263 : vector<8x256xf32>
    %265 = arith.addf %260, %264 : vector<8x256xf32>
    %c0_77 = arith.constant 0 : index
    %c37 = arith.constant 37 : index
    %c0_78 = arith.constant 0 : index
    %266 = vector.load %arg1[%c0_77, %c37, %c0_78] : memref<2x75x256xf32, #tpu.memory_space<vmem>>, vector<1x1x256xf32>
    %267 = vector.shape_cast %266 : vector<1x1x256xf32> to vector<1x256xf32>
    %268 = vector.broadcast %267 : vector<1x256xf32> to vector<8x256xf32>
    %269 = arith.mulf %39, %268 : vector<8x256xf32>
    %270 = arith.addf %265, %269 : vector<8x256xf32>
    %c0_79 = arith.constant 0 : index
    %c38 = arith.constant 38 : index
    %c0_80 = arith.constant 0 : index
    %271 = vector.load %arg1[%c0_79, %c38, %c0_80] : memref<2x75x256xf32, #tpu.memory_space<vmem>>, vector<1x1x256xf32>
    %272 = vector.shape_cast %271 : vector<1x1x256xf32> to vector<1x256xf32>
    %273 = vector.broadcast %272 : vector<1x256xf32> to vector<8x256xf32>
    %274 = arith.mulf %42, %273 : vector<8x256xf32>
    %275 = arith.addf %270, %274 : vector<8x256xf32>
    %c0_81 = arith.constant 0 : index
    %c39 = arith.constant 39 : index
    %c0_82 = arith.constant 0 : index
    %276 = vector.load %arg1[%c0_81, %c39, %c0_82] : memref<2x75x256xf32, #tpu.memory_space<vmem>>, vector<1x1x256xf32>
    %277 = vector.shape_cast %276 : vector<1x1x256xf32> to vector<1x256xf32>
    %278 = vector.broadcast %277 : vector<1x256xf32> to vector<8x256xf32>
    %279 = arith.mulf %45, %278 : vector<8x256xf32>
    %280 = arith.addf %275, %279 : vector<8x256xf32>
    %c0_83 = arith.constant 0 : index
    %c40 = arith.constant 40 : index
    %c0_84 = arith.constant 0 : index
    %281 = vector.load %arg1[%c0_83, %c40, %c0_84] : memref<2x75x256xf32, #tpu.memory_space<vmem>>, vector<1x1x256xf32>
    %282 = vector.shape_cast %281 : vector<1x1x256xf32> to vector<1x256xf32>
    %283 = vector.broadcast %282 : vector<1x256xf32> to vector<8x256xf32>
    %284 = arith.mulf %48, %283 : vector<8x256xf32>
    %285 = arith.addf %280, %284 : vector<8x256xf32>
    %c0_85 = arith.constant 0 : index
    %c41 = arith.constant 41 : index
    %c0_86 = arith.constant 0 : index
    %286 = vector.load %arg1[%c0_85, %c41, %c0_86] : memref<2x75x256xf32, #tpu.memory_space<vmem>>, vector<1x1x256xf32>
    %287 = vector.shape_cast %286 : vector<1x1x256xf32> to vector<1x256xf32>
    %288 = vector.broadcast %287 : vector<1x256xf32> to vector<8x256xf32>
    %289 = arith.mulf %51, %288 : vector<8x256xf32>
    %290 = arith.addf %285, %289 : vector<8x256xf32>
    %c0_87 = arith.constant 0 : index
    %c42 = arith.constant 42 : index
    %c0_88 = arith.constant 0 : index
    %291 = vector.load %arg1[%c0_87, %c42, %c0_88] : memref<2x75x256xf32, #tpu.memory_space<vmem>>, vector<1x1x256xf32>
    %292 = vector.shape_cast %291 : vector<1x1x256xf32> to vector<1x256xf32>
    %293 = vector.broadcast %292 : vector<1x256xf32> to vector<8x256xf32>
    %294 = arith.mulf %54, %293 : vector<8x256xf32>
    %295 = arith.addf %290, %294 : vector<8x256xf32>
    %c0_89 = arith.constant 0 : index
    %c43 = arith.constant 43 : index
    %c0_90 = arith.constant 0 : index
    %296 = vector.load %arg1[%c0_89, %c43, %c0_90] : memref<2x75x256xf32, #tpu.memory_space<vmem>>, vector<1x1x256xf32>
    %297 = vector.shape_cast %296 : vector<1x1x256xf32> to vector<1x256xf32>
    %298 = vector.broadcast %297 : vector<1x256xf32> to vector<8x256xf32>
    %299 = arith.mulf %57, %298 : vector<8x256xf32>
    %300 = arith.addf %295, %299 : vector<8x256xf32>
    %c0_91 = arith.constant 0 : index
    %c44 = arith.constant 44 : index
    %c0_92 = arith.constant 0 : index
    %301 = vector.load %arg1[%c0_91, %c44, %c0_92] : memref<2x75x256xf32, #tpu.memory_space<vmem>>, vector<1x1x256xf32>
    %302 = vector.shape_cast %301 : vector<1x1x256xf32> to vector<1x256xf32>
    %303 = vector.broadcast %302 : vector<1x256xf32> to vector<8x256xf32>
    %304 = arith.mulf %60, %303 : vector<8x256xf32>
    %305 = arith.addf %300, %304 : vector<8x256xf32>
    %c0_93 = arith.constant 0 : index
    %c45 = arith.constant 45 : index
    %c0_94 = arith.constant 0 : index
    %306 = vector.load %arg1[%c0_93, %c45, %c0_94] : memref<2x75x256xf32, #tpu.memory_space<vmem>>, vector<1x1x256xf32>
    %307 = vector.shape_cast %306 : vector<1x1x256xf32> to vector<1x256xf32>
    %308 = vector.broadcast %307 : vector<1x256xf32> to vector<8x256xf32>
    %309 = arith.mulf %63, %308 : vector<8x256xf32>
    %310 = arith.addf %305, %309 : vector<8x256xf32>
    %c0_95 = arith.constant 0 : index
    %c46 = arith.constant 46 : index
    %c0_96 = arith.constant 0 : index
    %311 = vector.load %arg1[%c0_95, %c46, %c0_96] : memref<2x75x256xf32, #tpu.memory_space<vmem>>, vector<1x1x256xf32>
    %312 = vector.shape_cast %311 : vector<1x1x256xf32> to vector<1x256xf32>
    %313 = vector.broadcast %312 : vector<1x256xf32> to vector<8x256xf32>
    %314 = arith.mulf %66, %313 : vector<8x256xf32>
    %315 = arith.addf %310, %314 : vector<8x256xf32>
    %c0_97 = arith.constant 0 : index
    %c47 = arith.constant 47 : index
    %c0_98 = arith.constant 0 : index
    %316 = vector.load %arg1[%c0_97, %c47, %c0_98] : memref<2x75x256xf32, #tpu.memory_space<vmem>>, vector<1x1x256xf32>
    %317 = vector.shape_cast %316 : vector<1x1x256xf32> to vector<1x256xf32>
    %318 = vector.broadcast %317 : vector<1x256xf32> to vector<8x256xf32>
    %319 = arith.mulf %69, %318 : vector<8x256xf32>
    %320 = arith.addf %315, %319 : vector<8x256xf32>
    %c0_99 = arith.constant 0 : index
    %c48 = arith.constant 48 : index
    %c0_100 = arith.constant 0 : index
    %321 = vector.load %arg1[%c0_99, %c48, %c0_100] : memref<2x75x256xf32, #tpu.memory_space<vmem>>, vector<1x1x256xf32>
    %322 = vector.shape_cast %321 : vector<1x1x256xf32> to vector<1x256xf32>
    %323 = vector.broadcast %322 : vector<1x256xf32> to vector<8x256xf32>
    %324 = arith.mulf %72, %323 : vector<8x256xf32>
    %325 = arith.addf %320, %324 : vector<8x256xf32>
    %c0_101 = arith.constant 0 : index
    %c49 = arith.constant 49 : index
    %c0_102 = arith.constant 0 : index
    %326 = vector.load %arg1[%c0_101, %c49, %c0_102] : memref<2x75x256xf32, #tpu.memory_space<vmem>>, vector<1x1x256xf32>
    %327 = vector.shape_cast %326 : vector<1x1x256xf32> to vector<1x256xf32>
    %328 = vector.broadcast %327 : vector<1x256xf32> to vector<8x256xf32>
    %329 = arith.mulf %75, %328 : vector<8x256xf32>
    %330 = arith.addf %325, %329 : vector<8x256xf32>
    %331 = vector.extract_strided_slice %330 {offsets = [0, 0], sizes = [4, 256], strides = [1, 1]} : vector<8x256xf32> to vector<4x256xf32>
    %332 = vector.extract_strided_slice %330 {offsets = [4, 0], sizes = [4, 256], strides = [1, 1]} : vector<8x256xf32> to vector<4x256xf32>
    %333 = arith.mulf %331, %332 : vector<4x256xf32>
    %334 = arith.addf %204, %333 : vector<4x256xf32>
    %cst_103 = arith.constant 0.000000e+00 : f32
    %335 = vector.broadcast %cst_103 : f32 to vector<8x256xf32>
    %c0_104 = arith.constant 0 : index
    %c50 = arith.constant 50 : index
    %c0_105 = arith.constant 0 : index
    %336 = vector.load %arg1[%c0_104, %c50, %c0_105] : memref<2x75x256xf32, #tpu.memory_space<vmem>>, vector<1x1x256xf32>
    %337 = vector.shape_cast %336 : vector<1x1x256xf32> to vector<1x256xf32>
    %338 = vector.broadcast %337 : vector<1x256xf32> to vector<8x256xf32>
    %339 = arith.mulf %3, %338 : vector<8x256xf32>
    %340 = arith.addf %335, %339 : vector<8x256xf32>
    %c0_106 = arith.constant 0 : index
    %c51 = arith.constant 51 : index
    %c0_107 = arith.constant 0 : index
    %341 = vector.load %arg1[%c0_106, %c51, %c0_107] : memref<2x75x256xf32, #tpu.memory_space<vmem>>, vector<1x1x256xf32>
    %342 = vector.shape_cast %341 : vector<1x1x256xf32> to vector<1x256xf32>
    %343 = vector.broadcast %342 : vector<1x256xf32> to vector<8x256xf32>
    %344 = arith.mulf %6, %343 : vector<8x256xf32>
    %345 = arith.addf %340, %344 : vector<8x256xf32>
    %c0_108 = arith.constant 0 : index
    %c52 = arith.constant 52 : index
    %c0_109 = arith.constant 0 : index
    %346 = vector.load %arg1[%c0_108, %c52, %c0_109] : memref<2x75x256xf32, #tpu.memory_space<vmem>>, vector<1x1x256xf32>
    %347 = vector.shape_cast %346 : vector<1x1x256xf32> to vector<1x256xf32>
    %348 = vector.broadcast %347 : vector<1x256xf32> to vector<8x256xf32>
    %349 = arith.mulf %9, %348 : vector<8x256xf32>
    %350 = arith.addf %345, %349 : vector<8x256xf32>
    %c0_110 = arith.constant 0 : index
    %c53 = arith.constant 53 : index
    %c0_111 = arith.constant 0 : index
    %351 = vector.load %arg1[%c0_110, %c53, %c0_111] : memref<2x75x256xf32, #tpu.memory_space<vmem>>, vector<1x1x256xf32>
    %352 = vector.shape_cast %351 : vector<1x1x256xf32> to vector<1x256xf32>
    %353 = vector.broadcast %352 : vector<1x256xf32> to vector<8x256xf32>
    %354 = arith.mulf %12, %353 : vector<8x256xf32>
    %355 = arith.addf %350, %354 : vector<8x256xf32>
    %c0_112 = arith.constant 0 : index
    %c54 = arith.constant 54 : index
    %c0_113 = arith.constant 0 : index
    %356 = vector.load %arg1[%c0_112, %c54, %c0_113] : memref<2x75x256xf32, #tpu.memory_space<vmem>>, vector<1x1x256xf32>
    %357 = vector.shape_cast %356 : vector<1x1x256xf32> to vector<1x256xf32>
    %358 = vector.broadcast %357 : vector<1x256xf32> to vector<8x256xf32>
    %359 = arith.mulf %15, %358 : vector<8x256xf32>
    %360 = arith.addf %355, %359 : vector<8x256xf32>
    %c0_114 = arith.constant 0 : index
    %c55 = arith.constant 55 : index
    %c0_115 = arith.constant 0 : index
    %361 = vector.load %arg1[%c0_114, %c55, %c0_115] : memref<2x75x256xf32, #tpu.memory_space<vmem>>, vector<1x1x256xf32>
    %362 = vector.shape_cast %361 : vector<1x1x256xf32> to vector<1x256xf32>
    %363 = vector.broadcast %362 : vector<1x256xf32> to vector<8x256xf32>
    %364 = arith.mulf %18, %363 : vector<8x256xf32>
    %365 = arith.addf %360, %364 : vector<8x256xf32>
    %c0_116 = arith.constant 0 : index
    %c56 = arith.constant 56 : index
    %c0_117 = arith.constant 0 : index
    %366 = vector.load %arg1[%c0_116, %c56, %c0_117] : memref<2x75x256xf32, #tpu.memory_space<vmem>>, vector<1x1x256xf32>
    %367 = vector.shape_cast %366 : vector<1x1x256xf32> to vector<1x256xf32>
    %368 = vector.broadcast %367 : vector<1x256xf32> to vector<8x256xf32>
    %369 = arith.mulf %21, %368 : vector<8x256xf32>
    %370 = arith.addf %365, %369 : vector<8x256xf32>
    %c0_118 = arith.constant 0 : index
    %c57 = arith.constant 57 : index
    %c0_119 = arith.constant 0 : index
    %371 = vector.load %arg1[%c0_118, %c57, %c0_119] : memref<2x75x256xf32, #tpu.memory_space<vmem>>, vector<1x1x256xf32>
    %372 = vector.shape_cast %371 : vector<1x1x256xf32> to vector<1x256xf32>
    %373 = vector.broadcast %372 : vector<1x256xf32> to vector<8x256xf32>
    %374 = arith.mulf %24, %373 : vector<8x256xf32>
    %375 = arith.addf %370, %374 : vector<8x256xf32>
    %c0_120 = arith.constant 0 : index
    %c58 = arith.constant 58 : index
    %c0_121 = arith.constant 0 : index
    %376 = vector.load %arg1[%c0_120, %c58, %c0_121] : memref<2x75x256xf32, #tpu.memory_space<vmem>>, vector<1x1x256xf32>
    %377 = vector.shape_cast %376 : vector<1x1x256xf32> to vector<1x256xf32>
    %378 = vector.broadcast %377 : vector<1x256xf32> to vector<8x256xf32>
    %379 = arith.mulf %27, %378 : vector<8x256xf32>
    %380 = arith.addf %375, %379 : vector<8x256xf32>
    %c0_122 = arith.constant 0 : index
    %c59 = arith.constant 59 : index
    %c0_123 = arith.constant 0 : index
    %381 = vector.load %arg1[%c0_122, %c59, %c0_123] : memref<2x75x256xf32, #tpu.memory_space<vmem>>, vector<1x1x256xf32>
    %382 = vector.shape_cast %381 : vector<1x1x256xf32> to vector<1x256xf32>
    %383 = vector.broadcast %382 : vector<1x256xf32> to vector<8x256xf32>
    %384 = arith.mulf %30, %383 : vector<8x256xf32>
    %385 = arith.addf %380, %384 : vector<8x256xf32>
    %c0_124 = arith.constant 0 : index
    %c60 = arith.constant 60 : index
    %c0_125 = arith.constant 0 : index
    %386 = vector.load %arg1[%c0_124, %c60, %c0_125] : memref<2x75x256xf32, #tpu.memory_space<vmem>>, vector<1x1x256xf32>
    %387 = vector.shape_cast %386 : vector<1x1x256xf32> to vector<1x256xf32>
    %388 = vector.broadcast %387 : vector<1x256xf32> to vector<8x256xf32>
    %389 = arith.mulf %33, %388 : vector<8x256xf32>
    %390 = arith.addf %385, %389 : vector<8x256xf32>
    %c0_126 = arith.constant 0 : index
    %c61 = arith.constant 61 : index
    %c0_127 = arith.constant 0 : index
    %391 = vector.load %arg1[%c0_126, %c61, %c0_127] : memref<2x75x256xf32, #tpu.memory_space<vmem>>, vector<1x1x256xf32>
    %392 = vector.shape_cast %391 : vector<1x1x256xf32> to vector<1x256xf32>
    %393 = vector.broadcast %392 : vector<1x256xf32> to vector<8x256xf32>
    %394 = arith.mulf %36, %393 : vector<8x256xf32>
    %395 = arith.addf %390, %394 : vector<8x256xf32>
    %c0_128 = arith.constant 0 : index
    %c62 = arith.constant 62 : index
    %c0_129 = arith.constant 0 : index
    %396 = vector.load %arg1[%c0_128, %c62, %c0_129] : memref<2x75x256xf32, #tpu.memory_space<vmem>>, vector<1x1x256xf32>
    %397 = vector.shape_cast %396 : vector<1x1x256xf32> to vector<1x256xf32>
    %398 = vector.broadcast %397 : vector<1x256xf32> to vector<8x256xf32>
    %399 = arith.mulf %39, %398 : vector<8x256xf32>
    %400 = arith.addf %395, %399 : vector<8x256xf32>
    %c0_130 = arith.constant 0 : index
    %c63 = arith.constant 63 : index
    %c0_131 = arith.constant 0 : index
    %401 = vector.load %arg1[%c0_130, %c63, %c0_131] : memref<2x75x256xf32, #tpu.memory_space<vmem>>, vector<1x1x256xf32>
    %402 = vector.shape_cast %401 : vector<1x1x256xf32> to vector<1x256xf32>
    %403 = vector.broadcast %402 : vector<1x256xf32> to vector<8x256xf32>
    %404 = arith.mulf %42, %403 : vector<8x256xf32>
    %405 = arith.addf %400, %404 : vector<8x256xf32>
    %c0_132 = arith.constant 0 : index
    %c64 = arith.constant 64 : index
    %c0_133 = arith.constant 0 : index
    %406 = vector.load %arg1[%c0_132, %c64, %c0_133] : memref<2x75x256xf32, #tpu.memory_space<vmem>>, vector<1x1x256xf32>
    %407 = vector.shape_cast %406 : vector<1x1x256xf32> to vector<1x256xf32>
    %408 = vector.broadcast %407 : vector<1x256xf32> to vector<8x256xf32>
    %409 = arith.mulf %45, %408 : vector<8x256xf32>
    %410 = arith.addf %405, %409 : vector<8x256xf32>
    %c0_134 = arith.constant 0 : index
    %c65 = arith.constant 65 : index
    %c0_135 = arith.constant 0 : index
    %411 = vector.load %arg1[%c0_134, %c65, %c0_135] : memref<2x75x256xf32, #tpu.memory_space<vmem>>, vector<1x1x256xf32>
    %412 = vector.shape_cast %411 : vector<1x1x256xf32> to vector<1x256xf32>
    %413 = vector.broadcast %412 : vector<1x256xf32> to vector<8x256xf32>
    %414 = arith.mulf %48, %413 : vector<8x256xf32>
    %415 = arith.addf %410, %414 : vector<8x256xf32>
    %c0_136 = arith.constant 0 : index
    %c66 = arith.constant 66 : index
    %c0_137 = arith.constant 0 : index
    %416 = vector.load %arg1[%c0_136, %c66, %c0_137] : memref<2x75x256xf32, #tpu.memory_space<vmem>>, vector<1x1x256xf32>
    %417 = vector.shape_cast %416 : vector<1x1x256xf32> to vector<1x256xf32>
    %418 = vector.broadcast %417 : vector<1x256xf32> to vector<8x256xf32>
    %419 = arith.mulf %51, %418 : vector<8x256xf32>
    %420 = arith.addf %415, %419 : vector<8x256xf32>
    %c0_138 = arith.constant 0 : index
    %c67 = arith.constant 67 : index
    %c0_139 = arith.constant 0 : index
    %421 = vector.load %arg1[%c0_138, %c67, %c0_139] : memref<2x75x256xf32, #tpu.memory_space<vmem>>, vector<1x1x256xf32>
    %422 = vector.shape_cast %421 : vector<1x1x256xf32> to vector<1x256xf32>
    %423 = vector.broadcast %422 : vector<1x256xf32> to vector<8x256xf32>
    %424 = arith.mulf %54, %423 : vector<8x256xf32>
    %425 = arith.addf %420, %424 : vector<8x256xf32>
    %c0_140 = arith.constant 0 : index
    %c68 = arith.constant 68 : index
    %c0_141 = arith.constant 0 : index
    %426 = vector.load %arg1[%c0_140, %c68, %c0_141] : memref<2x75x256xf32, #tpu.memory_space<vmem>>, vector<1x1x256xf32>
    %427 = vector.shape_cast %426 : vector<1x1x256xf32> to vector<1x256xf32>
    %428 = vector.broadcast %427 : vector<1x256xf32> to vector<8x256xf32>
    %429 = arith.mulf %57, %428 : vector<8x256xf32>
    %430 = arith.addf %425, %429 : vector<8x256xf32>
    %c0_142 = arith.constant 0 : index
    %c69 = arith.constant 69 : index
    %c0_143 = arith.constant 0 : index
    %431 = vector.load %arg1[%c0_142, %c69, %c0_143] : memref<2x75x256xf32, #tpu.memory_space<vmem>>, vector<1x1x256xf32>
    %432 = vector.shape_cast %431 : vector<1x1x256xf32> to vector<1x256xf32>
    %433 = vector.broadcast %432 : vector<1x256xf32> to vector<8x256xf32>
    %434 = arith.mulf %60, %433 : vector<8x256xf32>
    %435 = arith.addf %430, %434 : vector<8x256xf32>
    %c0_144 = arith.constant 0 : index
    %c70 = arith.constant 70 : index
    %c0_145 = arith.constant 0 : index
    %436 = vector.load %arg1[%c0_144, %c70, %c0_145] : memref<2x75x256xf32, #tpu.memory_space<vmem>>, vector<1x1x256xf32>
    %437 = vector.shape_cast %436 : vector<1x1x256xf32> to vector<1x256xf32>
    %438 = vector.broadcast %437 : vector<1x256xf32> to vector<8x256xf32>
    %439 = arith.mulf %63, %438 : vector<8x256xf32>
    %440 = arith.addf %435, %439 : vector<8x256xf32>
    %c0_146 = arith.constant 0 : index
    %c71 = arith.constant 71 : index
    %c0_147 = arith.constant 0 : index
    %441 = vector.load %arg1[%c0_146, %c71, %c0_147] : memref<2x75x256xf32, #tpu.memory_space<vmem>>, vector<1x1x256xf32>
    %442 = vector.shape_cast %441 : vector<1x1x256xf32> to vector<1x256xf32>
    %443 = vector.broadcast %442 : vector<1x256xf32> to vector<8x256xf32>
    %444 = arith.mulf %66, %443 : vector<8x256xf32>
    %445 = arith.addf %440, %444 : vector<8x256xf32>
    %c0_148 = arith.constant 0 : index
    %c72 = arith.constant 72 : index
    %c0_149 = arith.constant 0 : index
    %446 = vector.load %arg1[%c0_148, %c72, %c0_149] : memref<2x75x256xf32, #tpu.memory_space<vmem>>, vector<1x1x256xf32>
    %447 = vector.shape_cast %446 : vector<1x1x256xf32> to vector<1x256xf32>
    %448 = vector.broadcast %447 : vector<1x256xf32> to vector<8x256xf32>
    %449 = arith.mulf %69, %448 : vector<8x256xf32>
    %450 = arith.addf %445, %449 : vector<8x256xf32>
    %c0_150 = arith.constant 0 : index
    %c73 = arith.constant 73 : index
    %c0_151 = arith.constant 0 : index
    %451 = vector.load %arg1[%c0_150, %c73, %c0_151] : memref<2x75x256xf32, #tpu.memory_space<vmem>>, vector<1x1x256xf32>
    %452 = vector.shape_cast %451 : vector<1x1x256xf32> to vector<1x256xf32>
    %453 = vector.broadcast %452 : vector<1x256xf32> to vector<8x256xf32>
    %454 = arith.mulf %72, %453 : vector<8x256xf32>
    %455 = arith.addf %450, %454 : vector<8x256xf32>
    %c0_152 = arith.constant 0 : index
    %c74 = arith.constant 74 : index
    %c0_153 = arith.constant 0 : index
    %456 = vector.load %arg1[%c0_152, %c74, %c0_153] : memref<2x75x256xf32, #tpu.memory_space<vmem>>, vector<1x1x256xf32>
    %457 = vector.shape_cast %456 : vector<1x1x256xf32> to vector<1x256xf32>
    %458 = vector.broadcast %457 : vector<1x256xf32> to vector<8x256xf32>
    %459 = arith.mulf %75, %458 : vector<8x256xf32>
    %460 = arith.addf %455, %459 : vector<8x256xf32>
    %461 = vector.extract_strided_slice %460 {offsets = [0, 0], sizes = [4, 256], strides = [1, 1]} : vector<8x256xf32> to vector<4x256xf32>
    %462 = vector.extract_strided_slice %460 {offsets = [4, 0], sizes = [4, 256], strides = [1, 1]} : vector<8x256xf32> to vector<4x256xf32>
    %463 = arith.mulf %461, %462 : vector<4x256xf32>
    %464 = arith.addf %334, %463 : vector<4x256xf32>
    %cst_154 = arith.constant 0.000000e+00 : f32
    %465 = vector.broadcast %cst_154 : f32 to vector<8x256xf32>
    %c1_155 = arith.constant 1 : index
    %c0_156 = arith.constant 0 : index
    %c0_157 = arith.constant 0 : index
    %466 = vector.load %arg1[%c1_155, %c0_156, %c0_157] : memref<2x75x256xf32, #tpu.memory_space<vmem>>, vector<1x1x256xf32>
    %467 = vector.shape_cast %466 : vector<1x1x256xf32> to vector<1x256xf32>
    %468 = vector.broadcast %467 : vector<1x256xf32> to vector<8x256xf32>
    %469 = arith.mulf %3, %468 : vector<8x256xf32>
    %470 = arith.addf %465, %469 : vector<8x256xf32>
    %c1_158 = arith.constant 1 : index
    %c1_159 = arith.constant 1 : index
    %c0_160 = arith.constant 0 : index
    %471 = vector.load %arg1[%c1_158, %c1_159, %c0_160] : memref<2x75x256xf32, #tpu.memory_space<vmem>>, vector<1x1x256xf32>
    %472 = vector.shape_cast %471 : vector<1x1x256xf32> to vector<1x256xf32>
    %473 = vector.broadcast %472 : vector<1x256xf32> to vector<8x256xf32>
    %474 = arith.mulf %6, %473 : vector<8x256xf32>
    %475 = arith.addf %470, %474 : vector<8x256xf32>
    %c1_161 = arith.constant 1 : index
    %c2_162 = arith.constant 2 : index
    %c0_163 = arith.constant 0 : index
    %476 = vector.load %arg1[%c1_161, %c2_162, %c0_163] : memref<2x75x256xf32, #tpu.memory_space<vmem>>, vector<1x1x256xf32>
    %477 = vector.shape_cast %476 : vector<1x1x256xf32> to vector<1x256xf32>
    %478 = vector.broadcast %477 : vector<1x256xf32> to vector<8x256xf32>
    %479 = arith.mulf %9, %478 : vector<8x256xf32>
    %480 = arith.addf %475, %479 : vector<8x256xf32>
    %c1_164 = arith.constant 1 : index
    %c3_165 = arith.constant 3 : index
    %c0_166 = arith.constant 0 : index
    %481 = vector.load %arg1[%c1_164, %c3_165, %c0_166] : memref<2x75x256xf32, #tpu.memory_space<vmem>>, vector<1x1x256xf32>
    %482 = vector.shape_cast %481 : vector<1x1x256xf32> to vector<1x256xf32>
    %483 = vector.broadcast %482 : vector<1x256xf32> to vector<8x256xf32>
    %484 = arith.mulf %12, %483 : vector<8x256xf32>
    %485 = arith.addf %480, %484 : vector<8x256xf32>
    %c1_167 = arith.constant 1 : index
    %c4_168 = arith.constant 4 : index
    %c0_169 = arith.constant 0 : index
    %486 = vector.load %arg1[%c1_167, %c4_168, %c0_169] : memref<2x75x256xf32, #tpu.memory_space<vmem>>, vector<1x1x256xf32>
    %487 = vector.shape_cast %486 : vector<1x1x256xf32> to vector<1x256xf32>
    %488 = vector.broadcast %487 : vector<1x256xf32> to vector<8x256xf32>
    %489 = arith.mulf %15, %488 : vector<8x256xf32>
    %490 = arith.addf %485, %489 : vector<8x256xf32>
    %c1_170 = arith.constant 1 : index
    %c5_171 = arith.constant 5 : index
    %c0_172 = arith.constant 0 : index
    %491 = vector.load %arg1[%c1_170, %c5_171, %c0_172] : memref<2x75x256xf32, #tpu.memory_space<vmem>>, vector<1x1x256xf32>
    %492 = vector.shape_cast %491 : vector<1x1x256xf32> to vector<1x256xf32>
    %493 = vector.broadcast %492 : vector<1x256xf32> to vector<8x256xf32>
    %494 = arith.mulf %18, %493 : vector<8x256xf32>
    %495 = arith.addf %490, %494 : vector<8x256xf32>
    %c1_173 = arith.constant 1 : index
    %c6_174 = arith.constant 6 : index
    %c0_175 = arith.constant 0 : index
    %496 = vector.load %arg1[%c1_173, %c6_174, %c0_175] : memref<2x75x256xf32, #tpu.memory_space<vmem>>, vector<1x1x256xf32>
    %497 = vector.shape_cast %496 : vector<1x1x256xf32> to vector<1x256xf32>
    %498 = vector.broadcast %497 : vector<1x256xf32> to vector<8x256xf32>
    %499 = arith.mulf %21, %498 : vector<8x256xf32>
    %500 = arith.addf %495, %499 : vector<8x256xf32>
    %c1_176 = arith.constant 1 : index
    %c7_177 = arith.constant 7 : index
    %c0_178 = arith.constant 0 : index
    %501 = vector.load %arg1[%c1_176, %c7_177, %c0_178] : memref<2x75x256xf32, #tpu.memory_space<vmem>>, vector<1x1x256xf32>
    %502 = vector.shape_cast %501 : vector<1x1x256xf32> to vector<1x256xf32>
    %503 = vector.broadcast %502 : vector<1x256xf32> to vector<8x256xf32>
    %504 = arith.mulf %24, %503 : vector<8x256xf32>
    %505 = arith.addf %500, %504 : vector<8x256xf32>
    %c1_179 = arith.constant 1 : index
    %c8_180 = arith.constant 8 : index
    %c0_181 = arith.constant 0 : index
    %506 = vector.load %arg1[%c1_179, %c8_180, %c0_181] : memref<2x75x256xf32, #tpu.memory_space<vmem>>, vector<1x1x256xf32>
    %507 = vector.shape_cast %506 : vector<1x1x256xf32> to vector<1x256xf32>
    %508 = vector.broadcast %507 : vector<1x256xf32> to vector<8x256xf32>
    %509 = arith.mulf %27, %508 : vector<8x256xf32>
    %510 = arith.addf %505, %509 : vector<8x256xf32>
    %c1_182 = arith.constant 1 : index
    %c9_183 = arith.constant 9 : index
    %c0_184 = arith.constant 0 : index
    %511 = vector.load %arg1[%c1_182, %c9_183, %c0_184] : memref<2x75x256xf32, #tpu.memory_space<vmem>>, vector<1x1x256xf32>
    %512 = vector.shape_cast %511 : vector<1x1x256xf32> to vector<1x256xf32>
    %513 = vector.broadcast %512 : vector<1x256xf32> to vector<8x256xf32>
    %514 = arith.mulf %30, %513 : vector<8x256xf32>
    %515 = arith.addf %510, %514 : vector<8x256xf32>
    %c1_185 = arith.constant 1 : index
    %c10_186 = arith.constant 10 : index
    %c0_187 = arith.constant 0 : index
    %516 = vector.load %arg1[%c1_185, %c10_186, %c0_187] : memref<2x75x256xf32, #tpu.memory_space<vmem>>, vector<1x1x256xf32>
    %517 = vector.shape_cast %516 : vector<1x1x256xf32> to vector<1x256xf32>
    %518 = vector.broadcast %517 : vector<1x256xf32> to vector<8x256xf32>
    %519 = arith.mulf %33, %518 : vector<8x256xf32>
    %520 = arith.addf %515, %519 : vector<8x256xf32>
    %c1_188 = arith.constant 1 : index
    %c11_189 = arith.constant 11 : index
    %c0_190 = arith.constant 0 : index
    %521 = vector.load %arg1[%c1_188, %c11_189, %c0_190] : memref<2x75x256xf32, #tpu.memory_space<vmem>>, vector<1x1x256xf32>
    %522 = vector.shape_cast %521 : vector<1x1x256xf32> to vector<1x256xf32>
    %523 = vector.broadcast %522 : vector<1x256xf32> to vector<8x256xf32>
    %524 = arith.mulf %36, %523 : vector<8x256xf32>
    %525 = arith.addf %520, %524 : vector<8x256xf32>
    %c1_191 = arith.constant 1 : index
    %c12_192 = arith.constant 12 : index
    %c0_193 = arith.constant 0 : index
    %526 = vector.load %arg1[%c1_191, %c12_192, %c0_193] : memref<2x75x256xf32, #tpu.memory_space<vmem>>, vector<1x1x256xf32>
    %527 = vector.shape_cast %526 : vector<1x1x256xf32> to vector<1x256xf32>
    %528 = vector.broadcast %527 : vector<1x256xf32> to vector<8x256xf32>
    %529 = arith.mulf %39, %528 : vector<8x256xf32>
    %530 = arith.addf %525, %529 : vector<8x256xf32>
    %c1_194 = arith.constant 1 : index
    %c13_195 = arith.constant 13 : index
    %c0_196 = arith.constant 0 : index
    %531 = vector.load %arg1[%c1_194, %c13_195, %c0_196] : memref<2x75x256xf32, #tpu.memory_space<vmem>>, vector<1x1x256xf32>
    %532 = vector.shape_cast %531 : vector<1x1x256xf32> to vector<1x256xf32>
    %533 = vector.broadcast %532 : vector<1x256xf32> to vector<8x256xf32>
    %534 = arith.mulf %42, %533 : vector<8x256xf32>
    %535 = arith.addf %530, %534 : vector<8x256xf32>
    %c1_197 = arith.constant 1 : index
    %c14_198 = arith.constant 14 : index
    %c0_199 = arith.constant 0 : index
    %536 = vector.load %arg1[%c1_197, %c14_198, %c0_199] : memref<2x75x256xf32, #tpu.memory_space<vmem>>, vector<1x1x256xf32>
    %537 = vector.shape_cast %536 : vector<1x1x256xf32> to vector<1x256xf32>
    %538 = vector.broadcast %537 : vector<1x256xf32> to vector<8x256xf32>
    %539 = arith.mulf %45, %538 : vector<8x256xf32>
    %540 = arith.addf %535, %539 : vector<8x256xf32>
    %c1_200 = arith.constant 1 : index
    %c15_201 = arith.constant 15 : index
    %c0_202 = arith.constant 0 : index
    %541 = vector.load %arg1[%c1_200, %c15_201, %c0_202] : memref<2x75x256xf32, #tpu.memory_space<vmem>>, vector<1x1x256xf32>
    %542 = vector.shape_cast %541 : vector<1x1x256xf32> to vector<1x256xf32>
    %543 = vector.broadcast %542 : vector<1x256xf32> to vector<8x256xf32>
    %544 = arith.mulf %48, %543 : vector<8x256xf32>
    %545 = arith.addf %540, %544 : vector<8x256xf32>
    %c1_203 = arith.constant 1 : index
    %c16_204 = arith.constant 16 : index
    %c0_205 = arith.constant 0 : index
    %546 = vector.load %arg1[%c1_203, %c16_204, %c0_205] : memref<2x75x256xf32, #tpu.memory_space<vmem>>, vector<1x1x256xf32>
    %547 = vector.shape_cast %546 : vector<1x1x256xf32> to vector<1x256xf32>
    %548 = vector.broadcast %547 : vector<1x256xf32> to vector<8x256xf32>
    %549 = arith.mulf %51, %548 : vector<8x256xf32>
    %550 = arith.addf %545, %549 : vector<8x256xf32>
    %c1_206 = arith.constant 1 : index
    %c17_207 = arith.constant 17 : index
    %c0_208 = arith.constant 0 : index
    %551 = vector.load %arg1[%c1_206, %c17_207, %c0_208] : memref<2x75x256xf32, #tpu.memory_space<vmem>>, vector<1x1x256xf32>
    %552 = vector.shape_cast %551 : vector<1x1x256xf32> to vector<1x256xf32>
    %553 = vector.broadcast %552 : vector<1x256xf32> to vector<8x256xf32>
    %554 = arith.mulf %54, %553 : vector<8x256xf32>
    %555 = arith.addf %550, %554 : vector<8x256xf32>
    %c1_209 = arith.constant 1 : index
    %c18_210 = arith.constant 18 : index
    %c0_211 = arith.constant 0 : index
    %556 = vector.load %arg1[%c1_209, %c18_210, %c0_211] : memref<2x75x256xf32, #tpu.memory_space<vmem>>, vector<1x1x256xf32>
    %557 = vector.shape_cast %556 : vector<1x1x256xf32> to vector<1x256xf32>
    %558 = vector.broadcast %557 : vector<1x256xf32> to vector<8x256xf32>
    %559 = arith.mulf %57, %558 : vector<8x256xf32>
    %560 = arith.addf %555, %559 : vector<8x256xf32>
    %c1_212 = arith.constant 1 : index
    %c19_213 = arith.constant 19 : index
    %c0_214 = arith.constant 0 : index
    %561 = vector.load %arg1[%c1_212, %c19_213, %c0_214] : memref<2x75x256xf32, #tpu.memory_space<vmem>>, vector<1x1x256xf32>
    %562 = vector.shape_cast %561 : vector<1x1x256xf32> to vector<1x256xf32>
    %563 = vector.broadcast %562 : vector<1x256xf32> to vector<8x256xf32>
    %564 = arith.mulf %60, %563 : vector<8x256xf32>
    %565 = arith.addf %560, %564 : vector<8x256xf32>
    %c1_215 = arith.constant 1 : index
    %c20_216 = arith.constant 20 : index
    %c0_217 = arith.constant 0 : index
    %566 = vector.load %arg1[%c1_215, %c20_216, %c0_217] : memref<2x75x256xf32, #tpu.memory_space<vmem>>, vector<1x1x256xf32>
    %567 = vector.shape_cast %566 : vector<1x1x256xf32> to vector<1x256xf32>
    %568 = vector.broadcast %567 : vector<1x256xf32> to vector<8x256xf32>
    %569 = arith.mulf %63, %568 : vector<8x256xf32>
    %570 = arith.addf %565, %569 : vector<8x256xf32>
    %c1_218 = arith.constant 1 : index
    %c21_219 = arith.constant 21 : index
    %c0_220 = arith.constant 0 : index
    %571 = vector.load %arg1[%c1_218, %c21_219, %c0_220] : memref<2x75x256xf32, #tpu.memory_space<vmem>>, vector<1x1x256xf32>
    %572 = vector.shape_cast %571 : vector<1x1x256xf32> to vector<1x256xf32>
    %573 = vector.broadcast %572 : vector<1x256xf32> to vector<8x256xf32>
    %574 = arith.mulf %66, %573 : vector<8x256xf32>
    %575 = arith.addf %570, %574 : vector<8x256xf32>
    %c1_221 = arith.constant 1 : index
    %c22_222 = arith.constant 22 : index
    %c0_223 = arith.constant 0 : index
    %576 = vector.load %arg1[%c1_221, %c22_222, %c0_223] : memref<2x75x256xf32, #tpu.memory_space<vmem>>, vector<1x1x256xf32>
    %577 = vector.shape_cast %576 : vector<1x1x256xf32> to vector<1x256xf32>
    %578 = vector.broadcast %577 : vector<1x256xf32> to vector<8x256xf32>
    %579 = arith.mulf %69, %578 : vector<8x256xf32>
    %580 = arith.addf %575, %579 : vector<8x256xf32>
    %c1_224 = arith.constant 1 : index
    %c23_225 = arith.constant 23 : index
    %c0_226 = arith.constant 0 : index
    %581 = vector.load %arg1[%c1_224, %c23_225, %c0_226] : memref<2x75x256xf32, #tpu.memory_space<vmem>>, vector<1x1x256xf32>
    %582 = vector.shape_cast %581 : vector<1x1x256xf32> to vector<1x256xf32>
    %583 = vector.broadcast %582 : vector<1x256xf32> to vector<8x256xf32>
    %584 = arith.mulf %72, %583 : vector<8x256xf32>
    %585 = arith.addf %580, %584 : vector<8x256xf32>
    %c1_227 = arith.constant 1 : index
    %c24_228 = arith.constant 24 : index
    %c0_229 = arith.constant 0 : index
    %586 = vector.load %arg1[%c1_227, %c24_228, %c0_229] : memref<2x75x256xf32, #tpu.memory_space<vmem>>, vector<1x1x256xf32>
    %587 = vector.shape_cast %586 : vector<1x1x256xf32> to vector<1x256xf32>
    %588 = vector.broadcast %587 : vector<1x256xf32> to vector<8x256xf32>
    %589 = arith.mulf %75, %588 : vector<8x256xf32>
    %590 = arith.addf %585, %589 : vector<8x256xf32>
    %591 = vector.extract_strided_slice %590 {offsets = [0, 0], sizes = [4, 256], strides = [1, 1]} : vector<8x256xf32> to vector<4x256xf32>
    %592 = vector.extract_strided_slice %590 {offsets = [4, 0], sizes = [4, 256], strides = [1, 1]} : vector<8x256xf32> to vector<4x256xf32>
    %593 = arith.mulf %591, %592 : vector<4x256xf32>
    %cst_230 = arith.constant 0.000000e+00 : f32
    %594 = vector.broadcast %cst_230 : f32 to vector<8x256xf32>
    %c1_231 = arith.constant 1 : index
    %c25_232 = arith.constant 25 : index
    %c0_233 = arith.constant 0 : index
    %595 = vector.load %arg1[%c1_231, %c25_232, %c0_233] : memref<2x75x256xf32, #tpu.memory_space<vmem>>, vector<1x1x256xf32>
    %596 = vector.shape_cast %595 : vector<1x1x256xf32> to vector<1x256xf32>
    %597 = vector.broadcast %596 : vector<1x256xf32> to vector<8x256xf32>
    %598 = arith.mulf %3, %597 : vector<8x256xf32>
    %599 = arith.addf %594, %598 : vector<8x256xf32>
    %c1_234 = arith.constant 1 : index
    %c26_235 = arith.constant 26 : index
    %c0_236 = arith.constant 0 : index
    %600 = vector.load %arg1[%c1_234, %c26_235, %c0_236] : memref<2x75x256xf32, #tpu.memory_space<vmem>>, vector<1x1x256xf32>
    %601 = vector.shape_cast %600 : vector<1x1x256xf32> to vector<1x256xf32>
    %602 = vector.broadcast %601 : vector<1x256xf32> to vector<8x256xf32>
    %603 = arith.mulf %6, %602 : vector<8x256xf32>
    %604 = arith.addf %599, %603 : vector<8x256xf32>
    %c1_237 = arith.constant 1 : index
    %c27_238 = arith.constant 27 : index
    %c0_239 = arith.constant 0 : index
    %605 = vector.load %arg1[%c1_237, %c27_238, %c0_239] : memref<2x75x256xf32, #tpu.memory_space<vmem>>, vector<1x1x256xf32>
    %606 = vector.shape_cast %605 : vector<1x1x256xf32> to vector<1x256xf32>
    %607 = vector.broadcast %606 : vector<1x256xf32> to vector<8x256xf32>
    %608 = arith.mulf %9, %607 : vector<8x256xf32>
    %609 = arith.addf %604, %608 : vector<8x256xf32>
    %c1_240 = arith.constant 1 : index
    %c28_241 = arith.constant 28 : index
    %c0_242 = arith.constant 0 : index
    %610 = vector.load %arg1[%c1_240, %c28_241, %c0_242] : memref<2x75x256xf32, #tpu.memory_space<vmem>>, vector<1x1x256xf32>
    %611 = vector.shape_cast %610 : vector<1x1x256xf32> to vector<1x256xf32>
    %612 = vector.broadcast %611 : vector<1x256xf32> to vector<8x256xf32>
    %613 = arith.mulf %12, %612 : vector<8x256xf32>
    %614 = arith.addf %609, %613 : vector<8x256xf32>
    %c1_243 = arith.constant 1 : index
    %c29_244 = arith.constant 29 : index
    %c0_245 = arith.constant 0 : index
    %615 = vector.load %arg1[%c1_243, %c29_244, %c0_245] : memref<2x75x256xf32, #tpu.memory_space<vmem>>, vector<1x1x256xf32>
    %616 = vector.shape_cast %615 : vector<1x1x256xf32> to vector<1x256xf32>
    %617 = vector.broadcast %616 : vector<1x256xf32> to vector<8x256xf32>
    %618 = arith.mulf %15, %617 : vector<8x256xf32>
    %619 = arith.addf %614, %618 : vector<8x256xf32>
    %c1_246 = arith.constant 1 : index
    %c30_247 = arith.constant 30 : index
    %c0_248 = arith.constant 0 : index
    %620 = vector.load %arg1[%c1_246, %c30_247, %c0_248] : memref<2x75x256xf32, #tpu.memory_space<vmem>>, vector<1x1x256xf32>
    %621 = vector.shape_cast %620 : vector<1x1x256xf32> to vector<1x256xf32>
    %622 = vector.broadcast %621 : vector<1x256xf32> to vector<8x256xf32>
    %623 = arith.mulf %18, %622 : vector<8x256xf32>
    %624 = arith.addf %619, %623 : vector<8x256xf32>
    %c1_249 = arith.constant 1 : index
    %c31_250 = arith.constant 31 : index
    %c0_251 = arith.constant 0 : index
    %625 = vector.load %arg1[%c1_249, %c31_250, %c0_251] : memref<2x75x256xf32, #tpu.memory_space<vmem>>, vector<1x1x256xf32>
    %626 = vector.shape_cast %625 : vector<1x1x256xf32> to vector<1x256xf32>
    %627 = vector.broadcast %626 : vector<1x256xf32> to vector<8x256xf32>
    %628 = arith.mulf %21, %627 : vector<8x256xf32>
    %629 = arith.addf %624, %628 : vector<8x256xf32>
    %c1_252 = arith.constant 1 : index
    %c32_253 = arith.constant 32 : index
    %c0_254 = arith.constant 0 : index
    %630 = vector.load %arg1[%c1_252, %c32_253, %c0_254] : memref<2x75x256xf32, #tpu.memory_space<vmem>>, vector<1x1x256xf32>
    %631 = vector.shape_cast %630 : vector<1x1x256xf32> to vector<1x256xf32>
    %632 = vector.broadcast %631 : vector<1x256xf32> to vector<8x256xf32>
    %633 = arith.mulf %24, %632 : vector<8x256xf32>
    %634 = arith.addf %629, %633 : vector<8x256xf32>
    %c1_255 = arith.constant 1 : index
    %c33_256 = arith.constant 33 : index
    %c0_257 = arith.constant 0 : index
    %635 = vector.load %arg1[%c1_255, %c33_256, %c0_257] : memref<2x75x256xf32, #tpu.memory_space<vmem>>, vector<1x1x256xf32>
    %636 = vector.shape_cast %635 : vector<1x1x256xf32> to vector<1x256xf32>
    %637 = vector.broadcast %636 : vector<1x256xf32> to vector<8x256xf32>
    %638 = arith.mulf %27, %637 : vector<8x256xf32>
    %639 = arith.addf %634, %638 : vector<8x256xf32>
    %c1_258 = arith.constant 1 : index
    %c34_259 = arith.constant 34 : index
    %c0_260 = arith.constant 0 : index
    %640 = vector.load %arg1[%c1_258, %c34_259, %c0_260] : memref<2x75x256xf32, #tpu.memory_space<vmem>>, vector<1x1x256xf32>
    %641 = vector.shape_cast %640 : vector<1x1x256xf32> to vector<1x256xf32>
    %642 = vector.broadcast %641 : vector<1x256xf32> to vector<8x256xf32>
    %643 = arith.mulf %30, %642 : vector<8x256xf32>
    %644 = arith.addf %639, %643 : vector<8x256xf32>
    %c1_261 = arith.constant 1 : index
    %c35_262 = arith.constant 35 : index
    %c0_263 = arith.constant 0 : index
    %645 = vector.load %arg1[%c1_261, %c35_262, %c0_263] : memref<2x75x256xf32, #tpu.memory_space<vmem>>, vector<1x1x256xf32>
    %646 = vector.shape_cast %645 : vector<1x1x256xf32> to vector<1x256xf32>
    %647 = vector.broadcast %646 : vector<1x256xf32> to vector<8x256xf32>
    %648 = arith.mulf %33, %647 : vector<8x256xf32>
    %649 = arith.addf %644, %648 : vector<8x256xf32>
    %c1_264 = arith.constant 1 : index
    %c36_265 = arith.constant 36 : index
    %c0_266 = arith.constant 0 : index
    %650 = vector.load %arg1[%c1_264, %c36_265, %c0_266] : memref<2x75x256xf32, #tpu.memory_space<vmem>>, vector<1x1x256xf32>
    %651 = vector.shape_cast %650 : vector<1x1x256xf32> to vector<1x256xf32>
    %652 = vector.broadcast %651 : vector<1x256xf32> to vector<8x256xf32>
    %653 = arith.mulf %36, %652 : vector<8x256xf32>
    %654 = arith.addf %649, %653 : vector<8x256xf32>
    %c1_267 = arith.constant 1 : index
    %c37_268 = arith.constant 37 : index
    %c0_269 = arith.constant 0 : index
    %655 = vector.load %arg1[%c1_267, %c37_268, %c0_269] : memref<2x75x256xf32, #tpu.memory_space<vmem>>, vector<1x1x256xf32>
    %656 = vector.shape_cast %655 : vector<1x1x256xf32> to vector<1x256xf32>
    %657 = vector.broadcast %656 : vector<1x256xf32> to vector<8x256xf32>
    %658 = arith.mulf %39, %657 : vector<8x256xf32>
    %659 = arith.addf %654, %658 : vector<8x256xf32>
    %c1_270 = arith.constant 1 : index
    %c38_271 = arith.constant 38 : index
    %c0_272 = arith.constant 0 : index
    %660 = vector.load %arg1[%c1_270, %c38_271, %c0_272] : memref<2x75x256xf32, #tpu.memory_space<vmem>>, vector<1x1x256xf32>
    %661 = vector.shape_cast %660 : vector<1x1x256xf32> to vector<1x256xf32>
    %662 = vector.broadcast %661 : vector<1x256xf32> to vector<8x256xf32>
    %663 = arith.mulf %42, %662 : vector<8x256xf32>
    %664 = arith.addf %659, %663 : vector<8x256xf32>
    %c1_273 = arith.constant 1 : index
    %c39_274 = arith.constant 39 : index
    %c0_275 = arith.constant 0 : index
    %665 = vector.load %arg1[%c1_273, %c39_274, %c0_275] : memref<2x75x256xf32, #tpu.memory_space<vmem>>, vector<1x1x256xf32>
    %666 = vector.shape_cast %665 : vector<1x1x256xf32> to vector<1x256xf32>
    %667 = vector.broadcast %666 : vector<1x256xf32> to vector<8x256xf32>
    %668 = arith.mulf %45, %667 : vector<8x256xf32>
    %669 = arith.addf %664, %668 : vector<8x256xf32>
    %c1_276 = arith.constant 1 : index
    %c40_277 = arith.constant 40 : index
    %c0_278 = arith.constant 0 : index
    %670 = vector.load %arg1[%c1_276, %c40_277, %c0_278] : memref<2x75x256xf32, #tpu.memory_space<vmem>>, vector<1x1x256xf32>
    %671 = vector.shape_cast %670 : vector<1x1x256xf32> to vector<1x256xf32>
    %672 = vector.broadcast %671 : vector<1x256xf32> to vector<8x256xf32>
    %673 = arith.mulf %48, %672 : vector<8x256xf32>
    %674 = arith.addf %669, %673 : vector<8x256xf32>
    %c1_279 = arith.constant 1 : index
    %c41_280 = arith.constant 41 : index
    %c0_281 = arith.constant 0 : index
    %675 = vector.load %arg1[%c1_279, %c41_280, %c0_281] : memref<2x75x256xf32, #tpu.memory_space<vmem>>, vector<1x1x256xf32>
    %676 = vector.shape_cast %675 : vector<1x1x256xf32> to vector<1x256xf32>
    %677 = vector.broadcast %676 : vector<1x256xf32> to vector<8x256xf32>
    %678 = arith.mulf %51, %677 : vector<8x256xf32>
    %679 = arith.addf %674, %678 : vector<8x256xf32>
    %c1_282 = arith.constant 1 : index
    %c42_283 = arith.constant 42 : index
    %c0_284 = arith.constant 0 : index
    %680 = vector.load %arg1[%c1_282, %c42_283, %c0_284] : memref<2x75x256xf32, #tpu.memory_space<vmem>>, vector<1x1x256xf32>
    %681 = vector.shape_cast %680 : vector<1x1x256xf32> to vector<1x256xf32>
    %682 = vector.broadcast %681 : vector<1x256xf32> to vector<8x256xf32>
    %683 = arith.mulf %54, %682 : vector<8x256xf32>
    %684 = arith.addf %679, %683 : vector<8x256xf32>
    %c1_285 = arith.constant 1 : index
    %c43_286 = arith.constant 43 : index
    %c0_287 = arith.constant 0 : index
    %685 = vector.load %arg1[%c1_285, %c43_286, %c0_287] : memref<2x75x256xf32, #tpu.memory_space<vmem>>, vector<1x1x256xf32>
    %686 = vector.shape_cast %685 : vector<1x1x256xf32> to vector<1x256xf32>
    %687 = vector.broadcast %686 : vector<1x256xf32> to vector<8x256xf32>
    %688 = arith.mulf %57, %687 : vector<8x256xf32>
    %689 = arith.addf %684, %688 : vector<8x256xf32>
    %c1_288 = arith.constant 1 : index
    %c44_289 = arith.constant 44 : index
    %c0_290 = arith.constant 0 : index
    %690 = vector.load %arg1[%c1_288, %c44_289, %c0_290] : memref<2x75x256xf32, #tpu.memory_space<vmem>>, vector<1x1x256xf32>
    %691 = vector.shape_cast %690 : vector<1x1x256xf32> to vector<1x256xf32>
    %692 = vector.broadcast %691 : vector<1x256xf32> to vector<8x256xf32>
    %693 = arith.mulf %60, %692 : vector<8x256xf32>
    %694 = arith.addf %689, %693 : vector<8x256xf32>
    %c1_291 = arith.constant 1 : index
    %c45_292 = arith.constant 45 : index
    %c0_293 = arith.constant 0 : index
    %695 = vector.load %arg1[%c1_291, %c45_292, %c0_293] : memref<2x75x256xf32, #tpu.memory_space<vmem>>, vector<1x1x256xf32>
    %696 = vector.shape_cast %695 : vector<1x1x256xf32> to vector<1x256xf32>
    %697 = vector.broadcast %696 : vector<1x256xf32> to vector<8x256xf32>
    %698 = arith.mulf %63, %697 : vector<8x256xf32>
    %699 = arith.addf %694, %698 : vector<8x256xf32>
    %c1_294 = arith.constant 1 : index
    %c46_295 = arith.constant 46 : index
    %c0_296 = arith.constant 0 : index
    %700 = vector.load %arg1[%c1_294, %c46_295, %c0_296] : memref<2x75x256xf32, #tpu.memory_space<vmem>>, vector<1x1x256xf32>
    %701 = vector.shape_cast %700 : vector<1x1x256xf32> to vector<1x256xf32>
    %702 = vector.broadcast %701 : vector<1x256xf32> to vector<8x256xf32>
    %703 = arith.mulf %66, %702 : vector<8x256xf32>
    %704 = arith.addf %699, %703 : vector<8x256xf32>
    %c1_297 = arith.constant 1 : index
    %c47_298 = arith.constant 47 : index
    %c0_299 = arith.constant 0 : index
    %705 = vector.load %arg1[%c1_297, %c47_298, %c0_299] : memref<2x75x256xf32, #tpu.memory_space<vmem>>, vector<1x1x256xf32>
    %706 = vector.shape_cast %705 : vector<1x1x256xf32> to vector<1x256xf32>
    %707 = vector.broadcast %706 : vector<1x256xf32> to vector<8x256xf32>
    %708 = arith.mulf %69, %707 : vector<8x256xf32>
    %709 = arith.addf %704, %708 : vector<8x256xf32>
    %c1_300 = arith.constant 1 : index
    %c48_301 = arith.constant 48 : index
    %c0_302 = arith.constant 0 : index
    %710 = vector.load %arg1[%c1_300, %c48_301, %c0_302] : memref<2x75x256xf32, #tpu.memory_space<vmem>>, vector<1x1x256xf32>
    %711 = vector.shape_cast %710 : vector<1x1x256xf32> to vector<1x256xf32>
    %712 = vector.broadcast %711 : vector<1x256xf32> to vector<8x256xf32>
    %713 = arith.mulf %72, %712 : vector<8x256xf32>
    %714 = arith.addf %709, %713 : vector<8x256xf32>
    %c1_303 = arith.constant 1 : index
    %c49_304 = arith.constant 49 : index
    %c0_305 = arith.constant 0 : index
    %715 = vector.load %arg1[%c1_303, %c49_304, %c0_305] : memref<2x75x256xf32, #tpu.memory_space<vmem>>, vector<1x1x256xf32>
    %716 = vector.shape_cast %715 : vector<1x1x256xf32> to vector<1x256xf32>
    %717 = vector.broadcast %716 : vector<1x256xf32> to vector<8x256xf32>
    %718 = arith.mulf %75, %717 : vector<8x256xf32>
    %719 = arith.addf %714, %718 : vector<8x256xf32>
    %720 = vector.extract_strided_slice %719 {offsets = [0, 0], sizes = [4, 256], strides = [1, 1]} : vector<8x256xf32> to vector<4x256xf32>
    %721 = vector.extract_strided_slice %719 {offsets = [4, 0], sizes = [4, 256], strides = [1, 1]} : vector<8x256xf32> to vector<4x256xf32>
    %722 = arith.mulf %720, %721 : vector<4x256xf32>
    %723 = arith.addf %593, %722 : vector<4x256xf32>
    %cst_306 = arith.constant 0.000000e+00 : f32
    %724 = vector.broadcast %cst_306 : f32 to vector<8x256xf32>
    %c1_307 = arith.constant 1 : index
    %c50_308 = arith.constant 50 : index
    %c0_309 = arith.constant 0 : index
    %725 = vector.load %arg1[%c1_307, %c50_308, %c0_309] : memref<2x75x256xf32, #tpu.memory_space<vmem>>, vector<1x1x256xf32>
    %726 = vector.shape_cast %725 : vector<1x1x256xf32> to vector<1x256xf32>
    %727 = vector.broadcast %726 : vector<1x256xf32> to vector<8x256xf32>
    %728 = arith.mulf %3, %727 : vector<8x256xf32>
    %729 = arith.addf %724, %728 : vector<8x256xf32>
    %c1_310 = arith.constant 1 : index
    %c51_311 = arith.constant 51 : index
    %c0_312 = arith.constant 0 : index
    %730 = vector.load %arg1[%c1_310, %c51_311, %c0_312] : memref<2x75x256xf32, #tpu.memory_space<vmem>>, vector<1x1x256xf32>
    %731 = vector.shape_cast %730 : vector<1x1x256xf32> to vector<1x256xf32>
    %732 = vector.broadcast %731 : vector<1x256xf32> to vector<8x256xf32>
    %733 = arith.mulf %6, %732 : vector<8x256xf32>
    %734 = arith.addf %729, %733 : vector<8x256xf32>
    %c1_313 = arith.constant 1 : index
    %c52_314 = arith.constant 52 : index
    %c0_315 = arith.constant 0 : index
    %735 = vector.load %arg1[%c1_313, %c52_314, %c0_315] : memref<2x75x256xf32, #tpu.memory_space<vmem>>, vector<1x1x256xf32>
    %736 = vector.shape_cast %735 : vector<1x1x256xf32> to vector<1x256xf32>
    %737 = vector.broadcast %736 : vector<1x256xf32> to vector<8x256xf32>
    %738 = arith.mulf %9, %737 : vector<8x256xf32>
    %739 = arith.addf %734, %738 : vector<8x256xf32>
    %c1_316 = arith.constant 1 : index
    %c53_317 = arith.constant 53 : index
    %c0_318 = arith.constant 0 : index
    %740 = vector.load %arg1[%c1_316, %c53_317, %c0_318] : memref<2x75x256xf32, #tpu.memory_space<vmem>>, vector<1x1x256xf32>
    %741 = vector.shape_cast %740 : vector<1x1x256xf32> to vector<1x256xf32>
    %742 = vector.broadcast %741 : vector<1x256xf32> to vector<8x256xf32>
    %743 = arith.mulf %12, %742 : vector<8x256xf32>
    %744 = arith.addf %739, %743 : vector<8x256xf32>
    %c1_319 = arith.constant 1 : index
    %c54_320 = arith.constant 54 : index
    %c0_321 = arith.constant 0 : index
    %745 = vector.load %arg1[%c1_319, %c54_320, %c0_321] : memref<2x75x256xf32, #tpu.memory_space<vmem>>, vector<1x1x256xf32>
    %746 = vector.shape_cast %745 : vector<1x1x256xf32> to vector<1x256xf32>
    %747 = vector.broadcast %746 : vector<1x256xf32> to vector<8x256xf32>
    %748 = arith.mulf %15, %747 : vector<8x256xf32>
    %749 = arith.addf %744, %748 : vector<8x256xf32>
    %c1_322 = arith.constant 1 : index
    %c55_323 = arith.constant 55 : index
    %c0_324 = arith.constant 0 : index
    %750 = vector.load %arg1[%c1_322, %c55_323, %c0_324] : memref<2x75x256xf32, #tpu.memory_space<vmem>>, vector<1x1x256xf32>
    %751 = vector.shape_cast %750 : vector<1x1x256xf32> to vector<1x256xf32>
    %752 = vector.broadcast %751 : vector<1x256xf32> to vector<8x256xf32>
    %753 = arith.mulf %18, %752 : vector<8x256xf32>
    %754 = arith.addf %749, %753 : vector<8x256xf32>
    %c1_325 = arith.constant 1 : index
    %c56_326 = arith.constant 56 : index
    %c0_327 = arith.constant 0 : index
    %755 = vector.load %arg1[%c1_325, %c56_326, %c0_327] : memref<2x75x256xf32, #tpu.memory_space<vmem>>, vector<1x1x256xf32>
    %756 = vector.shape_cast %755 : vector<1x1x256xf32> to vector<1x256xf32>
    %757 = vector.broadcast %756 : vector<1x256xf32> to vector<8x256xf32>
    %758 = arith.mulf %21, %757 : vector<8x256xf32>
    %759 = arith.addf %754, %758 : vector<8x256xf32>
    %c1_328 = arith.constant 1 : index
    %c57_329 = arith.constant 57 : index
    %c0_330 = arith.constant 0 : index
    %760 = vector.load %arg1[%c1_328, %c57_329, %c0_330] : memref<2x75x256xf32, #tpu.memory_space<vmem>>, vector<1x1x256xf32>
    %761 = vector.shape_cast %760 : vector<1x1x256xf32> to vector<1x256xf32>
    %762 = vector.broadcast %761 : vector<1x256xf32> to vector<8x256xf32>
    %763 = arith.mulf %24, %762 : vector<8x256xf32>
    %764 = arith.addf %759, %763 : vector<8x256xf32>
    %c1_331 = arith.constant 1 : index
    %c58_332 = arith.constant 58 : index
    %c0_333 = arith.constant 0 : index
    %765 = vector.load %arg1[%c1_331, %c58_332, %c0_333] : memref<2x75x256xf32, #tpu.memory_space<vmem>>, vector<1x1x256xf32>
    %766 = vector.shape_cast %765 : vector<1x1x256xf32> to vector<1x256xf32>
    %767 = vector.broadcast %766 : vector<1x256xf32> to vector<8x256xf32>
    %768 = arith.mulf %27, %767 : vector<8x256xf32>
    %769 = arith.addf %764, %768 : vector<8x256xf32>
    %c1_334 = arith.constant 1 : index
    %c59_335 = arith.constant 59 : index
    %c0_336 = arith.constant 0 : index
    %770 = vector.load %arg1[%c1_334, %c59_335, %c0_336] : memref<2x75x256xf32, #tpu.memory_space<vmem>>, vector<1x1x256xf32>
    %771 = vector.shape_cast %770 : vector<1x1x256xf32> to vector<1x256xf32>
    %772 = vector.broadcast %771 : vector<1x256xf32> to vector<8x256xf32>
    %773 = arith.mulf %30, %772 : vector<8x256xf32>
    %774 = arith.addf %769, %773 : vector<8x256xf32>
    %c1_337 = arith.constant 1 : index
    %c60_338 = arith.constant 60 : index
    %c0_339 = arith.constant 0 : index
    %775 = vector.load %arg1[%c1_337, %c60_338, %c0_339] : memref<2x75x256xf32, #tpu.memory_space<vmem>>, vector<1x1x256xf32>
    %776 = vector.shape_cast %775 : vector<1x1x256xf32> to vector<1x256xf32>
    %777 = vector.broadcast %776 : vector<1x256xf32> to vector<8x256xf32>
    %778 = arith.mulf %33, %777 : vector<8x256xf32>
    %779 = arith.addf %774, %778 : vector<8x256xf32>
    %c1_340 = arith.constant 1 : index
    %c61_341 = arith.constant 61 : index
    %c0_342 = arith.constant 0 : index
    %780 = vector.load %arg1[%c1_340, %c61_341, %c0_342] : memref<2x75x256xf32, #tpu.memory_space<vmem>>, vector<1x1x256xf32>
    %781 = vector.shape_cast %780 : vector<1x1x256xf32> to vector<1x256xf32>
    %782 = vector.broadcast %781 : vector<1x256xf32> to vector<8x256xf32>
    %783 = arith.mulf %36, %782 : vector<8x256xf32>
    %784 = arith.addf %779, %783 : vector<8x256xf32>
    %c1_343 = arith.constant 1 : index
    %c62_344 = arith.constant 62 : index
    %c0_345 = arith.constant 0 : index
    %785 = vector.load %arg1[%c1_343, %c62_344, %c0_345] : memref<2x75x256xf32, #tpu.memory_space<vmem>>, vector<1x1x256xf32>
    %786 = vector.shape_cast %785 : vector<1x1x256xf32> to vector<1x256xf32>
    %787 = vector.broadcast %786 : vector<1x256xf32> to vector<8x256xf32>
    %788 = arith.mulf %39, %787 : vector<8x256xf32>
    %789 = arith.addf %784, %788 : vector<8x256xf32>
    %c1_346 = arith.constant 1 : index
    %c63_347 = arith.constant 63 : index
    %c0_348 = arith.constant 0 : index
    %790 = vector.load %arg1[%c1_346, %c63_347, %c0_348] : memref<2x75x256xf32, #tpu.memory_space<vmem>>, vector<1x1x256xf32>
    %791 = vector.shape_cast %790 : vector<1x1x256xf32> to vector<1x256xf32>
    %792 = vector.broadcast %791 : vector<1x256xf32> to vector<8x256xf32>
    %793 = arith.mulf %42, %792 : vector<8x256xf32>
    %794 = arith.addf %789, %793 : vector<8x256xf32>
    %c1_349 = arith.constant 1 : index
    %c64_350 = arith.constant 64 : index
    %c0_351 = arith.constant 0 : index
    %795 = vector.load %arg1[%c1_349, %c64_350, %c0_351] : memref<2x75x256xf32, #tpu.memory_space<vmem>>, vector<1x1x256xf32>
    %796 = vector.shape_cast %795 : vector<1x1x256xf32> to vector<1x256xf32>
    %797 = vector.broadcast %796 : vector<1x256xf32> to vector<8x256xf32>
    %798 = arith.mulf %45, %797 : vector<8x256xf32>
    %799 = arith.addf %794, %798 : vector<8x256xf32>
    %c1_352 = arith.constant 1 : index
    %c65_353 = arith.constant 65 : index
    %c0_354 = arith.constant 0 : index
    %800 = vector.load %arg1[%c1_352, %c65_353, %c0_354] : memref<2x75x256xf32, #tpu.memory_space<vmem>>, vector<1x1x256xf32>
    %801 = vector.shape_cast %800 : vector<1x1x256xf32> to vector<1x256xf32>
    %802 = vector.broadcast %801 : vector<1x256xf32> to vector<8x256xf32>
    %803 = arith.mulf %48, %802 : vector<8x256xf32>
    %804 = arith.addf %799, %803 : vector<8x256xf32>
    %c1_355 = arith.constant 1 : index
    %c66_356 = arith.constant 66 : index
    %c0_357 = arith.constant 0 : index
    %805 = vector.load %arg1[%c1_355, %c66_356, %c0_357] : memref<2x75x256xf32, #tpu.memory_space<vmem>>, vector<1x1x256xf32>
    %806 = vector.shape_cast %805 : vector<1x1x256xf32> to vector<1x256xf32>
    %807 = vector.broadcast %806 : vector<1x256xf32> to vector<8x256xf32>
    %808 = arith.mulf %51, %807 : vector<8x256xf32>
    %809 = arith.addf %804, %808 : vector<8x256xf32>
    %c1_358 = arith.constant 1 : index
    %c67_359 = arith.constant 67 : index
    %c0_360 = arith.constant 0 : index
    %810 = vector.load %arg1[%c1_358, %c67_359, %c0_360] : memref<2x75x256xf32, #tpu.memory_space<vmem>>, vector<1x1x256xf32>
    %811 = vector.shape_cast %810 : vector<1x1x256xf32> to vector<1x256xf32>
    %812 = vector.broadcast %811 : vector<1x256xf32> to vector<8x256xf32>
    %813 = arith.mulf %54, %812 : vector<8x256xf32>
    %814 = arith.addf %809, %813 : vector<8x256xf32>
    %c1_361 = arith.constant 1 : index
    %c68_362 = arith.constant 68 : index
    %c0_363 = arith.constant 0 : index
    %815 = vector.load %arg1[%c1_361, %c68_362, %c0_363] : memref<2x75x256xf32, #tpu.memory_space<vmem>>, vector<1x1x256xf32>
    %816 = vector.shape_cast %815 : vector<1x1x256xf32> to vector<1x256xf32>
    %817 = vector.broadcast %816 : vector<1x256xf32> to vector<8x256xf32>
    %818 = arith.mulf %57, %817 : vector<8x256xf32>
    %819 = arith.addf %814, %818 : vector<8x256xf32>
    %c1_364 = arith.constant 1 : index
    %c69_365 = arith.constant 69 : index
    %c0_366 = arith.constant 0 : index
    %820 = vector.load %arg1[%c1_364, %c69_365, %c0_366] : memref<2x75x256xf32, #tpu.memory_space<vmem>>, vector<1x1x256xf32>
    %821 = vector.shape_cast %820 : vector<1x1x256xf32> to vector<1x256xf32>
    %822 = vector.broadcast %821 : vector<1x256xf32> to vector<8x256xf32>
    %823 = arith.mulf %60, %822 : vector<8x256xf32>
    %824 = arith.addf %819, %823 : vector<8x256xf32>
    %c1_367 = arith.constant 1 : index
    %c70_368 = arith.constant 70 : index
    %c0_369 = arith.constant 0 : index
    %825 = vector.load %arg1[%c1_367, %c70_368, %c0_369] : memref<2x75x256xf32, #tpu.memory_space<vmem>>, vector<1x1x256xf32>
    %826 = vector.shape_cast %825 : vector<1x1x256xf32> to vector<1x256xf32>
    %827 = vector.broadcast %826 : vector<1x256xf32> to vector<8x256xf32>
    %828 = arith.mulf %63, %827 : vector<8x256xf32>
    %829 = arith.addf %824, %828 : vector<8x256xf32>
    %c1_370 = arith.constant 1 : index
    %c71_371 = arith.constant 71 : index
    %c0_372 = arith.constant 0 : index
    %830 = vector.load %arg1[%c1_370, %c71_371, %c0_372] : memref<2x75x256xf32, #tpu.memory_space<vmem>>, vector<1x1x256xf32>
    %831 = vector.shape_cast %830 : vector<1x1x256xf32> to vector<1x256xf32>
    %832 = vector.broadcast %831 : vector<1x256xf32> to vector<8x256xf32>
    %833 = arith.mulf %66, %832 : vector<8x256xf32>
    %834 = arith.addf %829, %833 : vector<8x256xf32>
    %c1_373 = arith.constant 1 : index
    %c72_374 = arith.constant 72 : index
    %c0_375 = arith.constant 0 : index
    %835 = vector.load %arg1[%c1_373, %c72_374, %c0_375] : memref<2x75x256xf32, #tpu.memory_space<vmem>>, vector<1x1x256xf32>
    %836 = vector.shape_cast %835 : vector<1x1x256xf32> to vector<1x256xf32>
    %837 = vector.broadcast %836 : vector<1x256xf32> to vector<8x256xf32>
    %838 = arith.mulf %69, %837 : vector<8x256xf32>
    %839 = arith.addf %834, %838 : vector<8x256xf32>
    %c1_376 = arith.constant 1 : index
    %c73_377 = arith.constant 73 : index
    %c0_378 = arith.constant 0 : index
    %840 = vector.load %arg1[%c1_376, %c73_377, %c0_378] : memref<2x75x256xf32, #tpu.memory_space<vmem>>, vector<1x1x256xf32>
    %841 = vector.shape_cast %840 : vector<1x1x256xf32> to vector<1x256xf32>
    %842 = vector.broadcast %841 : vector<1x256xf32> to vector<8x256xf32>
    %843 = arith.mulf %72, %842 : vector<8x256xf32>
    %844 = arith.addf %839, %843 : vector<8x256xf32>
    %c1_379 = arith.constant 1 : index
    %c74_380 = arith.constant 74 : index
    %c0_381 = arith.constant 0 : index
    %845 = vector.load %arg1[%c1_379, %c74_380, %c0_381] : memref<2x75x256xf32, #tpu.memory_space<vmem>>, vector<1x1x256xf32>
    %846 = vector.shape_cast %845 : vector<1x1x256xf32> to vector<1x256xf32>
    %847 = vector.broadcast %846 : vector<1x256xf32> to vector<8x256xf32>
    %848 = arith.mulf %75, %847 : vector<8x256xf32>
    %849 = arith.addf %844, %848 : vector<8x256xf32>
    %850 = vector.extract_strided_slice %849 {offsets = [0, 0], sizes = [4, 256], strides = [1, 1]} : vector<8x256xf32> to vector<4x256xf32>
    %851 = vector.extract_strided_slice %849 {offsets = [4, 0], sizes = [4, 256], strides = [1, 1]} : vector<8x256xf32> to vector<4x256xf32>
    %852 = arith.mulf %850, %851 : vector<4x256xf32>
    %853 = arith.addf %723, %852 : vector<4x256xf32>
    %854 = tpu.concatenate %464, %853 in 0 : vector<4x256xf32>, vector<4x256xf32> -> vector<8x256xf32>
    %c0_382 = arith.constant 0 : index
    %c0_383 = arith.constant 0 : index
    %855 = vector.load %arg3[%c0_382, %c0_383] : memref<8x256xf32, #tpu.memory_space<vmem>>, vector<8x256xf32>
    tpu.vector_store %arg3[%c0_382, %c0_383], %854 {strides = array<i32>} : memref<8x256xf32, #tpu.memory_space<vmem>>, vector<8x256xf32>,
    return
  }
  func.func @transform_0(%arg0: i32) -> (i32, i32, i32) {
    %c0_i32 = arith.constant 0 : i32
    %c0_i32_0 = arith.constant 0 : i32
    %c0_i32_1 = arith.constant 0 : i32
    return %arg0, %c0_i32, %c0_i32_0 : i32, i32, i32
  }
  func.func @transform_1(%arg0: i32) -> (i32, i32) {
    %c0_i32 = arith.constant 0 : i32
    %c0_i32_0 = arith.constant 0 : i32
    %c0_i32_1 = arith.constant 0 : i32
    return %c0_i32, %c0_i32_0 : i32, i32
  }
  func.func @transform_2(%arg0: i32) -> (i32, i32) {
    %c0_i32 = arith.constant 0 : i32
    %c0_i32_0 = arith.constant 0 : i32
    return %arg0, %c0_i32 : i32, i32
  }
}

</mosaic_0001>

<bundles_post_ra>
// kernel: tlayer_forward.1
= control target key start
LH: loop header
LB: loop body
LE: loop exit
PB: predicated region body
PF: predicated region fallthrough
CT: control target
= control target key end

     0   :  { %v3007_v0 = vmov 2   ;;  %v3008_v1 = vmov 0   ;;  %v3009_v3 = vmov 3   ;;  %v3010_v4 = vmov 1   ;;  %s5281_s1 = inlined_call_operand.vmem [shape: f32[8,25], index: 1, kind: input, shape index: {}]   ;;  %s5282_s0 = inlined_call_operand.vmem [shape: f32[2,75,256], index: 0, kind: input, shape index: {}]   ;;  %s5283_s2 = inlined_call_operand.vmem [shape: f32[8,256], index: 2, kind: output, shape index: {}]  }
   0x1   :  { %2983 = vset.pattern.permute.xlu1 %v3007_v0  ;;  %2981 = vset.pattern.permute.xlu0 %v3008_v1  ;;  %v3050_v2 = vld [vmem:[%s5281_s1] sm:$0xff]  ;;  %v3011_v5 = vmov 4   ;;  %v3012_v6 = vmov 5   ;;  %v3013_v7 = vmov 6   ;;  %v3014_v8 = vmov 8  }
   0x2   :  { %22 = vperm.xlu1 %2983, %v3050_v2   ;;  %14 = vperm.xlu0 %2981, %v3050_v2   ;;  %v3015_v9 = vmov 7   ;;  %v3016_v10 = vmov 11   ;;  %v3017_v11 = vmov 9   ;;  %v3018_v12 = vmov 14  }
   0x3   :  { %v3019_v13 = vmov 10   ;;  %v3020_v14 = vmov 17   ;;  %v3021_v15 = vmov 12   ;;  %v3022_v16 = vmov 20  }
   0x4   :  { %v3023_v17 = vmov 13   ;;  %v3024_v18 = vmov 23   ;;  %v3025_v19 = vmov 15   ;;  %v3026_v20 = vmov 24  }
   0x5   :  { %v3027_v21 = vmov 16   ;;  %v115_v22 = vlaneseq  ;;  %v3028_v23 = vmov 18   ;;  %v3029_v25 = vmov 19   ;;  %v3082_v28 = vld [vmem:[%s5282_s0 + $0x2] ss:$8 sm:$0x3] }
   0x6   :  { %2984 = vset.pattern.permute.xlu1 %v3009_v3  ;;  %2982 = vset.pattern.permute.xlu0 %v3010_v4  ;;  %v3087_v29 = vld [vmem:[%s5282_s0 + $0x33] ss:$8 sm:$0x3]  ;;  %v3092_v30 = vld [vmem:[%s5282_s0 + $0x64] ss:$8 sm:$0x3] }
   0x7   :  { %26 = vperm.xlu1 %2984, %v3050_v2   ;;  %18 = vperm.xlu0 %2982, %v3050_v2   ;;  %v116_v24 = vshrl.u32 %v115_v22, 7  ;;  %v3097_v31 = vld [vmem:[%s5282_s0 + $0xa2] ss:$8 sm:$0x3]  ;;  %v3030_v32 = vmov 21   ;;  %v3031_v58 = vmov 22  }
   0x8   :  { %v3102_v33 = vld [vmem:[%s5282_s0 + $0xd3] ss:$8 sm:$0x3]  ;;  %v3107_v34 = vld [vmem:[%s5282_s0 + $0x104] ss:$8 sm:$0x3] }
   0x9   :  { %v3075_v26 = vsub.s32 0, %v116_v24  ;;  %v3077_v27 = vsub.s32 1, %v116_v24  ;;  %v3119_v38 = vld [vmem:[%s5282_s0] ss:$8 sm:$0x3]  ;;  %vm2724_vm0 = vcmask 1043456  }
   0xa   :  { %v3124_v39 = vld [vmem:[%s5282_s0 + $0x31] ss:$8 sm:$0x3]  ;;  %v3137_v44 = vld [vmem:[%s5282_s0 + $0x62] ss:$8 sm:$0x3] }
   0xb   :  { %2985 = vset.pattern.permute.xlu1 %v3011_v5  ;;  %2986 = vset.pattern.permute.xlu0 %v3012_v6  ;;  %v3142_v45 = vld [vmem:[%s5282_s0 + $0xa0] ss:$8 sm:$0x3]  ;;  %v3155_v50 = vld [vmem:[%s5282_s0 + $0xd1] ss:$8 sm:$0x3] }
   0xc   :  { %30 = vperm.xlu1 %2985, %v3050_v2   ;;  %34 = vperm.xlu0 %2986, %v3050_v2   ;;  %v3160_v51 = vld [vmem:[%s5282_s0 + $0x102] ss:$8 sm:$0x3]  ;;  %v3173_v56 = vld [vmem:[%s5282_s0 + $0x3] ss:$8 sm:$0x3] }
   0xd   :  { %v3178_v57 = vld [vmem:[%s5282_s0 + $0x34] ss:$8 sm:$0x3]  ;;  %v3191_v63 = vld [vmem:[%s5282_s0 + $0x65] ss:$8 sm:$0x3] }
   0xe   :  { %v3196_v0 = vld [vmem:[%s5282_s0 + $0xa3] ss:$8 sm:$0x3]  ;;  %v3210_v6 = vld [vmem:[%s5282_s0 + $0xd4] ss:$8 sm:$0x3] }
   0xf   :  { %v3325_v22 = vld [vmem:[%s5282_s0 + $0x106] ss:$8 sm:$0x3]  ;;  %v3356_v24 = vld [vmem:[%s5282_s0 + $0x67] ss:$8 sm:$0x3] }
  0x10   :  { %2987 = vset.pattern.permute.xlu1 %v3013_v7  ;;  %2989 = vset.pattern.permute.xlu0 %v3014_v8  ;;  %v3215_v7 = vld [vmem:[%s5282_s0 + $0x105] ss:$8 sm:$0x3]  ;;  %5498 = vst [vmem:[#allocation4_spill] sm:$0xff] %v3325_v22  ;;  %5501 = vst [vmem:[#allocation7_spill] sm:$0xff] %v3356_v24 }
  0x11   :  { %38 = vperm.xlu1 %2987, %v3050_v2   ;;  %46 = vperm.xlu0 %2989, %v3050_v2   ;;  %v3374_v8 = vld [vmem:[%s5282_s0 + $0xd6] ss:$8 sm:$0x3]  ;;  %v3379_v5 = vld [vmem:[%s5282_s0 + $0x107] ss:$8 sm:$0x3] }
  0x12   :  { %5503 = vst [vmem:[#allocation9_spill] sm:$0xff] %v3374_v8  ;;  %5504 = vst [vmem:[#allocation10_spill] sm:$0xff] %v3379_v5  ;;  %v3392_v4 = vld [vmem:[%s5282_s0 + $0x6] ss:$8 sm:$0x3] }
  0x13   :  { %5505 = vst [vmem:[#allocation11_spill] sm:$0xff] %v3392_v4  ;;  %v3397_v3 = vld [vmem:[%s5282_s0 + $0x37] ss:$8 sm:$0x3]  ;;  %v5633_v4 = vrot.slane %v3178_v57, %v3077_v27 }
  0x14   :  { %5506 = vst [vmem:[#allocation12_spill] sm:$0xff] %v3397_v3  ;;  %v3410_v1 = vld [vmem:[%s5282_s0 + $0x70] ss:$8 sm:$0x3]  ;;  %v5629_v3 = vrot.slane %v3173_v56, %v3077_v27 }
  0x15   :  { %2988 = vset.pattern.permute.xlu1 %v3015_v9  ;;  %2992 = vset.pattern.permute.xlu0 %v3016_v10  ;;  %v3338_v10 = vld [vmem:[%s5282_s0 + $0x5] ss:$8 sm:$0x3]  ;;  %v3343_v9 = vld [vmem:[%s5282_s0 + $0x36] ss:$8 sm:$0x3] }
  0x16   :  { %42 = vperm.xlu1 %2988, %v3050_v2   ;;  %58 = vperm.xlu0 %2992, %v3050_v2   ;;  %5499 = vst [vmem:[#allocation5_spill] sm:$0xff] %v3338_v10  ;;  %5500 = vst [vmem:[#allocation6_spill] sm:$0xff] %v3343_v9  ;;  %v3415_v62 = vld [vmem:[%s5282_s0 + $0xa6] ss:$8 sm:$0x3] }
  0x17   :  { %5507 = vst [vmem:[#allocation13_spill] sm:$0xff] %v3410_v1  ;;  %5508 = vst [vmem:[#allocation14_spill] sm:$0xff] %v3415_v62  ;;  %v3428_v61 = vld [vmem:[%s5282_s0 + $0xd7] ss:$8 sm:$0x3]  ;;  %v5625_v62 = vrot.slane %v3160_v51, %v3077_v27 }
  0x18   :  { %5509 = vst [vmem:[#allocation15_spill] sm:$0xff] %v3428_v61  ;;  %v3433_v60 = vld [vmem:[%s5282_s0 + $0x110] ss:$8 sm:$0x3] }
  0x19   :  { %5510 = vst [vmem:[#allocation16_spill] sm:$0xff] %v3433_v60  ;;  %v3446_v59 = vld [vmem:[%s5282_s0 + $0x7] ss:$8 sm:$0x3] }
  0x1a   :  { %2990 = vset.pattern.permute.xlu1 %v3017_v11  ;;  %2995 = vset.pattern.permute.xlu0 %v3018_v12  ;;  %v3228_v12 = vld [vmem:[%s5282_s0 + $0x1] ss:$8 sm:$0x3]  ;;  %5511 = vst [vmem:[#allocation17_spill] sm:$0xff] %v3446_v59 }
  0x1b   :  { %50 = vperm.xlu1 %2990, %v3050_v2   ;;  %70 = vperm.xlu0 %2995, %v3050_v2   ;;  %v3451_v55 = vld [vmem:[%s5282_s0 + $0x40] ss:$8 sm:$0x3]  ;;  %v3464_v54 = vld [vmem:[%s5282_s0 + $0x71] ss:$8 sm:$0x3]  ;;  %v5627_v1 = vrot.slane %v3228_v12, %v3077_v27 }
  0x1c   :  { %5512 = vst [vmem:[#allocation18_spill] sm:$0xff] %v3451_v55  ;;  %5513 = vst [vmem:[#allocation19_spill] sm:$0xff] %v3464_v54  ;;  %v3469_v53 = vld [vmem:[%s5282_s0 + $0xa7] ss:$8 sm:$0x3] }
  0x1d   :  { %5514 = vst [vmem:[#allocation20_spill] sm:$0xff] %v3469_v53  ;;  %v3482_v52 = vld [vmem:[%s5282_s0 + $0xe0] ss:$8 sm:$0x3]  ;;  %v5616_v53 = vrot.slane %v3124_v39, %v3075_v26 }
  0x1e   :  { %5515 = vst [vmem:[#allocation21_spill] sm:$0xff] %v3482_v52  ;;  %v3487_v49 = vld [vmem:[%s5282_s0 + $0x111] ss:$8 sm:$0x3]  ;;  %v5615_v52 = vrot.slane %v3119_v38, %v3077_v27 }
  0x1f   :  { %2991 = vset.pattern.permute.xlu1 %v3019_v13  ;;  %2998 = vset.pattern.permute.xlu0 %v3020_v14  ;;  %v3233_v13 = vld [vmem:[%s5282_s0 + $0x32] ss:$8 sm:$0x3]  ;;  %v3302_v14 = vld [vmem:[%s5282_s0 + $0x66] ss:$8 sm:$0x3] }
  0x20   :  { %54 = vperm.xlu1 %2991, %v3050_v2   ;;  %82 = vperm.xlu0 %2998, %v3050_v2   ;;  %5516 = vst [vmem:[#allocation22_spill] sm:$0xff] %v3487_v49  ;;  %v3500_v48 = vld [vmem:[%s5282_s0 + $0x10] ss:$8 sm:$0x3]  ;;  %v5605_v49 = vrot.slane %v3087_v29, %v3077_v27 }
  0x21   :  { %5517 = vst [vmem:[#allocation23_spill] sm:$0xff] %v3500_v48  ;;  %v3505_v47 = vld [vmem:[%s5282_s0 + $0x41] ss:$8 sm:$0x3] }
  0x22   :  { %5518 = vst [vmem:[#allocation24_spill] sm:$0xff] %v3505_v47  ;;  %v3518_v46 = vld [vmem:[%s5282_s0 + $0x72] ss:$8 sm:$0x3] }
  0x23   :  { %5519 = vst [vmem:[#allocation25_spill] sm:$0xff] %v3518_v46  ;;  %v3523_v43 = vld [vmem:[%s5282_s0 + $0xb0] ss:$8 sm:$0x3] }
  0x24   :  { %2993 = vset.pattern.permute.xlu1 %v3021_v15  ;;  %3001 = vset.pattern.permute.xlu0 %v3022_v16  ;;  %5520 = vst [vmem:[#allocation26_spill] sm:$0xff] %v3523_v43  ;;  %v3536_v42 = vld [vmem:[%s5282_s0 + $0xe1] ss:$8 sm:$0x3]  ;;  %v5603_v16 = vrot.slane %v3082_v28, %v3077_v27 }
  0x25   :  { %62 = vperm.xlu1 %2993, %v3050_v2   ;;  %94 = vperm.xlu0 %3001, %v3050_v2   ;;  %5521 = vst [vmem:[#allocation27_spill] sm:$0xff] %v3536_v42  ;;  %v3541_v41 = vld [vmem:[%s5282_s0 + $0x112] ss:$8 sm:$0x3] }
  0x26   :  { %5522 = vst [vmem:[#allocation28_spill] sm:$0xff] %v3541_v41  ;;  %v3554_v40 = vld [vmem:[%s5282_s0 + $0x11] ss:$8 sm:$0x3] }
  0x27   :  { %5523 = vst [vmem:[#allocation29_spill] sm:$0xff] %v3554_v40  ;;  %v3559_v37 = vld [vmem:[%s5282_s0 + $0x42] ss:$8 sm:$0x3] }
  0x28   :  { %5524 = vst [vmem:[#allocation30_spill] sm:$0xff] %v3559_v37  ;;  %v3572_v36 = vld [vmem:[%s5282_s0 + $0x73] ss:$8 sm:$0x3] }
  0x29   :  { %2994 = vset.pattern.permute.xlu1 %v3023_v17  ;;  %3004 = vset.pattern.permute.xlu0 %v3024_v18  ;;  %v3246_v18 = vld [vmem:[%s5282_s0 + $0x63] ss:$8 sm:$0x3]  ;;  %5525 = vst [vmem:[#allocation31_spill] sm:$0xff] %v3572_v36  ;;  %v5602_v17 = vrot.slane %v3082_v28, %v3075_v26  ;;  %v5607_v28 = vrot.slane %v3092_v30, %v3077_v27 }
  0x2a   :  { %66 = vperm.xlu1 %2994, %v3050_v2   ;;  %106 = vperm.xlu0 %3004, %v3050_v2   ;;  %v3577_v35 = vld [vmem:[%s5282_s0 + $0xb1] ss:$8 sm:$0x3]  ;;  %v3590_v46 = vld [vmem:[%s5282_s0 + $0xe2] ss:$8 sm:$0x3] }
  0x2b   :  { %5526 = vst [vmem:[#allocation32_spill] sm:$0xff] %v3577_v35  ;;  %5527 = vst [vmem:[#allocation33_spill] sm:$0xff] %v3590_v46  ;;  %v3595_v47 = vld [vmem:[%s5282_s0 + $0x113] ss:$8 sm:$0x3] }
  0x2c   :  { %5528 = vst [vmem:[#allocation34_spill] sm:$0xff] %v3595_v47  ;;  %v3608_v42 = vld [vmem:[%s5282_s0 + $0x12] ss:$8 sm:$0x3] }
  0x2d   :  { %5529 = vst [vmem:[#allocation35_spill] sm:$0xff] %v3608_v42  ;;  %v3613_v43 = vld [vmem:[%s5282_s0 + $0x43] ss:$8 sm:$0x3] }
  0x2e   :  { %2996 = vset.pattern.permute.xlu1 %v3025_v19  ;;  %3006 = vset.pattern.permute.xlu0 %v3026_v20  ;;  %v3251_v19 = vld [vmem:[%s5282_s0 + $0xa1] ss:$8 sm:$0x3]  ;;  %5530 = vst [vmem:[#allocation36_spill] sm:$0xff] %v3613_v43 }
  0x2f   :  { %74 = vperm.xlu1 %2996, %v3050_v2   ;;  %v3626_v40 = vld [vmem:[%s5282_s0 + $0x74] ss:$8 sm:$0x3]  ;;  %v3631_v41 = vld [vmem:[%s5282_s0 + $0xb2] ss:$8 sm:$0x3] }
  0x30   :  { %5531 = vst [vmem:[#allocation37_spill] sm:$0xff] %v3626_v40  ;;  %5532 = vst [vmem:[#allocation38_spill] sm:$0xff] %v3631_v41  ;;  %v3644_v36 = vld [vmem:[%s5282_s0 + $0xe3] ss:$8 sm:$0x3] }
  0x31   :  { %5533 = vst [vmem:[#allocation39_spill] sm:$0xff] %v3644_v36  ;;  %v3649_v37 = vld [vmem:[%s5282_s0 + $0x114] ss:$8 sm:$0x3] }
  0x32   :  { %5534 = vst [vmem:[#allocation40_spill] sm:$0xff] %v3649_v37  ;;  %v3662_v46 = vld [vmem:[%s5282_s0 + $0x13] ss:$8 sm:$0x3] }
  0x33   :  { %2997 = vset.pattern.permute.xlu1 %v3027_v21  ;;  %v3283_v21 = vld [vmem:[%s5282_s0 + $0x4] ss:$8 sm:$0x3]  ;;  %5535 = vst [vmem:[#allocation41_spill] sm:$0xff] %v3662_v46 }
  0x34   :  { %78 = vperm.xlu1 %2997, %v3050_v2   ;;  %v3667_v35 = vld [vmem:[%s5282_s0 + $0x44] ss:$8 sm:$0x3]  ;;  %v3680_v42 = vld [vmem:[%s5282_s0 + $0x75] ss:$8 sm:$0x3] }
  0x35   :  { %5536 = vst [vmem:[#allocation42_spill] sm:$0xff] %v3667_v35  ;;  %5537 = vst [vmem:[#allocation43_spill] sm:$0xff] %v3680_v42  ;;  %v3685_v47 = vld [vmem:[%s5282_s0 + $0xb3] ss:$8 sm:$0x3] }
  0x36   :  { %5538 = vst [vmem:[#allocation44_spill] sm:$0xff] %v3685_v47  ;;  %v3698_v40 = vld [vmem:[%s5282_s0 + $0xe4] ss:$8 sm:$0x3] }
  0x37   :  { %5539 = vst [vmem:[#allocation45_spill] sm:$0xff] %v3698_v40  ;;  %v3703_v43 = vld [vmem:[%s5282_s0 + $0x115] ss:$8 sm:$0x3] }
  0x38   :  { %2999 = vset.pattern.permute.xlu1 %v3028_v23  ;;  %v3361_v23 = vld [vmem:[%s5282_s0 + $0xa5] ss:$8 sm:$0x3]  ;;  %5540 = vst [vmem:[#allocation46_spill] sm:$0xff] %v3703_v43 }
  0x39   :  { %86 = vperm.xlu1 %2999, %v3050_v2   ;;  %5502 = vst [vmem:[#allocation8_spill] sm:$0xff] %v3361_v23  ;;  %v3716_v36 = vld [vmem:[%s5282_s0 + $0x14] ss:$8 sm:$0x3] }
  0x3a   :  { %5541 = vst [vmem:[#allocation47_spill] sm:$0xff] %v3716_v36  ;;  %v3721_v41 = vld [vmem:[%s5282_s0 + $0x45] ss:$8 sm:$0x3] }
  0x3b   :  { %5542 = vst [vmem:[#allocation48_spill] sm:$0xff] %v3721_v41  ;;  %v3734_v46 = vld [vmem:[%s5282_s0 + $0x76] ss:$8 sm:$0x3] }
  0x3c   :  { %5543 = vst [vmem:[#allocation49_spill] sm:$0xff] %v3734_v46  ;;  %v3739_v37 = vld [vmem:[%s5282_s0 + $0xb4] ss:$8 sm:$0x3] }
  0x3d   :  { %3000 = vset.pattern.permute.xlu1 %v3029_v25  ;;  %v3264_v25 = vld [vmem:[%s5282_s0 + $0xd2] ss:$8 sm:$0x3]  ;;  %5544 = vst [vmem:[#allocation50_spill] sm:$0xff] %v3739_v37 }
  0x3e   :  { %90 = vperm.xlu1 %3000, %v3050_v2   ;;  %v3752_v42 = vld [vmem:[%s5282_s0 + $0xe5] ss:$8 sm:$0x3]  ;;  %v3757_v35 = vld [vmem:[%s5282_s0 + $0x116] ss:$8 sm:$0x3] }
  0x3f   :  { %5545 = vst [vmem:[#allocation51_spill] sm:$0xff] %v3752_v42  ;;  %5546 = vst [vmem:[#allocation52_spill] sm:$0xff] %v3757_v35  ;;  %v3770_v40 = vld [vmem:[%s5282_s0 + $0x15] ss:$8 sm:$0x3] }
  0x40   :  { %5547 = vst [vmem:[#allocation53_spill] sm:$0xff] %v3770_v40  ;;  %v3775_v47 = vld [vmem:[%s5282_s0 + $0x46] ss:$8 sm:$0x3] }
  0x41   :  { %5548 = vst [vmem:[#allocation54_spill] sm:$0xff] %v3775_v47  ;;  %v3788_v36 = vld [vmem:[%s5282_s0 + $0x77] ss:$8 sm:$0x3] }
  0x42   :  { %3002 = vset.pattern.permute.xlu1 %v3030_v32  ;;  %v3269_v32 = vld [vmem:[%s5282_s0 + $0x103] ss:$8 sm:$0x3]  ;;  %5549 = vst [vmem:[#allocation55_spill] sm:$0xff] %v3788_v36 }
  0x43   :  { %98 = vperm.xlu1 %3002, %v3050_v2   ;;  %v3793_v43 = vld [vmem:[%s5282_s0 + $0xb5] ss:$8 sm:$0x3]  ;;  %v3806_v46 = vld [vmem:[%s5282_s0 + $0xe6] ss:$8 sm:$0x3] }
  0x44   :  { %5550 = vst [vmem:[#allocation56_spill] sm:$0xff] %v3793_v43  ;;  %5551 = vst [vmem:[#allocation57_spill] sm:$0xff] %v3806_v46  ;;  %v3811_v41 = vld [vmem:[%s5282_s0 + $0x117] ss:$8 sm:$0x3] }
  0x45   :  { %5552 = vst [vmem:[#allocation58_spill] sm:$0xff] %v3811_v41  ;;  %v3824_v42 = vld [vmem:[%s5282_s0 + $0x16] ss:$8 sm:$0x3] }
  0x46   :  { %5553 = vst [vmem:[#allocation59_spill] sm:$0xff] %v3824_v42  ;;  %v3829_v37 = vld [vmem:[%s5282_s0 + $0x47] ss:$8 sm:$0x3] }
  0x47   :  { %3003 = vset.pattern.permute.xlu1 %v3031_v58  ;;  %v3320_v58 = vld [vmem:[%s5282_s0 + $0xd5] ss:$8 sm:$0x3]  ;;  %5554 = vst [vmem:[#allocation60_spill] sm:$0xff] %v3829_v37 }
  0x48   :  { %102 = vperm.xlu1 %3003, %v3050_v2   ;;  %5497 = vst [vmem:[#allocation3_spill] sm:$0xff] %v3320_v58  ;;  %v3842_v40 = vld [vmem:[%s5282_s0 + $0x80] ss:$8 sm:$0x3] }
  0x49   :  { %5555 = vst [vmem:[#allocation61_spill] sm:$0xff] %v3842_v40  ;;  %v3847_v35 = vld [vmem:[%s5282_s0 + $0xb6] ss:$8 sm:$0x3] }
  0x4a   :  { %5556 = vst [vmem:[#allocation62_spill] sm:$0xff] %v3847_v35  ;;  %v3860_v36 = vld [vmem:[%s5282_s0 + $0xe7] ss:$8 sm:$0x3] }
  0x4b   :  { %5557 = vst [vmem:[#allocation63_spill] sm:$0xff] %v3860_v36  ;;  %v3865_v47 = vld [vmem:[%s5282_s0 + $0x120] ss:$8 sm:$0x3] }
  0x4c   :  { %3005 = vset.pattern.permute.xlu1 %v3026_v20  ;;  %v3288_v20 = vld [vmem:[%s5282_s0 + $0x35] ss:$8 sm:$0x3]  ;;  %5558 = vst [vmem:[#allocation64_spill] sm:$0xff] %v3865_v47 }
  0x4d   :  { %110 = vperm.xlu1 %3005, %v3050_v2   ;;  %v3307_v2 = vld [vmem:[%s5282_s0 + $0xa4] ss:$8 sm:$0x3]  ;;  %v3878_v46 = vld [vmem:[%s5282_s0 + $0x17] ss:$8 sm:$0x3] }
  0x4e   :  { %5496 = vst [vmem:[#allocation2_spill] sm:$0xff] %v3307_v2  ;;  %5559 = vst [vmem:[#allocation65_spill] sm:$0xff] %v3878_v46  ;;  %v3883_v43 = vld [vmem:[%s5282_s0 + $0x50] ss:$8 sm:$0x3] }
  0x4f   :  { %5560 = vst [vmem:[#allocation66_spill] sm:$0xff] %v3883_v43  ;;  %v3896_v42 = vld [vmem:[%s5282_s0 + $0x81] ss:$8 sm:$0x3] }
  0x50   :  { %5561 = vst [vmem:[#allocation67_spill] sm:$0xff] %v3896_v42  ;;  %v3901_v41 = vld [vmem:[%s5282_s0 + $0xb7] ss:$8 sm:$0x3] }
  0x51   :  { %5562 = vst [vmem:[#allocation68_spill] sm:$0xff] %v3901_v41  ;;  %v3914_v40 = vld [vmem:[%s5282_s0 + $0xf0] ss:$8 sm:$0x3] }
  0x52   :  { %5563 = vst [vmem:[#allocation69_spill] sm:$0xff] %v3914_v40  ;;  %v3919_v37 = vld [vmem:[%s5282_s0 + $0x121] ss:$8 sm:$0x3] }
  0x53   :  { %5564 = vst [vmem:[#allocation70_spill] sm:$0xff] %v3919_v37  ;;  %v3932_v36 = vld [vmem:[%s5282_s0 + $0x20] ss:$8 sm:$0x3] }
  0x54   :  { %5565 = vst [vmem:[#allocation71_spill] sm:$0xff] %v3932_v36  ;;  %v3937_v35 = vld [vmem:[%s5282_s0 + $0x51] ss:$8 sm:$0x3] }
  0x55   :  { %5566 = vst [vmem:[#allocation72_spill] sm:$0xff] %v3937_v35  ;;  %v3950_v46 = vld [vmem:[%s5282_s0 + $0x82] ss:$8 sm:$0x3] }
  0x56   :  { %5567 = vst [vmem:[#allocation73_spill] sm:$0xff] %v3950_v46  ;;  %v3955_v47 = vld [vmem:[%s5282_s0 + $0xc0] ss:$8 sm:$0x3] }
  0x57   :  { %5568 = vst [vmem:[#allocation74_spill] sm:$0xff] %v3955_v47  ;;  %v3968_v42 = vld [vmem:[%s5282_s0 + $0xf1] ss:$8 sm:$0x3] }
  0x58   :  { %5569 = vst [vmem:[#allocation75_spill] sm:$0xff] %v3968_v42  ;;  %v3973_v43 = vld [vmem:[%s5282_s0 + $0x122] ss:$8 sm:$0x3] }
  0x59   :  { %5570 = vst [vmem:[#allocation76_spill] sm:$0xff] %v3973_v43  ;;  %v3986_v40 = vld [vmem:[%s5282_s0 + $0x21] ss:$8 sm:$0x3] }
  0x5a   :  { %5571 = vst [vmem:[#allocation77_spill] sm:$0xff] %v3986_v40  ;;  %v3991_v41 = vld [vmem:[%s5282_s0 + $0x52] ss:$8 sm:$0x3] }
  0x5b   :  { %5572 = vst [vmem:[#allocation78_spill] sm:$0xff] %v3991_v41  ;;  %v4004_v36 = vld [vmem:[%s5282_s0 + $0x83] ss:$8 sm:$0x3] }
  0x5c   :  { %5573 = vst [vmem:[#allocation79_spill] sm:$0xff] %v4004_v36  ;;  %v4009_v37 = vld [vmem:[%s5282_s0 + $0xc1] ss:$8 sm:$0x3] }
  0x5d   :  { %5574 = vst [vmem:[#allocation80_spill] sm:$0xff] %v4009_v37  ;;  %v4022_v46 = vld [vmem:[%s5282_s0 + $0xf2] ss:$8 sm:$0x3] }
  0x5e   :  { %5575 = vst [vmem:[#allocation81_spill] sm:$0xff] %v4022_v46  ;;  %v4027_v35 = vld [vmem:[%s5282_s0 + $0x123] ss:$8 sm:$0x3] }
  0x5f   :  { %5576 = vst [vmem:[#allocation82_spill] sm:$0xff] %v4027_v35  ;;  %v4040_v42 = vld [vmem:[%s5282_s0 + $0x22] ss:$8 sm:$0x3] }
  0x60   :  { %5577 = vst [vmem:[#allocation83_spill] sm:$0xff] %v4040_v42  ;;  %v4045_v47 = vld [vmem:[%s5282_s0 + $0x53] ss:$8 sm:$0x3] }
  0x61   :  { %5578 = vst [vmem:[#allocation84_spill] sm:$0xff] %v4045_v47  ;;  %v4058_v40 = vld [vmem:[%s5282_s0 + $0x84] ss:$8 sm:$0x3] }
  0x62   :  { %5579 = vst [vmem:[#allocation85_spill] sm:$0xff] %v4058_v40  ;;  %v4063_v43 = vld [vmem:[%s5282_s0 + $0xc2] ss:$8 sm:$0x3] }
  0x63   :  { %5580 = vst [vmem:[#allocation86_spill] sm:$0xff] %v4063_v43  ;;  %v4076_v36 = vld [vmem:[%s5282_s0 + $0xf3] ss:$8 sm:$0x3] }
  0x64   :  { %5581 = vst [vmem:[#allocation87_spill] sm:$0xff] %v4076_v36  ;;  %v4081_v41 = vld [vmem:[%s5282_s0 + $0x124] ss:$8 sm:$0x3] }
  0x65   :  { %5582 = vst [vmem:[#allocation88_spill] sm:$0xff] %v4081_v41  ;;  %v4094_v46 = vld [vmem:[%s5282_s0 + $0x23] ss:$8 sm:$0x3] }
  0x66   :  { %5583 = vst [vmem:[#allocation89_spill] sm:$0xff] %v4094_v46  ;;  %v4099_v37 = vld [vmem:[%s5282_s0 + $0x54] ss:$8 sm:$0x3] }
  0x67   :  { %5584 = vst [vmem:[#allocation90_spill] sm:$0xff] %v4099_v37  ;;  %v4112_v42 = vld [vmem:[%s5282_s0 + $0x85] ss:$8 sm:$0x3] }
  0x68   :  { %5585 = vst [vmem:[#allocation91_spill] sm:$0xff] %v4112_v42  ;;  %v4117_v35 = vld [vmem:[%s5282_s0 + $0xc3] ss:$8 sm:$0x3] }
  0x69   :  { %5586 = vst [vmem:[#allocation92_spill] sm:$0xff] %v4117_v35  ;;  %v4130_v40 = vld [vmem:[%s5282_s0 + $0xf4] ss:$8 sm:$0x3] }
  0x6a   :  { %5587 = vst [vmem:[#allocation93_spill] sm:$0xff] %v4130_v40  ;;  %v4135_v47 = vld [vmem:[%s5282_s0 + $0x125] ss:$8 sm:$0x3] }
  0x6b   :  { %5588 = vst [vmem:[#allocation94_spill] sm:$0xff] %v4135_v47  ;;  %v4148_v36 = vld [vmem:[%s5282_s0 + $0x24] ss:$8 sm:$0x3] }
  0x6c   :  { %5589 = vst [vmem:[#allocation95_spill] sm:$0xff] %v4148_v36  ;;  %v4153_v43 = vld [vmem:[%s5282_s0 + $0x55] ss:$8 sm:$0x3] }
  0x6d   :  { %5590 = vst [vmem:[#allocation96_spill] sm:$0xff] %v4153_v43  ;;  %v4166_v46 = vld [vmem:[%s5282_s0 + $0x86] ss:$8 sm:$0x3] }
  0x6e   :  { %5591 = vst [vmem:[#allocation97_spill] sm:$0xff] %v4166_v46  ;;  %v4171_v41 = vld [vmem:[%s5282_s0 + $0xc4] ss:$8 sm:$0x3] }
  0x6f   :  { %5592 = vst [vmem:[#allocation98_spill] sm:$0xff] %v4171_v41  ;;  %v4184_v42 = vld [vmem:[%s5282_s0 + $0xf5] ss:$8 sm:$0x3] }
  0x70   :  { %5593 = vst [vmem:[#allocation99_spill] sm:$0xff] %v4184_v42  ;;  %v4189_v37 = vld [vmem:[%s5282_s0 + $0x126] ss:$8 sm:$0x3]  ;;  %v5608_v42 = vrot.slane %v3097_v31, %v3075_v26 }
  0x71   :  { %5594 = vst [vmem:[#allocation100_spill] sm:$0xff] %v4189_v37  ;;  %v4202_v40 = vld [vmem:[%s5282_s0 + $0x25] ss:$8 sm:$0x3]  ;;  %v5604_v37 = vrot.slane %v3087_v29, %v3075_v26 }
  0x72   :  { %5595 = vst [vmem:[#allocation101_spill] sm:$0xff] %v4202_v40  ;;  %v4207_v35 = vld [vmem:[%s5282_s0 + $0x56] ss:$8 sm:$0x3] }
  0x73   :  { %5596 = vst [vmem:[#allocation102_spill] sm:$0xff] %v4207_v35  ;;  %v4220_v36 = vld [vmem:[%s5282_s0 + $0x87] ss:$8 sm:$0x3] }
  0x74   :  { %5597 = vst [vmem:[#allocation103_spill] sm:$0xff] %v4220_v36  ;;  %v4225_v47 = vld [vmem:[%s5282_s0 + $0xc5] ss:$8 sm:$0x3] }
  0x75   :  { %5598 = vst [vmem:[#allocation104_spill] sm:$0xff] %v4225_v47  ;;  %v4238_v46 = vld [vmem:[%s5282_s0 + $0xf6] ss:$8 sm:$0x3] }
  0x76   :  { %5599 = vst [vmem:[#allocation105_spill] sm:$0xff] %v4238_v46  ;;  %v4243_v43 = vld [vmem:[%s5282_s0 + $0x127] ss:$8 sm:$0x3] }
  0x77   :  { %5600 = vst [vmem:[#allocation106_spill] sm:$0xff] %v4243_v43  ;;  %v4256_v48 = vld [vmem:[%s5282_s0 + $0x26] ss:$8 sm:$0x3]  ;;  %v5612_v43 = vrot.slane %v3107_v34, %v3075_v26 }
  0x78   :  { %5601 = vst [vmem:[#allocation107_spill] sm:$0xff] %v4256_v48  ;;  %v5614_v48 = vrot.slane %v3119_v38, %v3075_v26  ;;  %v5620_v38 = vrot.slane %v3142_v45, %v3075_v26 }
  0x81   :  { %v23_v11 = vpop.permute.xlu1 %22  ;;  %v15_v41 = vpop.permute.xlu0 %14 }
  0x82   :  { %v159_v35 = vmul.f32 %v5602_v17, %v23_v11  ;;  %v160_v15 = vmul.f32 %v5603_v16, %v23_v11  ;;  %v592_v46 = vmul.f32 %v5604_v37, %v23_v11  ;;  %v593_v47 = vmul.f32 %v5605_v49, %v23_v11 }
  0x83   :  { %v5606_v17 = vrot.slane %v3092_v30, %v3075_v26  ;;  %v4298_v16 = vmul.f32 %v5607_v28, %v23_v11  ;;  %v4303_v40 = vmul.f32 %v5608_v42, %v23_v11  ;;  %v5609_v37 = vrot.slane %v3097_v31, %v3077_v27 }
  0x84   :  { %v5610_v49 = vrot.slane %v3102_v33, %v3075_v26  ;;  %v5611_v30 = vrot.slane %v3102_v33, %v3077_v27  ;;  %v4323_v42 = vmul.f32 %v5612_v43, %v23_v11  ;;  %v5613_v31 = vrot.slane %v3107_v34, %v3077_v27 }
  0x85   :  { %v4293_v36 = vmul.f32 %v5606_v17, %v23_v11  ;;  %v4308_v29 = vmul.f32 %v5609_v37, %v23_v11  ;;  %v126_v33 = vmul.f32 %v5615_v52, %v15_v41  ;;  %v558_v54 = vmul.f32 %v5616_v53, %v15_v41 }
  0x86   :  { %v4313_v17 = vmul.f32 %v5610_v49, %v23_v11  ;;  %v4318_v28 = vmul.f32 %v5611_v30, %v23_v11  ;;  %v4328_v37 = vmul.f32 %v5613_v31, %v23_v11  ;;  %v125_v49 = vmul.f32 %v5614_v48, %v15_v41  ;;  %v19_v30 = vpop.permute.xlu0 %18  ;;  %v27_v59 = vpop.permute.xlu1 %26 }
  0x87   :  { %v5617_v43 = vrot.slane %v3124_v39, %v3077_v27  ;;  %v5618_v34 = vrot.slane %v3137_v44, %v3075_v26  ;;  %v5619_v48 = vrot.slane %v3137_v44, %v3077_v27  ;;  %v1428_v52 = vmul.f32 %v5620_v38, %v15_v41 }
  0x88   :  { %v5621_v53 = vrot.slane %v3142_v45, %v3077_v27  ;;  %v5622_v39 = vrot.slane %v3155_v50, %v3075_v26  ;;  %v5624_v44 = vrot.slane %v3160_v51, %v3075_v26  ;;  %v2297_v38 = vmul.f32 %v5625_v62, %v15_v41 }
  0x89   :  { %v559_v55 = vmul.f32 %v5617_v43, %v15_v41  ;;  %v993_v11 = vmul.f32 %v5618_v34, %v15_v41  ;;  %v994_v31 = vmul.f32 %v5619_v48, %v15_v41  ;;  %v5623_v34 = vrot.slane %v3155_v50, %v3077_v27 }
  0x8a   :  { %v1429_v60 = vmul.f32 %v5621_v53, %v15_v41  ;;  %v1861_v43 = vmul.f32 %v5622_v39, %v15_v41  ;;  %v2296_v48 = vmul.f32 %v5624_v44, %v15_v41  ;;  %v5626_v45 = vrot.slane %v3228_v12, %v3075_v26 }
  0x8b   :  { %v1862_v61 = vmul.f32 %v5623_v34, %v15_v41  ;;  %v143_v39 = vmul.f32 %v5627_v1, %v19_v30  ;;  %v5628_v50 = vrot.slane %v3173_v56, %v3075_v26  ;;  %v177_v44 = vmul.f32 %v5629_v3, %v27_v59  ;;  %v31_v9 = vpop.permute.xlu1 %30 }
  0x8c   :  { %v142_v53 = vmul.f32 %v5626_v45, %v19_v30  ;;  %v5630_v51 = vrot.slane %v3233_v13, %v3075_v26  ;;  %v5631_v62 = vrot.slane %v3233_v13, %v3077_v27  ;;  %v5632_v12 = vrot.slane %v3178_v57, %v3075_v26 }
  0x8d   :  { %v176_v34 = vmul.f32 %v5628_v50, %v27_v59  ;;  %v610_v50 = vmul.f32 %v5633_v4, %v27_v59  ;;  %v145_v8 = vadd.f32 %v143_v39, %v126_v33  ;;  %v5634_v56 = vrot.slane %v3246_v18, %v3075_v26 }
  0x8e   :  { %v575_v41 = vmul.f32 %v5630_v51, %v19_v30  ;;  %v576_v45 = vmul.f32 %v5631_v62, %v19_v30  ;;  %v609_v1 = vmul.f32 %v5632_v12, %v27_v59  ;;  %v144_v5 = vadd.f32 %v142_v53, %v125_v49 }
  0x8f   :  { %v1010_v3 = vmul.f32 %v5634_v56, %v19_v30  ;;  %v5635_v51 = vrot.slane %v3246_v18, %v3077_v27  ;;  %v5636_v13 = vrot.slane %v3251_v19, %v3075_v26  ;;  %v5637_v12 = vrot.slane %v3251_v19, %v3077_v27 }
  0x90   :  { %v5638_v57 = vrot.slane %v3191_v63, %v3075_v26  ;;  %v5639_v49 = vrot.slane %v3191_v63, %v3077_v27  ;;  %v161_v53 = vadd.f32 %v159_v35, %v144_v5  ;;  %v162_v39 = vadd.f32 %v160_v15, %v145_v8 }
  0x91   :  { %v1011_v23 = vmul.f32 %v5635_v51, %v19_v30  ;;  %v1445_v62 = vmul.f32 %v5636_v13, %v19_v30  ;;  %v1446_v24 = vmul.f32 %v5637_v12, %v19_v30  ;;  %v5640_v18 = vrot.slane %v3196_v0, %v3075_v26 }
  0x92   :  { %v1044_v4 = vmul.f32 %v5638_v57, %v27_v59  ;;  %v1045_v33 = vmul.f32 %v5639_v49, %v27_v59  ;;  %v5641_v51 = vrot.slane %v3196_v0, %v3077_v27  ;;  %v577_v19 = vadd.f32 %v575_v41, %v558_v54 }
  0x93   :  { %v1479_v56 = vmul.f32 %v5640_v18, %v27_v59  ;;  %v578_v12 = vadd.f32 %v576_v45, %v559_v55  ;;  %v5642_v57 = vrot.slane %v3264_v25, %v3075_v26  ;;  %v5643_v63 = vrot.slane %v3264_v25, %v3077_v27 }
  0x94   :  { %v1480_v13 = vmul.f32 %v5641_v51, %v27_v59  ;;  %v5644_v5 = vrot.slane %v3269_v32, %v3075_v26  ;;  %v5645_v15 = vrot.slane %v3269_v32, %v3077_v27  ;;  %v1012_v49 = vadd.f32 %v1010_v3, %v993_v11 }
  0x95   :  { %v1878_v10 = vmul.f32 %v5642_v57, %v19_v30  ;;  %v1879_v35 = vmul.f32 %v5643_v63, %v19_v30  ;;  %v1013_v54 = vadd.f32 %v1011_v23, %v994_v31  ;;  %v1447_v55 = vadd.f32 %v1445_v62, %v1428_v52 }
  0x96   :  { %v2313_v8 = vmul.f32 %v5644_v5, %v19_v30  ;;  %v2314_v0 = vmul.f32 %v5645_v15, %v19_v30  ;;  %v1448_v41 = vadd.f32 %v1446_v24, %v1429_v60  ;;  %v178_v45 = vadd.f32 %v176_v34, %v161_v53 }
  0x97   :  { %v179_v18 = vadd.f32 %v177_v44, %v162_v39  ;;  %v5646_v51 = vrot.slane %v3283_v21, %v3075_v26  ;;  %v5647_v25 = vrot.slane %v3283_v21, %v3077_v27  ;;  %v594_v22 = vadd.f32 %v592_v46, %v577_v19 }
  0x98   :  { %v595_v5 = vadd.f32 %v593_v47, %v578_v12  ;;  %v1880_v58 = vadd.f32 %v1878_v10, %v1861_v43  ;;  %v1881_v2 = vadd.f32 %v1879_v35, %v1862_v61  ;;  %v5648_v32 = vrot.slane %v3210_v6, %v3075_v26  ;;  %v5659_v12 = vld [vmem:[#allocation3_spill] sm:$0xff] }
  0x99   :  { %v193_v57 = vmul.f32 %v5646_v51, %v31_v9  ;;  %v194_v63 = vmul.f32 %v5647_v25, %v31_v9  ;;  %v5649_v60 = vrot.slane %v3210_v6, %v3077_v27  ;;  %v2315_v30 = vadd.f32 %v2313_v8, %v2296_v48 }
  0x9a   :  { %v1912_v23 = vmul.f32 %v5648_v32, %v27_v59  ;;  %v2316_v11 = vadd.f32 %v2314_v0, %v2297_v38  ;;  %v5650_v31 = vrot.slane %v3215_v7, %v3075_v26  ;;  %v5651_v46 = vrot.slane %v3215_v7, %v3077_v27  ;;  %v5662_v0 = vld [vmem:[#allocation4_spill] sm:$0xff] }
  0x9b   :  { %v1913_v24 = vmul.f32 %v5649_v60, %v27_v59  ;;  %v1029_v61 = vadd.f32 %v4293_v36, %v1012_v49  ;;  %v1030_v10 = vadd.f32 %v4298_v16, %v1013_v54  ;;  %v1464_v21 = vadd.f32 %v4303_v40, %v1447_v55 }
  0x9c   :  { %v2347_v52 = vmul.f32 %v5650_v31, %v27_v59  ;;  %v2348_v47 = vmul.f32 %v5651_v46, %v27_v59  ;;  %v1465_v43 = vadd.f32 %v4308_v29, %v1448_v41  ;;  %v195_v6 = vadd.f32 %v193_v57, %v178_v45 }
  0x9d   :  { %v196_v34 = vadd.f32 %v194_v63, %v179_v18  ;;  %v1897_v48 = vadd.f32 %v4313_v17, %v1880_v58  ;;  %v1898_v38 = vadd.f32 %v4318_v28, %v1881_v2  ;;  %v611_v44 = vadd.f32 %v609_v1, %v594_v22  ;;  %v5665_v18 = vld [vmem:[#allocation5_spill] sm:$0xff] }
  0x9e   :  { %v612_v3 = vadd.f32 %v610_v50, %v595_v5  ;;  %v2332_v62 = vadd.f32 %v4323_v42, %v2315_v30  ;;  %v2333_v59 = vadd.f32 %v4328_v37, %v2316_v11  ;;  %v5652_v36 = vrot.slane %v3288_v20, %v3075_v26  ;;  %v5656_v37 = vld [vmem:[#allocation2_spill] sm:$0xff] }
  0x9f   :  { %v5653_v40 = vrot.slane %v3288_v20, %v3077_v27  ;;  %v1046_v29 = vadd.f32 %v1044_v4, %v1029_v61  ;;  %v1047_v53 = vadd.f32 %v1045_v33, %v1030_v10  ;;  %v5654_v58 = vrot.slane %v3302_v14, %v3075_v26  ;;  %v35_v4 = vpop.permute.xlu0 %34  ;;  %v5668_v5 = vld [vmem:[#allocation6_spill] sm:$0xff] }
  0xa0   :  { %v626_v7 = vmul.f32 %v5652_v36, %v31_v9  ;;  %v5655_v22 = vrot.slane %v3302_v14, %v3077_v27  ;;  %v1481_v28 = vadd.f32 %v1479_v56, %v1464_v21  ;;  %v1482_v42 = vadd.f32 %v1480_v13, %v1465_v43 }
  0xa1   :  { %v627_v16 = vmul.f32 %v5653_v40, %v31_v9  ;;  %v1061_v2 = vmul.f32 %v5654_v58, %v31_v9  ;;  %v5657_v1 = vrot.slane %v5656_v37, %v3075_v26  ;;  %v5658_v20 = vrot.slane %v5656_v37, %v3077_v27 }
  0xa2   :  { %v1062_v17 = vmul.f32 %v5655_v22, %v31_v9  ;;  %v1914_v33 = vadd.f32 %v1912_v23, %v1897_v48  ;;  %v1915_v19 = vadd.f32 %v1913_v24, %v1898_v38  ;;  %v5660_v35 = vrot.slane %v5659_v12, %v3075_v26  ;;  %v5677_v22 = vld [vmem:[#allocation9_spill] sm:$0xff] }
  0xa3   :  { %v1496_v50 = vmul.f32 %v5657_v1, %v31_v9  ;;  %v1497_v39 = vmul.f32 %v5658_v20, %v31_v9  ;;  %v5661_v14 = vrot.slane %v5659_v12, %v3077_v27  ;;  %v2349_v13 = vadd.f32 %v2347_v52, %v2332_v62 }
  0xa4   :  { %v1929_v8 = vmul.f32 %v5660_v35, %v31_v9  ;;  %v2350_v15 = vadd.f32 %v2348_v47, %v2333_v59  ;;  %v5663_v49 = vrot.slane %v5662_v0, %v3075_v26  ;;  %v5664_v55 = vrot.slane %v5662_v0, %v3077_v27 }
  0xa5   :  { %v1930_v56 = vmul.f32 %v5661_v14, %v31_v9  ;;  %v628_v45 = vadd.f32 %v626_v7, %v611_v44  ;;  %v5666_v51 = vrot.slane %v5665_v18, %v3075_v26  ;;  %v5667_v25 = vrot.slane %v5665_v18, %v3077_v27  ;;  %v5674_v7 = vld [vmem:[#allocation8_spill] sm:$0xff]  ;;  %v5692_v18 = vld [vmem:[#allocation14_spill] sm:$0xff] }
  0xa6   :  { %v2364_v54 = vmul.f32 %v5663_v49, %v31_v9  ;;  %v2365_v41 = vmul.f32 %v5664_v55, %v31_v9  ;;  %v5669_v32 = vrot.slane %v5668_v5, %v3075_v26  ;;  %v629_v60 = vadd.f32 %v627_v16, %v612_v3  ;;  %v5671_v9 = vld [vmem:[#allocation7_spill] sm:$0xff]  ;;  %v39_v3 = vpop.permute.xlu1 %38  ;;  %v5686_v14 = vld [vmem:[#allocation12_spill] sm:$0xff] }
  0xa7   :  { %v210_v57 = vmul.f32 %v5666_v51, %v35_v4  ;;  %v211_v63 = vmul.f32 %v5667_v25, %v35_v4  ;;  %v1063_v24 = vadd.f32 %v1061_v2, %v1046_v29  ;;  %v5670_v30 = vrot.slane %v5668_v5, %v3077_v27 }
  0xa8   :  { %v643_v23 = vmul.f32 %v5669_v32, %v35_v4  ;;  %v5672_v31 = vrot.slane %v5671_v9, %v3075_v26  ;;  %v1064_v46 = vadd.f32 %v1062_v17, %v1047_v53  ;;  %v1498_v47 = vadd.f32 %v1496_v50, %v1481_v28 }
  0xa9   :  { %v644_v11 = vmul.f32 %v5670_v30, %v35_v4  ;;  %v1499_v61 = vadd.f32 %v1497_v39, %v1482_v42  ;;  %v1931_v10 = vadd.f32 %v1929_v8, %v1914_v33  ;;  %v1932_v21 = vadd.f32 %v1930_v56, %v1915_v19  ;;  %v5683_v39 = vld [vmem:[#allocation11_spill] sm:$0xff] }
  0xaa   :  { %v1078_v52 = vmul.f32 %v5672_v31, %v35_v4  ;;  %v2366_v43 = vadd.f32 %v2364_v54, %v2349_v13  ;;  %v2367_v48 = vadd.f32 %v2365_v41, %v2350_v15  ;;  %v5673_v38 = vrot.slane %v5671_v9, %v3077_v27  ;;  %v5689_v54 = vld [vmem:[#allocation13_spill] sm:$0xff] }
  0xab   :  { %v212_v62 = vadd.f32 %v210_v57, %v195_v6  ;;  %v213_v59 = vadd.f32 %v211_v63, %v196_v34  ;;  %v645_v36 = vadd.f32 %v643_v23, %v628_v45  ;;  %v5675_v40 = vrot.slane %v5674_v7, %v3075_v26  ;;  %v5680_v34 = vld [vmem:[#allocation10_spill] sm:$0xff]  ;;  %v5695_v23 = vld [vmem:[#allocation15_spill] sm:$0xff] }
  0xac   :  { %v1079_v44 = vmul.f32 %v5673_v38, %v35_v4  ;;  %v646_v29 = vadd.f32 %v644_v11, %v629_v60  ;;  %v1080_v53 = vadd.f32 %v1078_v52, %v1063_v24  ;;  %v5676_v58 = vrot.slane %v5674_v7, %v3077_v27  ;;  %v43_v52 = vpop.permute.xlu1 %42 }
  0xad   :  { %v1513_v16 = vmul.f32 %v5675_v40, %v35_v4  ;;  %v5678_v17 = vrot.slane %v5677_v22, %v3075_v26  ;;  %v5679_v42 = vrot.slane %v5677_v22, %v3077_v27  ;;  %v5681_v37 = vrot.slane %v5680_v34, %v3075_v26 }
  0xae   :  { %v1514_v2 = vmul.f32 %v5676_v58, %v35_v4  ;;  %v5682_v50 = vrot.slane %v5680_v34, %v3077_v27  ;;  %v5684_v33 = vrot.slane %v5683_v39, %v3075_v26  ;;  %v1081_v12 = vadd.f32 %v1079_v44, %v1064_v46 }
  0xaf   :  { %v1946_v28 = vmul.f32 %v5678_v17, %v35_v4  ;;  %v1947_v6 = vmul.f32 %v5679_v42, %v35_v4  ;;  %v2381_v1 = vmul.f32 %v5681_v37, %v35_v4  ;;  %v5685_v35 = vrot.slane %v5683_v39, %v3077_v27  ;;  %v5704_v17 = vld [vmem:[#allocation18_spill] sm:$0xff]  ;;  %v5707_v37 = vld [vmem:[#allocation19_spill] sm:$0xff] }
  0xb0   :  { %v2382_v20 = vmul.f32 %v5682_v50, %v35_v4  ;;  %v227_v19 = vmul.f32 %v5684_v33, %v39_v3  ;;  %v5687_v56 = vrot.slane %v5686_v14, %v3075_v26  ;;  %v5688_v15 = vrot.slane %v5686_v14, %v3077_v27  ;;  %v47_v50 = vpop.permute.xlu0 %46 }
  0xb1   :  { %v228_v8 = vmul.f32 %v5685_v35, %v39_v3  ;;  %v1515_v49 = vadd.f32 %v1513_v16, %v1498_v47  ;;  %v5690_v4 = vrot.slane %v5689_v54, %v3075_v26  ;;  %v5691_v41 = vrot.slane %v5689_v54, %v3077_v27  ;;  %v5698_v16 = vld [vmem:[#allocation16_spill] sm:$0xff] }
  0xb2   :  { %v660_v13 = vmul.f32 %v5687_v56, %v39_v3  ;;  %v661_v0 = vmul.f32 %v5688_v15, %v39_v3  ;;  %v5693_v51 = vrot.slane %v5692_v18, %v3075_v26  ;;  %v1516_v25 = vadd.f32 %v1514_v2, %v1499_v61 }
  0xb3   :  { %v1095_v55 = vmul.f32 %v5690_v4, %v39_v3  ;;  %v1096_v45 = vmul.f32 %v5691_v41, %v39_v3  ;;  %v1948_v63 = vadd.f32 %v1946_v28, %v1931_v10  ;;  %v5694_v5 = vrot.slane %v5692_v18, %v3077_v27  ;;  %v5716_v4 = vld [vmem:[#allocation22_spill] sm:$0xff] }
  0xb4   :  { %v1530_v57 = vmul.f32 %v5693_v51, %v39_v3  ;;  %v5696_v60 = vrot.slane %v5695_v23, %v3075_v26  ;;  %v1949_v30 = vadd.f32 %v1947_v6, %v1932_v21  ;;  %v2383_v11 = vadd.f32 %v2381_v1, %v2366_v43 }
  0xb5   :  { %v1531_v32 = vmul.f32 %v5694_v5, %v39_v3  ;;  %v2384_v9 = vadd.f32 %v2382_v20, %v2367_v48  ;;  %v229_v31 = vadd.f32 %v227_v19, %v212_v62  ;;  %v230_v46 = vadd.f32 %v228_v8, %v213_v59  ;;  %v5701_v62 = vld [vmem:[#allocation17_spill] sm:$0xff]  ;;  %v5710_v19 = vld [vmem:[#allocation20_spill] sm:$0xff] }
  0xb6   :  { %v1963_v24 = vmul.f32 %v5696_v60, %v39_v3  ;;  %v662_v47 = vadd.f32 %v660_v13, %v645_v36  ;;  %v663_v38 = vadd.f32 %v661_v0, %v646_v29  ;;  %v5697_v61 = vrot.slane %v5695_v23, %v3077_v27  ;;  %v5713_v13 = vld [vmem:[#allocation21_spill] sm:$0xff] }
  0xb7   :  { %v1097_v44 = vadd.f32 %v1095_v55, %v1080_v53  ;;  %v1098_v7 = vadd.f32 %v1096_v45, %v1081_v12  ;;  %v1532_v40 = vadd.f32 %v1530_v57, %v1515_v49  ;;  %v5699_v58 = vrot.slane %v5698_v16, %v3075_v26 }
  0xb8   :  { %v1964_v10 = vmul.f32 %v5697_v61, %v39_v3  ;;  %v1533_v22 = vadd.f32 %v1531_v32, %v1516_v25  ;;  %v1965_v21 = vadd.f32 %v1963_v24, %v1948_v63  ;;  %v5700_v43 = vrot.slane %v5698_v16, %v3077_v27  ;;  %v5719_v25 = vld [vmem:[#allocation23_spill] sm:$0xff] }
  0xb9   :  { %v2398_v2 = vmul.f32 %v5699_v58, %v39_v3  ;;  %v5702_v59 = vrot.slane %v5701_v62, %v3075_v26  ;;  %v5703_v29 = vrot.slane %v5701_v62, %v3077_v27  ;;  %v5705_v28 = vrot.slane %v5704_v17, %v3075_v26 }
  0xba   :  { %v2399_v48 = vmul.f32 %v5700_v43, %v39_v3  ;;  %v5706_v6 = vrot.slane %v5704_v17, %v3077_v27  ;;  %v5708_v1 = vrot.slane %v5707_v37, %v3075_v26  ;;  %v1966_v20 = vadd.f32 %v1964_v10, %v1949_v30 }
  0xbb   :  { %v244_v36 = vmul.f32 %v5702_v59, %v43_v52  ;;  %v245_v53 = vmul.f32 %v5703_v29, %v43_v52  ;;  %v677_v42 = vmul.f32 %v5705_v28, %v43_v52  ;;  %v5709_v39 = vrot.slane %v5707_v37, %v3077_v27  ;;  %v5728_v59 = vld [vmem:[#allocation26_spill] sm:$0xff]  ;;  %v5731_v28 = vld [vmem:[#allocation27_spill] sm:$0xff] }
  0xbc   :  { %v678_v34 = vmul.f32 %v5706_v6, %v43_v52  ;;  %v1112_v3 = vmul.f32 %v5708_v1, %v43_v52  ;;  %v5711_v12 = vrot.slane %v5710_v19, %v3075_v26  ;;  %v5712_v8 = vrot.slane %v5710_v19, %v3077_v27 }
  0xbd   :  { %v1113_v33 = vmul.f32 %v5709_v39, %v43_v52  ;;  %v2400_v56 = vadd.f32 %v2398_v2, %v2383_v11  ;;  %v5714_v15 = vrot.slane %v5713_v13, %v3075_v26  ;;  %v5715_v49 = vrot.slane %v5713_v13, %v3077_v27  ;;  %v5722_v2 = vld [vmem:[#allocation24_spill] sm:$0xff] }
  0xbe   :  { %v1547_v35 = vmul.f32 %v5711_v12, %v43_v52  ;;  %v1548_v14 = vmul.f32 %v5712_v8, %v43_v52  ;;  %v5717_v55 = vrot.slane %v5716_v4, %v3075_v26  ;;  %v2401_v45 = vadd.f32 %v2399_v48, %v2384_v9 }
  0xbf   :  { %v1980_v0 = vmul.f32 %v5714_v15, %v43_v52  ;;  %v1981_v54 = vmul.f32 %v5715_v49, %v43_v52  ;;  %v246_v18 = vadd.f32 %v244_v36, %v229_v31  ;;  %v5718_v51 = vrot.slane %v5716_v4, %v3077_v27  ;;  %v5740_v15 = vld [vmem:[#allocation30_spill] sm:$0xff] }
  0xc0   :  { %v2415_v41 = vmul.f32 %v5717_v55, %v43_v52  ;;  %v5720_v63 = vrot.slane %v5719_v25, %v3075_v26  ;;  %v247_v32 = vadd.f32 %v245_v53, %v230_v46  ;;  %v679_v23 = vadd.f32 %v677_v42, %v662_v47 }
  0xc1   :  { %v2416_v57 = vmul.f32 %v5718_v51, %v43_v52  ;;  %v680_v60 = vadd.f32 %v678_v34, %v663_v38  ;;  %v1114_v24 = vadd.f32 %v1112_v3, %v1097_v44  ;;  %v1115_v30 = vadd.f32 %v1113_v33, %v1098_v7  ;;  %v5725_v38 = vld [vmem:[#allocation25_spill] sm:$0xff]  ;;  %v5734_v3 = vld [vmem:[#allocation28_spill] sm:$0xff] }
  0xc2   :  { %v261_v5 = vmul.f32 %v5720_v63, %v47_v50  ;;  %v1549_v11 = vadd.f32 %v1547_v35, %v1532_v40  ;;  %v1550_v61 = vadd.f32 %v1548_v14, %v1533_v22  ;;  %v5721_v10 = vrot.slane %v5719_v25, %v3077_v27  ;;  %v51_v40 = vpop.permute.xlu1 %50  ;;  %v5737_v35 = vld [vmem:[#allocation29_spill] sm:$0xff] }
  0xc3   :  { %v1982_v31 = vadd.f32 %v1980_v0, %v1965_v21  ;;  %v1983_v16 = vadd.f32 %v1981_v54, %v1966_v20  ;;  %v2417_v58 = vadd.f32 %v2415_v41, %v2400_v56  ;;  %v5723_v52 = vrot.slane %v5722_v2, %v3075_v26 }
  0xc4   :  { %v262_v9 = vmul.f32 %v5721_v10, %v47_v50  ;;  %v2418_v48 = vadd.f32 %v2416_v57, %v2401_v45  ;;  %v263_v62 = vadd.f32 %v261_v5, %v246_v18  ;;  %v5724_v46 = vrot.slane %v5722_v2, %v3077_v27 }
  0xc5   :  { %v694_v43 = vmul.f32 %v5723_v52, %v47_v50  ;;  %v5726_v44 = vrot.slane %v5725_v38, %v3075_v26  ;;  %v5727_v22 = vrot.slane %v5725_v38, %v3077_v27  ;;  %v5729_v36 = vrot.slane %v5728_v59, %v3075_v26 }
  0xc6   :  { %v695_v47 = vmul.f32 %v5724_v46, %v47_v50  ;;  %v5730_v53 = vrot.slane %v5728_v59, %v3077_v27  ;;  %v5732_v42 = vrot.slane %v5731_v28, %v3075_v26  ;;  %v264_v34 = vadd.f32 %v262_v9, %v247_v32 }
  0xc7   :  { %v1129_v7 = vmul.f32 %v5726_v44, %v47_v50  ;;  %v1130_v21 = vmul.f32 %v5727_v22, %v47_v50  ;;  %v1564_v29 = vmul.f32 %v5729_v36, %v47_v50  ;;  %v5733_v37 = vrot.slane %v5731_v28, %v3077_v27  ;;  %v5752_v44 = vld [vmem:[#allocation34_spill] sm:$0xff]  ;;  %v5755_v36 = vld [vmem:[#allocation35_spill] sm:$0xff] }
  0xc8   :  { %v1565_v17 = vmul.f32 %v5730_v53, %v47_v50  ;;  %v1997_v6 = vmul.f32 %v5732_v42, %v47_v50  ;;  %v5735_v20 = vrot.slane %v5734_v3, %v3075_v26  ;;  %v5736_v33 = vrot.slane %v5734_v3, %v3077_v27 }
  0xc9   :  { %v1998_v1 = vmul.f32 %v5733_v37, %v47_v50  ;;  %v696_v12 = vadd.f32 %v694_v43, %v679_v23  ;;  %v5738_v8 = vrot.slane %v5737_v35, %v3075_v26  ;;  %v5739_v56 = vrot.slane %v5737_v35, %v3077_v27  ;;  %v5746_v43 = vld [vmem:[#allocation32_spill] sm:$0xff]  ;;  %v5764_v35 = vld [vmem:[#allocation38_spill] sm:$0xff] }
  0xca   :  { %v2432_v39 = vmul.f32 %v5735_v20, %v47_v50  ;;  %v2433_v19 = vmul.f32 %v5736_v33, %v47_v50  ;;  %v5741_v0 = vrot.slane %v5740_v15, %v3075_v26  ;;  %v697_v54 = vadd.f32 %v695_v47, %v680_v60  ;;  %v5743_v50 = vld [vmem:[#allocation31_spill] sm:$0xff] }
  0xcb   :  { %v278_v14 = vmul.f32 %v5738_v8, %v51_v40  ;;  %v279_v13 = vmul.f32 %v5739_v56, %v51_v40  ;;  %v1131_v4 = vadd.f32 %v1129_v7, %v1114_v24  ;;  %v5742_v55 = vrot.slane %v5740_v15, %v3077_v27  ;;  %v55_v24 = vpop.permute.xlu1 %54 }
  0xcc   :  { %v711_v49 = vmul.f32 %v5741_v0, %v51_v40  ;;  %v5744_v45 = vrot.slane %v5743_v50, %v3075_v26  ;;  %v1132_v51 = vadd.f32 %v1130_v21, %v1115_v30  ;;  %v1566_v57 = vadd.f32 %v1564_v29, %v1549_v11 }
  0xcd   :  { %v712_v41 = vmul.f32 %v5742_v55, %v51_v40  ;;  %v1567_v25 = vadd.f32 %v1565_v17, %v1550_v61  ;;  %v1999_v63 = vadd.f32 %v1997_v6, %v1982_v31  ;;  %v2000_v5 = vadd.f32 %v1998_v1, %v1983_v16  ;;  %v5749_v31 = vld [vmem:[#allocation33_spill] sm:$0xff]  ;;  %v5758_v6 = vld [vmem:[#allocation36_spill] sm:$0xff] }
  0xce   :  { %v1146_v18 = vmul.f32 %v5744_v45, %v51_v40  ;;  %v2434_v32 = vadd.f32 %v2432_v39, %v2417_v58  ;;  %v2435_v23 = vadd.f32 %v2433_v19, %v2418_v48  ;;  %v5745_v10 = vrot.slane %v5743_v50, %v3077_v27  ;;  %v5761_v39 = vld [vmem:[#allocation37_spill] sm:$0xff] }
  0xcf   :  { %v280_v9 = vadd.f32 %v278_v14, %v263_v62  ;;  %v281_v2 = vadd.f32 %v279_v13, %v264_v34  ;;  %v713_v52 = vadd.f32 %v711_v49, %v696_v12  ;;  %v5747_v46 = vrot.slane %v5746_v43, %v3075_v26  ;;  %v5767_v49 = vld [vmem:[#allocation39_spill] sm:$0xff] }
  0xd0   :  { %v1147_v60 = vmul.f32 %v5745_v10, %v51_v40  ;;  %v714_v38 = vadd.f32 %v712_v41, %v697_v54  ;;  %v1148_v30 = vadd.f32 %v1146_v18, %v1131_v4  ;;  %v5748_v11 = vrot.slane %v5746_v43, %v3077_v27  ;;  %v59_v18 = vpop.permute.xlu0 %58 }
  0xd1   :  { %v1581_v47 = vmul.f32 %v5747_v46, %v51_v40  ;;  %v5750_v16 = vrot.slane %v5749_v31, %v3075_v26  ;;  %v5751_v48 = vrot.slane %v5749_v31, %v3077_v27  ;;  %v5753_v7 = vrot.slane %v5752_v44, %v3075_v26 }
  0xd2   :  { %v1582_v61 = vmul.f32 %v5748_v11, %v51_v40  ;;  %v5754_v21 = vrot.slane %v5752_v44, %v3077_v27  ;;  %v5756_v29 = vrot.slane %v5755_v36, %v3075_v26  ;;  %v1149_v17 = vadd.f32 %v1147_v60, %v1132_v51 }
  0xd3   :  { %v2014_v58 = vmul.f32 %v5750_v16, %v51_v40  ;;  %v2015_v62 = vmul.f32 %v5751_v48, %v51_v40  ;;  %v2449_v22 = vmul.f32 %v5753_v7, %v51_v40  ;;  %v5757_v28 = vrot.slane %v5755_v36, %v3077_v27  ;;  %v5776_v16 = vld [vmem:[#allocation42_spill] sm:$0xff]  ;;  %v5779_v7 = vld [vmem:[#allocation43_spill] sm:$0xff] }
  0xd4   :  { %v2450_v59 = vmul.f32 %v5754_v21, %v51_v40  ;;  %v295_v53 = vmul.f32 %v5756_v29, %v55_v24  ;;  %v5759_v34 = vrot.slane %v5758_v6, %v3075_v26  ;;  %v5760_v1 = vrot.slane %v5758_v6, %v3077_v27  ;;  %v63_v21 = vpop.permute.xlu1 %62 }
  0xd5   :  { %v296_v42 = vmul.f32 %v5757_v28, %v55_v24  ;;  %v1583_v20 = vadd.f32 %v1581_v47, %v1566_v57  ;;  %v5762_v40 = vrot.slane %v5761_v39, %v3075_v26  ;;  %v5763_v19 = vrot.slane %v5761_v39, %v3077_v27  ;;  %v5770_v47 = vld [vmem:[#allocation40_spill] sm:$0xff] }
  0xd6   :  { %v728_v37 = vmul.f32 %v5759_v34, %v55_v24  ;;  %v729_v3 = vmul.f32 %v5760_v1, %v55_v24  ;;  %v5765_v8 = vrot.slane %v5764_v35, %v3075_v26  ;;  %v1584_v56 = vadd.f32 %v1582_v61, %v1567_v25 }
  0xd7   :  { %v1163_v33 = vmul.f32 %v5762_v40, %v55_v24  ;;  %v1164_v12 = vmul.f32 %v5763_v19, %v55_v24  ;;  %v2016_v13 = vadd.f32 %v2014_v58, %v1999_v63  ;;  %v5766_v15 = vrot.slane %v5764_v35, %v3077_v27  ;;  %v5788_v40 = vld [vmem:[#allocation46_spill] sm:$0xff] }
  0xd8   :  { %v1598_v14 = vmul.f32 %v5765_v8, %v55_v24  ;;  %v5768_v54 = vrot.slane %v5767_v49, %v3075_v26  ;;  %v2017_v55 = vadd.f32 %v2015_v62, %v2000_v5  ;;  %v2451_v41 = vadd.f32 %v2449_v22, %v2434_v32 }
  0xd9   :  { %v1599_v0 = vmul.f32 %v5766_v15, %v55_v24  ;;  %v2452_v50 = vadd.f32 %v2450_v59, %v2435_v23  ;;  %v297_v45 = vadd.f32 %v295_v53, %v280_v9  ;;  %v298_v51 = vadd.f32 %v296_v42, %v281_v2  ;;  %v5773_v9 = vld [vmem:[#allocation41_spill] sm:$0xff]  ;;  %v5782_v53 = vld [vmem:[#allocation44_spill] sm:$0xff] }
  0xda   :  { %v2031_v4 = vmul.f32 %v5768_v54, %v55_v24  ;;  %v730_v57 = vadd.f32 %v728_v37, %v713_v52  ;;  %v731_v10 = vadd.f32 %v729_v3, %v714_v38  ;;  %v5769_v25 = vrot.slane %v5767_v49, %v3077_v27  ;;  %v5785_v37 = vld [vmem:[#allocation45_spill] sm:$0xff] }
  0xdb   :  { %v1165_v60 = vadd.f32 %v1163_v33, %v1148_v30  ;;  %v1166_v43 = vadd.f32 %v1164_v12, %v1149_v17  ;;  %v1600_v46 = vadd.f32 %v1598_v14, %v1583_v20  ;;  %v5771_v11 = vrot.slane %v5770_v47, %v3075_v26 }
  0xdc   :  { %v2032_v63 = vmul.f32 %v5769_v25, %v55_v24  ;;  %v1601_v31 = vadd.f32 %v1599_v0, %v1584_v56  ;;  %v2033_v5 = vadd.f32 %v2031_v4, %v2016_v13  ;;  %v5772_v32 = vrot.slane %v5770_v47, %v3077_v27  ;;  %v5791_v56 = vld [vmem:[#allocation47_spill] sm:$0xff] }
  0xdd   :  { %v2466_v61 = vmul.f32 %v5771_v11, %v55_v24  ;;  %v5774_v2 = vrot.slane %v5773_v9, %v3075_v26  ;;  %v5775_v38 = vrot.slane %v5773_v9, %v3077_v27  ;;  %v5777_v58 = vrot.slane %v5776_v16, %v3075_v26 }
  0xde   :  { %v2467_v23 = vmul.f32 %v5772_v32, %v55_v24  ;;  %v5778_v62 = vrot.slane %v5776_v16, %v3077_v27  ;;  %v5780_v22 = vrot.slane %v5779_v7, %v3075_v26  ;;  %v2034_v59 = vadd.f32 %v2032_v63, %v2017_v55 }
  0xdf   :  { %v312_v52 = vmul.f32 %v5774_v2, %v59_v18  ;;  %v313_v30 = vmul.f32 %v5775_v38, %v59_v18  ;;  %v745_v48 = vmul.f32 %v5777_v58, %v59_v18  ;;  %v5781_v36 = vrot.slane %v5779_v7, %v3077_v27  ;;  %v5800_v2 = vld [vmem:[#allocation50_spill] sm:$0xff]  ;;  %v5803_v58 = vld [vmem:[#allocation51_spill] sm:$0xff] }
  0xe0   :  { %v746_v44 = vmul.f32 %v5778_v62, %v59_v18  ;;  %v1180_v24 = vmul.f32 %v5780_v22, %v59_v18  ;;  %v5783_v17 = vrot.slane %v5782_v53, %v3075_v26  ;;  %v5784_v42 = vrot.slane %v5782_v53, %v3077_v27 }
  0xe1   :  { %v1181_v29 = vmul.f32 %v5781_v36, %v59_v18  ;;  %v2468_v34 = vadd.f32 %v2466_v61, %v2451_v41  ;;  %v5786_v1 = vrot.slane %v5785_v37, %v3075_v26  ;;  %v5787_v20 = vrot.slane %v5785_v37, %v3077_v27  ;;  %v5794_v61 = vld [vmem:[#allocation48_spill] sm:$0xff] }
  0xe2   :  { %v1615_v28 = vmul.f32 %v5783_v17, %v59_v18  ;;  %v1616_v6 = vmul.f32 %v5784_v42, %v59_v18  ;;  %v5789_v33 = vrot.slane %v5788_v40, %v3075_v26  ;;  %v2469_v12 = vadd.f32 %v2467_v23, %v2452_v50 }
  0xe3   :  { %v2048_v3 = vmul.f32 %v5786_v1, %v59_v18  ;;  %v2049_v39 = vmul.f32 %v5787_v20, %v59_v18  ;;  %v314_v35 = vadd.f32 %v312_v52, %v297_v45  ;;  %v5790_v8 = vrot.slane %v5788_v40, %v3077_v27  ;;  %v5812_v1 = vld [vmem:[#allocation54_spill] sm:$0xff] }
  0xe4   :  { %v2483_v19 = vmul.f32 %v5789_v33, %v59_v18  ;;  %v5792_v13 = vrot.slane %v5791_v56, %v3075_v26  ;;  %v315_v0 = vadd.f32 %v313_v30, %v298_v51  ;;  %v747_v49 = vadd.f32 %v745_v48, %v730_v57 }
  0xe5   :  { %v2484_v14 = vmul.f32 %v5790_v8, %v59_v18  ;;  %v748_v54 = vadd.f32 %v746_v44, %v731_v10  ;;  %v1182_v4 = vadd.f32 %v1180_v24, %v1165_v60  ;;  %v1183_v55 = vadd.f32 %v1181_v29, %v1166_v43  ;;  %v5797_v10 = vld [vmem:[#allocation49_spill] sm:$0xff]  ;;  %v5806_v24 = vld [vmem:[#allocation52_spill] sm:$0xff] }
  0xe6   :  { %v329_v15 = vmul.f32 %v5792_v13, %v63_v21  ;;  %v1617_v41 = vadd.f32 %v1615_v28, %v1600_v46  ;;  %v1618_v25 = vadd.f32 %v1616_v6, %v1601_v31  ;;  %v5793_v63 = vrot.slane %v5791_v56, %v3077_v27  ;;  %v67_v46 = vpop.permute.xlu1 %66  ;;  %v5809_v28 = vld [vmem:[#allocation53_spill] sm:$0xff] }
  0xe7   :  { %v2050_v45 = vadd.f32 %v2048_v3, %v2033_v5  ;;  %v2051_v47 = vadd.f32 %v2049_v39, %v2034_v59  ;;  %v2485_v11 = vadd.f32 %v2483_v19, %v2468_v34  ;;  %v5795_v18 = vrot.slane %v5794_v61, %v3075_v26 }
  0xe8   :  { %v330_v50 = vmul.f32 %v5793_v63, %v63_v21  ;;  %v2486_v23 = vadd.f32 %v2484_v14, %v2469_v12  ;;  %v331_v9 = vadd.f32 %v329_v15, %v314_v35  ;;  %v5796_v51 = vrot.slane %v5794_v61, %v3077_v27 }
  0xe9   :  { %v762_v32 = vmul.f32 %v5795_v18, %v63_v21  ;;  %v5798_v60 = vrot.slane %v5797_v10, %v3075_v26  ;;  %v5799_v31 = vrot.slane %v5797_v10, %v3077_v27  ;;  %v5801_v52 = vrot.slane %v5800_v2, %v3075_v26 }
  0xea   :  { %v763_v57 = vmul.f32 %v5796_v51, %v63_v21  ;;  %v5802_v30 = vrot.slane %v5800_v2, %v3077_v27  ;;  %v5804_v48 = vrot.slane %v5803_v58, %v3075_v26  ;;  %v332_v44 = vadd.f32 %v330_v50, %v315_v0 }
  0xeb   :  { %v1197_v43 = vmul.f32 %v5798_v60, %v63_v21  ;;  %v1198_v5 = vmul.f32 %v5799_v31, %v63_v21  ;;  %v1632_v38 = vmul.f32 %v5801_v52, %v63_v21  ;;  %v5805_v7 = vrot.slane %v5803_v58, %v3077_v27  ;;  %v5824_v60 = vld [vmem:[#allocation58_spill] sm:$0xff]  ;;  %v5827_v52 = vld [vmem:[#allocation59_spill] sm:$0xff] }
  0xec   :  { %v1633_v16 = vmul.f32 %v5802_v30, %v63_v21  ;;  %v2065_v62 = vmul.f32 %v5804_v48, %v63_v21  ;;  %v5807_v59 = vrot.slane %v5806_v24, %v3075_v26  ;;  %v5808_v29 = vrot.slane %v5806_v24, %v3077_v27 }
  0xed   :  { %v2066_v22 = vmul.f32 %v5805_v7, %v63_v21  ;;  %v764_v17 = vadd.f32 %v762_v32, %v747_v49  ;;  %v5810_v42 = vrot.slane %v5809_v28, %v3075_v26  ;;  %v5811_v34 = vrot.slane %v5809_v28, %v3077_v27  ;;  %v5818_v32 = vld [vmem:[#allocation56_spill] sm:$0xff]  ;;  %v5836_v28 = vld [vmem:[#allocation62_spill] sm:$0xff] }
  0xee   :  { %v2500_v36 = vmul.f32 %v5807_v59, %v63_v21  ;;  %v2501_v53 = vmul.f32 %v5808_v29, %v63_v21  ;;  %v5813_v3 = vrot.slane %v5812_v1, %v3075_v26  ;;  %v765_v39 = vadd.f32 %v763_v57, %v748_v54  ;;  %v5815_v21 = vld [vmem:[#allocation55_spill] sm:$0xff] }
  0xef   :  { %v346_v6 = vmul.f32 %v5810_v42, %v67_v46  ;;  %v347_v37 = vmul.f32 %v5811_v34, %v67_v46  ;;  %v1199_v40 = vadd.f32 %v1197_v43, %v1182_v4  ;;  %v5814_v33 = vrot.slane %v5812_v1, %v3077_v27  ;;  %v71_v4 = vpop.permute.xlu0 %70  ;;  %v75_v34 = vpop.permute.xlu1 %74 }
  0xf0   :  { %v779_v20 = vmul.f32 %v5813_v3, %v67_v46  ;;  %v5816_v12 = vrot.slane %v5815_v21, %v3075_v26  ;;  %v1200_v8 = vadd.f32 %v1198_v5, %v1183_v55  ;;  %v1634_v14 = vadd.f32 %v1632_v38, %v1617_v41 }
  0xf1   :  { %v780_v19 = vmul.f32 %v5814_v33, %v67_v46  ;;  %v1635_v56 = vadd.f32 %v1633_v16, %v1618_v25  ;;  %v2067_v13 = vadd.f32 %v2065_v62, %v2050_v45  ;;  %v2068_v15 = vadd.f32 %v2066_v22, %v2051_v47  ;;  %v5821_v45 = vld [vmem:[#allocation57_spill] sm:$0xff]  ;;  %v5830_v62 = vld [vmem:[#allocation60_spill] sm:$0xff] }
  0xf2   :  { %v1214_v35 = vmul.f32 %v5816_v12, %v67_v46  ;;  %v2502_v0 = vadd.f32 %v2500_v36, %v2485_v11  ;;  %v2503_v49 = vadd.f32 %v2501_v53, %v2486_v23  ;;  %v5817_v63 = vrot.slane %v5815_v21, %v3077_v27  ;;  %v5833_v36 = vld [vmem:[#allocation61_spill] sm:$0xff] }
  0xf3   :  { %v348_v50 = vadd.f32 %v346_v6, %v331_v9  ;;  %v349_v61 = vadd.f32 %v347_v37, %v332_v44  ;;  %v781_v18 = vadd.f32 %v779_v20, %v764_v17  ;;  %v5819_v51 = vrot.slane %v5818_v32, %v3075_v26 }
  0xf4   :  { %v1215_v54 = vmul.f32 %v5817_v63, %v67_v46  ;;  %v782_v10 = vadd.f32 %v780_v19, %v765_v39  ;;  %v1216_v55 = vadd.f32 %v1214_v35, %v1199_v40  ;;  %v5820_v41 = vrot.slane %v5818_v32, %v3077_v27  ;;  %v5839_v39 = vld [vmem:[#allocation63_spill] sm:$0xff] }
  0xf5   :  { %v1649_v57 = vmul.f32 %v5819_v51, %v67_v46  ;;  %v5822_v47 = vrot.slane %v5821_v45, %v3075_v26  ;;  %v5823_v23 = vrot.slane %v5821_v45, %v3077_v27  ;;  %v5825_v43 = vrot.slane %v5824_v60, %v3075_v26 }
  0xf6   :  { %v1650_v25 = vmul.f32 %v5820_v41, %v67_v46  ;;  %v5826_v5 = vrot.slane %v5824_v60, %v3077_v27  ;;  %v5828_v38 = vrot.slane %v5827_v52, %v3075_v26  ;;  %v1217_v16 = vadd.f32 %v1215_v54, %v1200_v8 }
  0xf7   :  { %v2082_v11 = vmul.f32 %v5822_v47, %v67_v46  ;;  %v2083_v9 = vmul.f32 %v5823_v23, %v67_v46  ;;  %v2517_v31 = vmul.f32 %v5825_v43, %v67_v46  ;;  %v5829_v58 = vrot.slane %v5827_v52, %v3077_v27  ;;  %v5851_v43 = vld [vmem:[#allocation67_spill] sm:$0xff] }
  0xf8   :  { %v2518_v2 = vmul.f32 %v5826_v5, %v67_v46  ;;  %v363_v30 = vmul.f32 %v5828_v38, %v71_v4  ;;  %v5831_v44 = vrot.slane %v5830_v62, %v3075_v26  ;;  %v5832_v22 = vrot.slane %v5830_v62, %v3077_v27  ;;  %v79_v5 = vpop.permute.xlu1 %78 }
  0xf9   :  { %v364_v48 = vmul.f32 %v5829_v58, %v71_v4  ;;  %v1651_v59 = vadd.f32 %v1649_v57, %v1634_v14  ;;  %v5834_v46 = vrot.slane %v5833_v36, %v3075_v26  ;;  %v5835_v53 = vrot.slane %v5833_v36, %v3077_v27  ;;  %v5842_v57 = vld [vmem:[#allocation64_spill] sm:$0xff] }
  0xfa   :  { %v796_v7 = vmul.f32 %v5831_v44, %v71_v4  ;;  %v797_v24 = vmul.f32 %v5832_v22, %v71_v4  ;;  %v5837_v42 = vrot.slane %v5836_v28, %v3075_v26  ;;  %v1652_v37 = vadd.f32 %v1650_v25, %v1635_v56 }
  0xfb   :  { %v1231_v29 = vmul.f32 %v5834_v46, %v71_v4  ;;  %v1232_v17 = vmul.f32 %v5835_v53, %v71_v4  ;;  %v2084_v1 = vadd.f32 %v2082_v11, %v2067_v13  ;;  %v5838_v3 = vrot.slane %v5836_v28, %v3077_v27  ;;  %v5860_v46 = vld [vmem:[#allocation70_spill] sm:$0xff] }
  0xfc   :  { %v1666_v6 = vmul.f32 %v5837_v42, %v71_v4  ;;  %v5840_v40 = vrot.slane %v5839_v39, %v3075_v26  ;;  %v2085_v19 = vadd.f32 %v2083_v9, %v2068_v15  ;;  %v2519_v21 = vadd.f32 %v2517_v31, %v2502_v0 }
  0xfd   :  { %v1667_v20 = vmul.f32 %v5838_v3, %v71_v4  ;;  %v2520_v12 = vadd.f32 %v2518_v2, %v2503_v49  ;;  %v365_v35 = vadd.f32 %v363_v30, %v348_v50  ;;  %v366_v8 = vadd.f32 %v364_v48, %v349_v61  ;;  %v5845_v49 = vld [vmem:[#allocation65_spill] sm:$0xff]  ;;  %v5854_v30 = vld [vmem:[#allocation68_spill] sm:$0xff] }
  0xfe   :  { %v2099_v33 = vmul.f32 %v5840_v40, %v71_v4  ;;  %v798_v14 = vadd.f32 %v796_v7, %v781_v18  ;;  %v799_v63 = vadd.f32 %v797_v24, %v782_v10  ;;  %v5841_v54 = vrot.slane %v5839_v39, %v3077_v27  ;;  %v5857_v7 = vld [vmem:[#allocation69_spill] sm:$0xff] }
  0xff   :  { %v1233_v13 = vadd.f32 %v1231_v29, %v1216_v55  ;;  %v1234_v32 = vadd.f32 %v1232_v17, %v1217_v16  ;;  %v1668_v51 = vadd.f32 %v1666_v6, %v1651_v59  ;;  %v5843_v41 = vrot.slane %v5842_v57, %v3075_v26  ;;  %v5848_v55 = vld [vmem:[#allocation66_spill] sm:$0xff] }
 0x100   :  { %v2100_v56 = vmul.f32 %v5841_v54, %v71_v4  ;;  %v1669_v45 = vadd.f32 %v1667_v20, %v1652_v37  ;;  %v2101_v47 = vadd.f32 %v2099_v33, %v2084_v1  ;;  %v5844_v15 = vrot.slane %v5842_v57, %v3077_v27  ;;  %v5863_v37 = vld [vmem:[#allocation71_spill] sm:$0xff] }
 0x101   :  { %v2534_v25 = vmul.f32 %v5843_v41, %v71_v4  ;;  %v5846_v50 = vrot.slane %v5845_v49, %v3075_v26  ;;  %v5847_v18 = vrot.slane %v5845_v49, %v3077_v27  ;;  %v5849_v11 = vrot.slane %v5848_v55, %v3075_v26 }
 0x102   :  { %v2535_v0 = vmul.f32 %v5844_v15, %v71_v4  ;;  %v5850_v9 = vrot.slane %v5848_v55, %v3077_v27  ;;  %v5852_v31 = vrot.slane %v5851_v43, %v3075_v26  ;;  %v2102_v2 = vadd.f32 %v2100_v56, %v2085_v19 }
 0x103   :  { %v380_v61 = vmul.f32 %v5846_v50, %v75_v34  ;;  %v381_v10 = vmul.f32 %v5847_v18, %v75_v34  ;;  %v813_v23 = vmul.f32 %v5849_v11, %v75_v34  ;;  %v5853_v52 = vrot.slane %v5851_v43, %v3077_v27  ;;  %v5872_v50 = vld [vmem:[#allocation74_spill] sm:$0xff]  ;;  %v5875_v11 = vld [vmem:[#allocation75_spill] sm:$0xff] }
 0x104   :  { %v814_v60 = vmul.f32 %v5850_v9, %v75_v34  ;;  %v1248_v4 = vmul.f32 %v5852_v31, %v75_v34  ;;  %v5855_v16 = vrot.slane %v5854_v30, %v3075_v26  ;;  %v5856_v48 = vrot.slane %v5854_v30, %v3077_v27 }
 0x105   :  { %v1249_v38 = vmul.f32 %v5853_v52, %v75_v34  ;;  %v2536_v44 = vadd.f32 %v2534_v25, %v2519_v21  ;;  %v5858_v22 = vrot.slane %v5857_v7, %v3075_v26  ;;  %v5859_v59 = vrot.slane %v5857_v7, %v3077_v27  ;;  %v5866_v25 = vld [vmem:[#allocation72_spill] sm:$0xff] }
 0x106   :  { %v1683_v58 = vmul.f32 %v5855_v16, %v75_v34  ;;  %v1684_v62 = vmul.f32 %v5856_v48, %v75_v34  ;;  %v5861_v29 = vrot.slane %v5860_v46, %v3075_v26  ;;  %v2537_v17 = vadd.f32 %v2535_v0, %v2520_v12 }
 0x107   :  { %v2116_v24 = vmul.f32 %v5858_v22, %v75_v34  ;;  %v2117_v36 = vmul.f32 %v5859_v59, %v75_v34  ;;  %v382_v28 = vadd.f32 %v380_v61, %v365_v35  ;;  %v5862_v42 = vrot.slane %v5860_v46, %v3077_v27  ;;  %v5884_v22 = vld [vmem:[#allocation78_spill] sm:$0xff] }
 0x108   :  { %v2551_v53 = vmul.f32 %v5861_v29, %v75_v34  ;;  %v5864_v1 = vrot.slane %v5863_v37, %v3075_v26  ;;  %v383_v20 = vadd.f32 %v381_v10, %v366_v8  ;;  %v815_v39 = vadd.f32 %v813_v23, %v798_v14 }
 0x109   :  { %v2552_v6 = vmul.f32 %v5862_v42, %v75_v34  ;;  %v816_v40 = vadd.f32 %v814_v60, %v799_v63  ;;  %v1250_v33 = vadd.f32 %v1248_v4, %v1233_v13  ;;  %v1251_v19 = vadd.f32 %v1249_v38, %v1234_v32  ;;  %v5869_v63 = vld [vmem:[#allocation73_spill] sm:$0xff]  ;;  %v5878_v4 = vld [vmem:[#allocation76_spill] sm:$0xff] }
 0x10a   :  { %v397_v3 = vmul.f32 %v5864_v1, %v79_v5  ;;  %v1685_v21 = vadd.f32 %v1683_v58, %v1668_v51  ;;  %v1686_v54 = vadd.f32 %v1684_v62, %v1669_v45  ;;  %v5865_v56 = vrot.slane %v5863_v37, %v3077_v27  ;;  %v83_v51 = vpop.permute.xlu0 %82  ;;  %v5881_v58 = vld [vmem:[#allocation77_spill] sm:$0xff] }
 0x10b   :  { %v2118_v35 = vadd.f32 %v2116_v24, %v2101_v47  ;;  %v2119_v57 = vadd.f32 %v2117_v36, %v2102_v2  ;;  %v2553_v41 = vadd.f32 %v2551_v53, %v2536_v44  ;;  %v5867_v34 = vrot.slane %v5866_v25, %v3075_v26 }
 0x10c   :  { %v398_v12 = vmul.f32 %v5865_v56, %v79_v5  ;;  %v2554_v0 = vadd.f32 %v2552_v6, %v2537_v17  ;;  %v399_v49 = vadd.f32 %v397_v3, %v382_v28  ;;  %v5868_v8 = vrot.slane %v5866_v25, %v3077_v27 }
 0x10d   :  { %v830_v15 = vmul.f32 %v5867_v34, %v79_v5  ;;  %v5870_v13 = vrot.slane %v5869_v63, %v3075_v26  ;;  %v5871_v45 = vrot.slane %v5869_v63, %v3077_v27  ;;  %v5873_v61 = vrot.slane %v5872_v50, %v3075_v26 }
 0x10e   :  { %v831_v14 = vmul.f32 %v5868_v8, %v79_v5  ;;  %v5874_v10 = vrot.slane %v5872_v50, %v3077_v27  ;;  %v5876_v23 = vrot.slane %v5875_v11, %v3075_v26  ;;  %v400_v60 = vadd.f32 %v398_v12, %v383_v20 }
 0x10f   :  { %v1265_v32 = vmul.f32 %v5870_v13, %v79_v5  ;;  %v1266_v47 = vmul.f32 %v5871_v45, %v79_v5  ;;  %v1700_v18 = vmul.f32 %v5873_v61, %v79_v5  ;;  %v5877_v43 = vrot.slane %v5875_v11, %v3077_v27  ;;  %v5896_v13 = vld [vmem:[#allocation82_spill] sm:$0xff]  ;;  %v5899_v61 = vld [vmem:[#allocation83_spill] sm:$0xff] }
 0x110   :  { %v1701_v55 = vmul.f32 %v5874_v10, %v79_v5  ;;  %v2133_v9 = vmul.f32 %v5876_v23, %v79_v5  ;;  %v5879_v2 = vrot.slane %v5878_v4, %v3075_v26  ;;  %v5880_v38 = vrot.slane %v5878_v4, %v3077_v27 }
 0x111   :  { %v2134_v31 = vmul.f32 %v5877_v43, %v79_v5  ;;  %v832_v16 = vadd.f32 %v830_v15, %v815_v39  ;;  %v5882_v48 = vrot.slane %v5881_v58, %v3075_v26  ;;  %v5883_v44 = vrot.slane %v5881_v58, %v3077_v27  ;;  %v5890_v15 = vld [vmem:[#allocation80_spill] sm:$0xff]  ;;  %v5908_v58 = vld [vmem:[#allocation86_spill] sm:$0xff] }
 0x112   :  { %v2568_v52 = vmul.f32 %v5879_v2, %v79_v5  ;;  %v2569_v30 = vmul.f32 %v5880_v38, %v79_v5  ;;  %v5885_v24 = vrot.slane %v5884_v22, %v3075_v26  ;;  %v833_v36 = vadd.f32 %v831_v14, %v816_v40  ;;  %v5887_v5 = vld [vmem:[#allocation79_spill] sm:$0xff] }
 0x113   :  { %v414_v62 = vmul.f32 %v5882_v48, %v83_v51  ;;  %v415_v7 = vmul.f32 %v5883_v44, %v83_v51  ;;  %v1267_v46 = vadd.f32 %v1265_v32, %v1250_v33  ;;  %v5886_v29 = vrot.slane %v5884_v22, %v3077_v27  ;;  %v87_v33 = vpop.permute.xlu1 %86 }
 0x114   :  { %v847_v59 = vmul.f32 %v5885_v24, %v83_v51  ;;  %v5888_v17 = vrot.slane %v5887_v5, %v3075_v26  ;;  %v1268_v42 = vadd.f32 %v1266_v47, %v1251_v19  ;;  %v1702_v6 = vadd.f32 %v1700_v18, %v1685_v21 }
 0x115   :  { %v848_v53 = vmul.f32 %v5886_v29, %v83_v51  ;;  %v1703_v37 = vadd.f32 %v1701_v55, %v1686_v54  ;;  %v2135_v1 = vadd.f32 %v2133_v9, %v2118_v35  ;;  %v2136_v3 = vadd.f32 %v2134_v31, %v2119_v57  ;;  %v5893_v35 = vld [vmem:[#allocation81_spill] sm:$0xff]  ;;  %v5902_v9 = vld [vmem:[#allocation84_spill] sm:$0xff] }
 0x116   :  { %v1282_v28 = vmul.f32 %v5888_v17, %v83_v51  ;;  %v2570_v20 = vadd.f32 %v2568_v52, %v2553_v41  ;;  %v2571_v39 = vadd.f32 %v2569_v30, %v2554_v0  ;;  %v5889_v56 = vrot.slane %v5887_v5, %v3077_v27  ;;  %v5905_v52 = vld [vmem:[#allocation85_spill] sm:$0xff] }
 0x117   :  { %v416_v12 = vadd.f32 %v414_v62, %v399_v49  ;;  %v417_v25 = vadd.f32 %v415_v7, %v400_v60  ;;  %v849_v34 = vadd.f32 %v847_v59, %v832_v16  ;;  %v5891_v8 = vrot.slane %v5890_v15, %v3075_v26  ;;  %v5911_v59 = vld [vmem:[#allocation107_spill] sm:$0xff]  ;;  %v91_v17 = vpop.permute.xlu1 %90 }
 0x118   :  { %v1283_v40 = vmul.f32 %v5889_v56, %v83_v51  ;;  %v850_v63 = vadd.f32 %v848_v53, %v833_v36  ;;  %v1284_v19 = vadd.f32 %v1282_v28, %v1267_v46  ;;  %v5892_v21 = vrot.slane %v5890_v15, %v3077_v27  ;;  %v5912_v56 = vld [vmem:[#allocation87_spill] sm:$0xff] }
 0x119   :  { %v1717_v14 = vmul.f32 %v5891_v8, %v83_v51  ;;  %v5894_v57 = vrot.slane %v5893_v35, %v3075_v26  ;;  %v5895_v0 = vrot.slane %v5893_v35, %v3077_v27  ;;  %v5897_v32 = vrot.slane %v5896_v13, %v3075_v26 }
 0x11a   :  { %v1718_v54 = vmul.f32 %v5892_v21, %v83_v51  ;;  %v5898_v47 = vrot.slane %v5896_v13, %v3077_v27  ;;  %v5900_v18 = vrot.slane %v5899_v61, %v3075_v26  ;;  %v1285_v55 = vadd.f32 %v1283_v40, %v1268_v42 }
 0x11b   :  { %v2150_v41 = vmul.f32 %v5894_v57, %v83_v51  ;;  %v2151_v49 = vmul.f32 %v5895_v0, %v83_v51  ;;  %v2585_v45 = vmul.f32 %v5897_v32, %v83_v51  ;;  %v5901_v11 = vrot.slane %v5899_v61, %v3077_v27 }
 0x11c   :  { %v2586_v50 = vmul.f32 %v5898_v47, %v83_v51  ;;  %v431_v10 = vmul.f32 %v5900_v18, %v87_v33  ;;  %v5903_v60 = vrot.slane %v5902_v9, %v3075_v26  ;;  %v5904_v31 = vrot.slane %v5902_v9, %v3077_v27 }
 0x11d   :  { %v432_v23 = vmul.f32 %v5901_v11, %v87_v33  ;;  %v1719_v2 = vadd.f32 %v1717_v14, %v1702_v6  ;;  %v5906_v51 = vrot.slane %v5905_v52, %v3075_v26  ;;  %v5907_v30 = vrot.slane %v5905_v52, %v3077_v27 }
 0x11e   :  { %v864_v43 = vmul.f32 %v5903_v60, %v87_v33  ;;  %v865_v4 = vmul.f32 %v5904_v31, %v87_v33  ;;  %v5909_v48 = vrot.slane %v5908_v58, %v3075_v26  ;;  %v1720_v44 = vadd.f32 %v1718_v54, %v1703_v37 }
 0x11f   :  { %v1299_v38 = vmul.f32 %v5906_v51, %v87_v33  ;;  %v1300_v16 = vmul.f32 %v5907_v30, %v87_v33  ;;  %v2152_v7 = vadd.f32 %v2150_v41, %v2135_v1  ;;  %v5910_v22 = vrot.slane %v5908_v58, %v3077_v27  ;;  %v5921_v41 = vld [vmem:[#allocation90_spill] sm:$0xff]  ;;  %v99_v58 = vpop.permute.xlu1 %98 }
 0x120   :  { %v1734_v62 = vmul.f32 %v5909_v48, %v87_v33  ;;  %v496_v36 = vrot.slane %v5911_v59, %v3077_v27  ;;  %v2153_v46 = vadd.f32 %v2151_v49, %v2136_v3  ;;  %v2587_v29 = vadd.f32 %v2585_v45, %v2570_v20  ;;  %v5915_v3 = vld [vmem:[#allocation88_spill] sm:$0xff]  ;;  %v5924_v45 = vld [vmem:[#allocation91_spill] sm:$0xff]  ;;  %v5933_v51 = vld [vmem:[#allocation94_spill] sm:$0xff] }
 0x121   :  { %v1735_v24 = vmul.f32 %v5910_v22, %v87_v33  ;;  %v2588_v53 = vadd.f32 %v2586_v50, %v2571_v39  ;;  %v433_v5 = vadd.f32 %v431_v10, %v416_v12  ;;  %v434_v28 = vadd.f32 %v432_v23, %v417_v25  ;;  %v5927_v10 = vld [vmem:[#allocation92_spill] sm:$0xff] }
 0x122   :  { %v866_v42 = vadd.f32 %v864_v43, %v849_v34  ;;  %v867_v6 = vadd.f32 %v865_v4, %v850_v63  ;;  %v5913_v40 = vrot.slane %v5912_v56, %v3075_v26  ;;  %v1301_v1 = vadd.f32 %v1299_v38, %v1284_v19  ;;  %v5918_v34 = vld [vmem:[#allocation89_spill] sm:$0xff] }
 0x123   :  { %v1302_v15 = vadd.f32 %v1300_v16, %v1285_v55  ;;  %v1736_v8 = vadd.f32 %v1734_v62, %v1719_v2  ;;  %v5914_v14 = vrot.slane %v5912_v56, %v3077_v27  ;;  %v1737_v54 = vadd.f32 %v1735_v24, %v1720_v44  ;;  %v5930_v43 = vld [vmem:[#allocation93_spill] sm:$0xff]  ;;  %v95_v16 = vpop.permute.xlu0 %94 }
 0x124   :  { %v2167_v37 = vmul.f32 %v5913_v40, %v87_v33  ;;  %v5916_v20 = vrot.slane %v5915_v3, %v3075_v26  ;;  %v5917_v12 = vrot.slane %v5915_v3, %v3077_v27  ;;  %v5919_v63 = vrot.slane %v5918_v34, %v3075_v26  ;;  %v5936_v3 = vld [vmem:[#allocation95_spill] sm:$0xff] }
 0x125   :  { %v2168_v21 = vmul.f32 %v5914_v14, %v87_v33  ;;  %v5920_v19 = vrot.slane %v5918_v34, %v3077_v27  ;;  %v5922_v0 = vrot.slane %v5921_v41, %v3075_v26  ;;  %v5923_v13 = vrot.slane %v5921_v41, %v3077_v27 }
 0x126   :  { %v2602_v39 = vmul.f32 %v5916_v20, %v87_v33  ;;  %v2603_v25 = vmul.f32 %v5917_v12, %v87_v33  ;;  %v448_v35 = vmul.f32 %v5919_v63, %v91_v17  ;;  %v5925_v47 = vrot.slane %v5924_v45, %v3075_v26  ;;  %v5942_v12 = vld [vmem:[#allocation97_spill] sm:$0xff] }
 0x127   :  { %v449_v57 = vmul.f32 %v5920_v19, %v91_v17  ;;  %v881_v49 = vmul.f32 %v5922_v0, %v91_v17  ;;  %v882_v32 = vmul.f32 %v5923_v13, %v91_v17  ;;  %v2169_v50 = vadd.f32 %v2167_v37, %v2152_v7  ;;  %v5945_v19 = vld [vmem:[#allocation98_spill] sm:$0xff]  ;;  %v5948_v13 = vld [vmem:[#allocation99_spill] sm:$0xff] }
 0x128   :  { %v1316_v33 = vmul.f32 %v5925_v47, %v91_v17  ;;  %v5926_v61 = vrot.slane %v5924_v45, %v3077_v27  ;;  %v5928_v55 = vrot.slane %v5927_v10, %v3075_v26  ;;  %v5929_v23 = vrot.slane %v5927_v10, %v3077_v27  ;;  %v5069_v47 = vpop.permute.xlu1 %102  ;;  %v5951_v10 = vld [vmem:[#allocation100_spill] sm:$0xff] }
 0x129   :  { %v2170_v60 = vadd.f32 %v2168_v21, %v2153_v46  ;;  %v5931_v31 = vrot.slane %v5930_v43, %v3075_v26  ;;  %v5932_v2 = vrot.slane %v5930_v43, %v3077_v27  ;;  %v5934_v38 = vrot.slane %v5933_v51, %v3075_v26 }
 0x12a   :  { %v1317_v18 = vmul.f32 %v5926_v61, %v91_v17  ;;  %v1751_v11 = vmul.f32 %v5928_v55, %v91_v17  ;;  %v1752_v9 = vmul.f32 %v5929_v23, %v91_v17  ;;  %v2604_v48 = vadd.f32 %v2602_v39, %v2587_v29  ;;  %v5953_v23 = vld [vmem:[#allocation101_spill] sm:$0xff] }
 0x12b   :  { %v2184_v4 = vmul.f32 %v5931_v31, %v91_v17  ;;  %v2185_v52 = vmul.f32 %v5932_v2, %v91_v17  ;;  %v2619_v30 = vmul.f32 %v5934_v38, %v91_v17  ;;  %v2605_v62 = vadd.f32 %v2603_v25, %v2588_v53 }
 0x12c   :  { %v450_v44 = vadd.f32 %v448_v35, %v433_v5  ;;  %v5935_v7 = vrot.slane %v5933_v51, %v3077_v27  ;;  %v451_v24 = vadd.f32 %v449_v57, %v434_v28  ;;  %v883_v46 = vadd.f32 %v881_v49, %v866_v42  ;;  %v5957_v51 = vld [vmem:[#allocation102_spill] sm:$0xff] }
 0x12d   :  { %v884_v56 = vadd.f32 %v882_v32, %v867_v6  ;;  %v5024_v40 = vadd.f32 %v1316_v33, %v1301_v1  ;;  %v5026_v37 = vadd.f32 %v1317_v18, %v1302_v15  ;;  %v5028_v14 = vadd.f32 %v1751_v11, %v1736_v8  ;;  %v5939_v1 = vld [vmem:[#allocation96_spill] sm:$0xff]  ;;  %v2829_v33 = vld [vmem:[%s5282_s0 + $0x27] ss:$8 sm:$0x3] }
 0x12e   :  { %v2620_v22 = vmul.f32 %v5935_v7, %v91_v17  ;;  %v5030_v21 = vadd.f32 %v1752_v9, %v1737_v54  ;;  %v5937_v29 = vrot.slane %v5936_v3, %v3075_v26  ;;  %v5035_v5 = vadd.f32 %v2184_v4, %v2169_v50  ;;  %v2853_v50 = vld [vmem:[%s5282_s0 + $0x57] ss:$8 sm:$0x3] }
 0x12f   :  { %v5037_v20 = vadd.f32 %v2185_v52, %v2170_v60  ;;  %v5039_v17 = vadd.f32 %v2619_v30, %v2604_v48  ;;  %v5938_v28 = vrot.slane %v5936_v3, %v3077_v27  ;;  %v5940_v15 = vrot.slane %v5939_v1, %v3075_v26 }
 0x130   :  { %v465_v53 = vmul.f32 %v5937_v29, %v95_v16  ;;  %v5044_v6 = vadd.f32 %v2620_v22, %v2605_v62  ;;  %v5941_v54 = vrot.slane %v5939_v1, %v3077_v27  ;;  %v5943_v25 = vrot.slane %v5942_v12, %v3075_v26  ;;  %v5961_v29 = vld [vmem:[#allocation103_spill] sm:$0xff]  ;;  %v5964_v1 = vld [vmem:[#allocation104_spill] sm:$0xff] }
 0x131   :  { %v466_v42 = vmul.f32 %v5938_v28, %v95_v16  ;;  %v898_v8 = vmul.f32 %v5940_v15, %v95_v16  ;;  %v5944_v63 = vrot.slane %v5942_v12, %v3077_v27  ;;  %v5946_v57 = vrot.slane %v5945_v19, %v3075_v26  ;;  %v5119_v12 = vpop.permute.xlu0 %106 }
 0x132   :  { %v899_v39 = vmul.f32 %v5941_v54, %v95_v16  ;;  %v1333_v34 = vmul.f32 %v5943_v25, %v95_v16  ;;  %v5947_v0 = vrot.slane %v5945_v19, %v3077_v27  ;;  %v5949_v32 = vrot.slane %v5948_v13, %v3075_v26 }
 0x133   :  { %v1334_v35 = vmul.f32 %v5944_v63, %v95_v16  ;;  %v1768_v41 = vmul.f32 %v5946_v57, %v95_v16  ;;  %v5950_v61 = vrot.slane %v5948_v13, %v3077_v27  ;;  %v5952_v55 = vrot.slane %v5951_v10, %v3075_v26  ;;  %v2854_v63 = vld [vmem:[%s5282_s0 + $0x60] ss:$8 sm:$0x3] }
 0x134   :  { %v1769_v49 = vmul.f32 %v5947_v0, %v95_v16  ;;  %v5067_v45 = vmul.f32 %v5949_v32, %v95_v16  ;;  %v5954_v9 = vrot.slane %v5953_v23, %v3075_v26  ;;  %v467_v43 = vadd.f32 %v465_v53, %v450_v44 }
 0x135   :  { %v5080_v18 = vmul.f32 %v5950_v61, %v95_v16  ;;  %v5085_v11 = vmul.f32 %v5952_v55, %v95_v16  ;;  %v5955_v31 = vrot.slane %v5951_v10, %v3077_v27  ;;  %v5956_v2 = vrot.slane %v5953_v23, %v3077_v27  ;;  %v5967_v10 = vld [vmem:[#allocation105_spill] sm:$0xff] }
 0x136   :  { %v482_v60 = vmul.f32 %v5954_v9, %v99_v58  ;;  %v5958_v38 = vrot.slane %v5957_v51, %v3075_v26  ;;  %v468_v48 = vadd.f32 %v466_v42, %v451_v24  ;;  %v5959_v62 = vrot.slane %v5957_v51, %v3077_v27 }
 0x137   :  { %v5093_v4 = vmul.f32 %v5955_v31, %v95_v16  ;;  %v483_v52 = vmul.f32 %v5956_v2, %v99_v58  ;;  %v5960_v44 = vrot.slane %v5911_v59, %v3075_v26  ;;  %v509_v16 = vrot.slane %v2829_v33, %v3075_v26  ;;  %v5970_v31 = vld [vmem:[#allocation106_spill] sm:$0xff] }
 0x138   :  { %v915_v30 = vmul.f32 %v5958_v38, %v99_v58  ;;  %v916_v7 = vmul.f32 %v5959_v62, %v99_v58  ;;  %v925_v3 = vrot.slane %v2853_v50, %v3075_v26  ;;  %v5962_v53 = vrot.slane %v5961_v29, %v3075_v26 }
 0x139   :  { %v499_v22 = vmul.f32 %v5960_v44, %v5069_v47  ;;  %v5963_v24 = vrot.slane %v5961_v29, %v3077_v27  ;;  %v5965_v15 = vrot.slane %v5964_v1, %v3075_v26  ;;  %v513_v25 = vrot.slane %v2829_v33, %v3077_v27 }
 0x13a   :  { %v1350_v28 = vmul.f32 %v5962_v53, %v99_v58  ;;  %v484_v19 = vadd.f32 %v482_v60, %v467_v43  ;;  %v500_v57 = vmul.f32 %v496_v36, %v5069_v47  ;;  %v900_v0 = vadd.f32 %v898_v8, %v883_v46  ;;  %v2878_v60 = vld [vmem:[%s5282_s0 + $0x90] ss:$8 sm:$0x3] }
 0x13b   :  { %v1351_v42 = vmul.f32 %v5963_v24, %v99_v58  ;;  %v1785_v54 = vmul.f32 %v5965_v15, %v99_v58  ;;  %v929_v13 = vrot.slane %v2853_v50, %v3077_v27  ;;  %v5966_v32 = vrot.slane %v5964_v1, %v3077_v27 }
 0x13c   :  { %v5968_v33 = vrot.slane %v5967_v10, %v3075_v26  ;;  %v485_v23 = vadd.f32 %v483_v52, %v468_v48  ;;  %v901_v9 = vadd.f32 %v899_v39, %v884_v56  ;;  %v501_v59 = vadd.f32 %v499_v22, %v484_v19  ;;  %v2879_v22 = vld [vmem:[%s5282_s0 + $0x91] ss:$8 sm:$0x3] }
 0x13d   :  { %v1786_v61 = vmul.f32 %v5966_v32, %v99_v58  ;;  %v516_v36 = vmul.f32 %v509_v16, %v5119_v12  ;;  %v932_v46 = vmul.f32 %v925_v3, %v5069_v47  ;;  %v942_v8 = vrot.slane %v2854_v63, %v3075_v26  ;;  %v2903_v16 = vld [vmem:[%s5282_s0 + $0xc6] ss:$8 sm:$0x3] }
 0x13e   :  { %v5136_v55 = vmul.f32 %v5968_v33, %v99_v58  ;;  %v5969_v50 = vrot.slane %v5967_v10, %v3077_v27  ;;  %v5971_v2 = vrot.slane %v5970_v31, %v3075_v26  ;;  %v5972_v56 = vrot.slane %v5970_v31, %v3077_v27 }
 0x13f   :  { %v517_v51 = vmul.f32 %v513_v25, %v5119_v12  ;;  %v502_v38 = vadd.f32 %v500_v57, %v485_v23  ;;  %v917_v48 = vadd.f32 %v915_v30, %v900_v0  ;;  %v933_v62 = vmul.f32 %v929_v13, %v5069_v47  ;;  %v2904_v25 = vld [vmem:[%s5282_s0 + $0xc7] ss:$8 sm:$0x3] }
 0x140   :  { %v2219_v43 = vmul.f32 %v5969_v50, %v99_v58  ;;  %v5150_v52 = vmul.f32 %v5971_v2, %v99_v58  ;;  %v5155_v39 = vmul.f32 %v5972_v56, %v99_v58  ;;  %v1360_v44 = vrot.slane %v2878_v60, %v3075_v26 }
 0x141   :  { %v918_v3 = vadd.f32 %v916_v7, %v901_v9  ;;  %v946_v58 = vrot.slane %v2854_v63, %v3077_v27  ;;  %v1335_v29 = vadd.f32 %v1333_v34, %v5024_v40  ;;  %v1336_v53 = vadd.f32 %v1334_v35, %v5026_v37 }
 0x142   :  { %v5169_v30 = vadd.f32 %v516_v36, %v501_v59  ;;  %v934_v24 = vadd.f32 %v932_v46, %v917_v48  ;;  %v949_v1 = vmul.f32 %v942_v8, %v5119_v12  ;;  %v1364_v15 = vrot.slane %v2878_v60, %v3077_v27  ;;  %v2929_v8 = vld [vmem:[%s5282_s0 + $0x100] ss:$8 sm:$0x3] }
 0x143   :  { %v1367_v19 = vmul.f32 %v1360_v44, %v5069_v47  ;;  %v1377_v7 = vrot.slane %v2879_v22, %v3075_v26  ;;  %v1795_v63 = vrot.slane %v2903_v16, %v3075_v26  ;;  %v1799_v40 = vrot.slane %v2903_v16, %v3077_v27  ;;  %v2954_v44 = vld [vmem:[%s5282_s0 + $0x131] ss:$8 sm:$0x3] }
 0x144   :  { %v5180_v37 = vadd.f32 %v517_v51, %v502_v38  ;;  %v935_v34 = vadd.f32 %v933_v62, %v918_v3  ;;  %v1770_v35 = vadd.f32 %v1768_v41, %v5028_v14  ;;  %v1771_v57 = vadd.f32 %v1769_v49, %v5030_v21  ;;  %v2928_v14 = vld [vmem:[%s5282_s0 + $0xf7] ss:$8 sm:$0x3] }
 0x145   :  { %v950_v0 = vmul.f32 %v946_v58, %v5119_v12  ;;  %v1352_v13 = vadd.f32 %v1350_v28, %v1335_v29  ;;  %v1381_v32 = vrot.slane %v2879_v22, %v3077_v27  ;;  %v1812_v10 = vrot.slane %v2904_v25, %v3075_v26 }
 0x146   :  { %v1353_v33 = vadd.f32 %v1351_v42, %v1336_v53  ;;  %v1802_v23 = vmul.f32 %v1795_v63, %v5069_v47  ;;  %v1803_v9 = vmul.f32 %v1799_v40, %v5069_v47  ;;  %v1816_v60 = vrot.slane %v2904_v25, %v3077_v27 }
 0x147   :  { %v5193_v41 = vadd.f32 %v949_v1, %v934_v24  ;;  %v1368_v21 = vmul.f32 %v1364_v15, %v5069_v47  ;;  %v1369_v49 = vadd.f32 %v1367_v19, %v1352_v13  ;;  %v1384_v28 = vmul.f32 %v1377_v7, %v5119_v12  ;;  %v2855_v15 = vld [vmem:[%s5282_s0 + $0x61] ss:$8 sm:$0x3]  ;;  %v111_v7 = vpop.permute.xlu1 %110 }
 0x148   :  { %v1787_v59 = vadd.f32 %v1785_v54, %v1770_v35  ;;  %v1788_v36 = vadd.f32 %v1786_v61, %v1771_v57  ;;  %v2203_v42 = vadd.f32 %v5067_v45, %v5035_v5  ;;  %v2204_v46 = vadd.f32 %v5080_v18, %v5037_v20  ;;  %v2953_v54 = vld [vmem:[%s5282_s0 + $0x130] ss:$8 sm:$0x3] }
 0x149   :  { %v5204_v50 = vadd.f32 %v950_v0, %v935_v34  ;;  %v1385_v31 = vmul.f32 %v1381_v32, %v5119_v12  ;;  %v1819_v2 = vmul.f32 %v1812_v10, %v5119_v12  ;;  %v2228_v56 = vrot.slane %v2928_v14, %v3075_v26  ;;  %v2830_v61 = vld [vmem:[%s5282_s0 + $0x30] ss:$8 sm:$0x3] }
 0x14a   :  { %v1804_v5 = vadd.f32 %v1802_v23, %v1787_v59  ;;  %v1805_v45 = vadd.f32 %v1803_v9, %v1788_v36  ;;  %v1820_v20 = vmul.f32 %v1816_v60, %v5119_v12  ;;  %v2232_v18 = vrot.slane %v2928_v14, %v3077_v27  ;;  %v2905_v57 = vld [vmem:[%s5282_s0 + $0xd0] ss:$8 sm:$0x3] }
 0x14b   :  { %v1370_v51 = vadd.f32 %v1368_v21, %v1353_v33  ;;  %v5217_v38 = vadd.f32 %v1384_v28, %v1369_v49  ;;  %v2245_v48 = vrot.slane %v2929_v8, %v3075_v26  ;;  %v2249_v62 = vrot.slane %v2929_v8, %v3077_v27  ;;  %v2880_v33 = vld [vmem:[%s5282_s0 + $0x92] ss:$8 sm:$0x3] }
 0x14c   :  { %v2220_v22 = vadd.f32 %v5136_v55, %v2203_v42  ;;  %v2221_v16 = vadd.f32 %v2219_v43, %v2204_v46  ;;  %v2663_v3 = vrot.slane %v2953_v54, %v3075_v26  ;;  %v2667_v58 = vrot.slane %v2953_v54, %v3077_v27  ;;  %v2930_v42 = vld [vmem:[%s5282_s0 + $0x101] ss:$8 sm:$0x3] }
 0x14d   :  { %v2235_v29 = vmul.f32 %v2228_v56, %v5069_v47  ;;  %v2638_v53 = vadd.f32 %v5085_v11, %v5039_v17  ;;  %v2639_v24 = vadd.f32 %v5093_v4, %v5044_v6  ;;  %v526_v1 = vrot.slane %v2830_v61, %v3075_v26 }
 0x14e   :  { %v1821_v55 = vadd.f32 %v1819_v2, %v1804_v5  ;;  %v1822_v43 = vadd.f32 %v1820_v20, %v1805_v45  ;;  %v2236_v25 = vmul.f32 %v2232_v18, %v5069_v47  ;;  %v2680_v19 = vrot.slane %v2954_v44, %v3075_v26 }
 0x14f   :  { %v2252_v63 = vmul.f32 %v2245_v48, %v5119_v12  ;;  %v2253_v17 = vmul.f32 %v2249_v62, %v5119_v12  ;;  %v2684_v11 = vrot.slane %v2954_v44, %v3077_v27  ;;  %v530_v6 = vrot.slane %v2830_v61, %v3077_v27 }
 0x150   :  { %v2670_v4 = vmul.f32 %v2663_v3, %v5069_v47  ;;  %v2671_v40 = vmul.f32 %v2667_v58, %v5069_v47  ;;  %v959_v34 = vrot.slane %v2855_v15, %v3075_v26  ;;  %v963_v35 = vrot.slane %v2855_v15, %v3077_v27 }
 0x151   :  { %v2237_v0 = vadd.f32 %v2235_v29, %v2220_v22  ;;  %v2655_v13 = vadd.f32 %v5150_v52, %v2638_v53  ;;  %v2656_v32 = vadd.f32 %v5155_v39, %v2639_v24  ;;  %v533_v10 = vmul.f32 %v526_v1, %v111_v7 }
 0x152   :  { %v2238_v23 = vadd.f32 %v2236_v25, %v2221_v16  ;;  %v2687_v47 = vmul.f32 %v2680_v19, %v5119_v12  ;;  %v534_v9 = vmul.f32 %v530_v6, %v111_v7  ;;  %v966_v60 = vmul.f32 %v959_v34, %v111_v7 }
 0x153   :  { %v2688_v14 = vmul.f32 %v2684_v11, %v5119_v12  ;;  %v967_v21 = vmul.f32 %v963_v35, %v111_v7  ;;  %v1829_v49 = vrot.slane %v2905_v57, %v3075_v26  ;;  %v1833_v28 = vrot.slane %v2905_v57, %v3077_v27 }
 0x154   :  { %v2672_v52 = vadd.f32 %v2670_v4, %v2655_v13  ;;  %v2673_v59 = vadd.f32 %v2671_v40, %v2656_v32  ;;  %v1394_v39 = vrot.slane %v2880_v33, %v3075_v26  ;;  %v1398_v36 = vrot.slane %v2880_v33, %v3077_v27 }
 0x155   :  { %v1387_v46 = vadd.f32 %v1385_v31, %v1370_v51  ;;  %v535_v8 = vadd.f32 %v533_v10, %v5169_v30  ;;  %v1836_v2 = vmul.f32 %v1829_v49, %v111_v7  ;;  %v1837_v12 = vmul.f32 %v1833_v28, %v111_v7  ;;  %v2955_v31 = vld [vmem:[%s5282_s0 + $0x132] ss:$8 sm:$0x3] }
 0x156   :  { %v2254_v56 = vadd.f32 %v2252_v63, %v2237_v0  ;;  %v2255_v54 = vadd.f32 %v2253_v17, %v2238_v23  ;;  %v536_v5 = vadd.f32 %v534_v9, %v5180_v37  ;;  %v968_v45 = vadd.f32 %v966_v60, %v5193_v41 }
 0x157   :  { %v969_v20 = vadd.f32 %v967_v21, %v5204_v50  ;;  %v1838_v18 = vadd.f32 %v1836_v2, %v1821_v55  ;;  %v1839_v61 = vadd.f32 %v1837_v12, %v1822_v43  ;;  %v2262_v48 = vrot.slane %v2930_v42, %v3075_v26 }
 0x158   :  { %v2689_v51 = vadd.f32 %v2687_v47, %v2672_v52  ;;  %v2690_v30 = vadd.f32 %v2688_v14, %v2673_v59  ;;  %v1401_v62 = vmul.f32 %v1394_v39, %v111_v7  ;;  %v1402_v44 = vmul.f32 %v1398_v36, %v111_v7 }
 0x159   :  { %v539_v22 = vrot.slane %v535_v8, 4  ;;  %v1842_v16 = vrot.slane %v1838_v18, 4  ;;  %v2266_v37 = vrot.slane %v2930_v42, %v3077_v27  ;;  %v2269_v3 = vmul.f32 %v2262_v48, %v111_v7 }
 0x15a   :  { %v540_v41 = vrot.slane %v536_v5, 4  ;;  %v972_v58 = vrot.slane %v968_v45, 4  ;;  %v2697_v50 = vrot.slane %v2955_v31, %v3075_v26  ;;  %v2701_v29 = vrot.slane %v2955_v31, %v3077_v27 }
 0x15b   :  { %v973_v53 = vrot.slane %v969_v20, 4  ;;  %v1843_v24 = vrot.slane %v1839_v61, 4  ;;  %v2270_v1 = vmul.f32 %v2266_v37, %v111_v7  ;;  %v2271_v15 = vadd.f32 %v2269_v3, %v2254_v56 }
 0x15c   :  { %v1403_v55 = vadd.f32 %v1401_v62, %v5217_v38  ;;  %v1404_v43 = vadd.f32 %v1402_v44, %v1387_v46  ;;  %v2704_v25 = vmul.f32 %v2697_v50, %v111_v7  ;;  %v2705_v19 = vmul.f32 %v2701_v29, %v111_v7 }
 0x15d   :  { %v543_v63 = vmul.f32 %v539_v22, %v535_v8  ;;  %v1846_v17 = vmul.f32 %v1842_v16, %v1838_v18  ;;  %v2272_v11 = vadd.f32 %v2270_v1, %v2255_v54  ;;  %v2275_v6 = vrot.slane %v2271_v15, 4 }
 0x15e   :  { %v544_v4 = vmul.f32 %v540_v41, %v536_v5  ;;  %v976_v40 = vmul.f32 %v972_v58, %v968_v45  ;;  %v2706_v34 = vadd.f32 %v2704_v25, %v2689_v51  ;;  %v2707_v35 = vadd.f32 %v2705_v19, %v2690_v30 }
 0x15f   :  { %v977_v26 = vmul.f32 %v973_v53, %v969_v20  ;;  %v1847_v57 = vmul.f32 %v1843_v24, %v1839_v61  ;;  %v2276_v27 = vrot.slane %v2272_v11, 4  ;;  %v2279_v0 = vmul.f32 %v2275_v6, %v2271_v15 }
 0x160   :  { %v1407_v13 = vrot.slane %v1403_v55, 4  ;;  %v2710_v32 = vrot.slane %v2706_v34, 4  ;;  %v2711_v10 = vrot.slane %v2707_v35, 4  ;;  %v1408_v33 = vrot.slane %v1404_v43, 4 }
 0x161   :  { %v2280_v38 = vmul.f32 %v2276_v27, %v2272_v11  ;;  %v2281_v23 = vadd.f32 %v2279_v0, %v1846_v17  ;;  %v978_v47 = vadd.f32 %v976_v40, %v543_v63  ;;  %v979_v9 = vadd.f32 %v977_v26, %v544_v4 }
 0x162   :  { %v2714_v7 = vmul.f32 %v2710_v32, %v2706_v34  ;;  %v2715_v14 = vmul.f32 %v2711_v10, %v2707_v35  ;;  %v1411_v21 = vmul.f32 %v1407_v13, %v1403_v55  ;;  %v1412_v28 = vmul.f32 %v1408_v33, %v1404_v43 }
 0x163   :  { %v2282_v60 = vadd.f32 %v2280_v38, %v1847_v57 }
 0x164   :  { %v2716_v49 = vadd.f32 %v2714_v7, %v2281_v23  ;;  %v1413_v59 = vadd.f32 %v1411_v21, %v978_v47  ;;  %v1414_v36 = vadd.f32 %v1412_v28, %v979_v9 }
 0x165   :  { %v2717_v52 = vadd.f32 %v2715_v14, %v2282_v60 }
 0x166   :  { %v2720_v39 = vrot.slane %v2716_v49, 4 }
 0x167   :  { %v2721_v42 = vrot.slane %v2717_v52, 4 }
 0x168   :  { %v2725_v46 = vsel %vm2724_vm0, %v1413_v59, %v2720_v39 }
 0x169   :  { %v2726_v8 = vsel %vm2724_vm0, %v1414_v36, %v2721_v42  ;;  %2727 = vst [vmem:[%s5283_s2] sm:$0xff] %v2725_v46 }
 0x16a   :  { %2728 = vst [vmem:[%s5283_s2 + $0x8] sm:$0xff] %v2726_v8 }

</bundles_post_ra>
